<compile_context>
chip_gen: v6e
topology: v6e:2x2x1
jax: 0.10.0
libtpu: 0.0.40
codegen_flags: <defaults>
</compile_context>

<pallas_src>
import functools

import jax
import jax.numpy as jnp
import numpy as np
from jax.experimental import pallas as pl
from jax.experimental.pallas import tpu as pltpu

EPS = 1e-5
SLOPE = 0.2
# bf16 MXU operands (full-rate on v5e/v6e/v7x, half the DMA bytes); accumulation
# and BatchNorm / activation math stay f32.
MATMUL_DTYPE = jnp.bfloat16

_MiB = 1024 * 1024


def _round_up(x, m):
    return -(-x // m) * m


def _mosaic_params(semantics, block_bytes):
    """dimension_semantics + an explicit, derived VMEM budget (v7x: 64 MiB)."""
    limit = int(min(30 * _MiB, max(4 * _MiB, 3 * block_bytes)))
    return pltpu.CompilerParams(dimension_semantics=semantics,
                                vmem_limit_bytes=limit)


# --------------------------------------------------------------------------
# layout helpers (cheap JAX glue, ~1x the input bytes each)
# --------------------------------------------------------------------------
def _coarse_input(x_ndhwc):
    """Fold 2x2 spatial pixels into channels so a stride-(1,2,2) 3x3x3 conv
    becomes a stride-1 3x2x2 conv with 4*Cin input channels."""
    N, D, H, W, C = x_ndhwc.shape
    xp = jnp.pad(x_ndhwc, ((0, 0), (1, 1), (1, 1), (1, 1), (0, 0)))
    Hc, Wc = (H + 2) // 2, (W + 2) // 2
    xc = xp.reshape(N, D + 2, Hc, 2, Wc, 2, C)
    xc = jnp.transpose(xc, (0, 1, 2, 4, 3, 5, 6))
    return xc.reshape(N, D + 2, Hc, Wc, 4 * C)


def _coarse_weight(w):
    """PyTorch (O, I, 3, 3, 3) -> (KD=3, T=4, 4*I, O) taps for the coarse conv."""
    O, I = w.shape[0], w.shape[1]
    wp = jnp.pad(w, ((0, 0), (0, 0), (0, 0), (0, 1), (0, 1)))   # kh, kw -> 4
    wp = wp.reshape(O, I, 3, 2, 2, 2, 2)                        # (O,I,kd,dh,sh,dw,sw)
    wc = jnp.transpose(wp, (2, 3, 5, 4, 6, 1, 0))               # (kd,dh,dw,sh,sw,I,O)
    return wc.reshape(3, 4, 4 * I, O)


def _dense_weight(w):
    """PyTorch (O, I, 3, 3, 3) -> (KD=3, T=9, I, O) taps for a stride-1 conv."""
    O, I = w.shape[0], w.shape[1]
    return jnp.transpose(w, (2, 3, 4, 1, 0)).reshape(3, 9, I, O)


def _bn_affine(stats, count, gamma, beta):
    """stats: (planes, 2, C) with rows [sum, sum_of_squares] -> BN (scale, shift)."""
    tot = jnp.sum(stats, axis=0)                               # (2, C) f32
    mean = tot[0] / count
    var = jnp.maximum(tot[1] / count - mean * mean, 0.0)       # biased (training BN)
    scale = gamma * jax.lax.rsqrt(var + EPS)
    shift = beta - mean * scale
    return scale, shift


# --------------------------------------------------------------------------
# Kernel A: fused conv1 + conv3 (both stride-(1,2,2), shared coarse input,
#           shared patch, single fused accumulator, BN partial sums in epilogue)
# --------------------------------------------------------------------------
def _make_dual_conv_kernel(Ho, Wo, Ca):
    taps = tuple((kh, kw) for kh in range(2) for kw in range(2))

    def kernel(x0_ref, x1_ref, x2_ref, w_ref, b_ref, y1_ref, y3_ref, s_ref):
        M = Ho * Wo
        K = x0_ref.shape[-1]
        Ctot = w_ref.shape[-1]

        acc = jnp.zeros((M, Ctot), jnp.float32)               # lives in vregs
        for kd, x_ref in enumerate((x0_ref, x1_ref, x2_ref)):  # unrolled depth taps
            xp = x_ref[0].astype(jnp.float32)                  # (Ho+1, Wo+1, 4*Cin)
            for t, (kh, kw) in enumerate(taps):                 # unrolled 2x2 taps
                patch = xp[kh:kh + Ho, kw:kw + Wo, :].reshape(M, K)
                acc = acc + jnp.dot(patch.astype(MATMUL_DTYPE), w_ref[kd, t],
                                    preferred_element_type=jnp.float32)

        y = acc + b_ref[...]                                    # (M, Ca+Cb) f32
        y1_ref[0] = y[:, :Ca].reshape(Ho, Wo, Ca).astype(y1_ref.dtype)
        y3_ref[0] = y[:, Ca:].astype(y3_ref.dtype)
        # BatchNorm pass 1: one (2, Ca+Cb) block per plane (combined later in JAX)
        s1 = jnp.sum(y, axis=0, keepdims=True)
        s2 = jnp.sum(y * y, axis=0, keepdims=True)
        s_ref[0] = jnp.concatenate([s1, s2], axis=0)

    return kernel


def dual_strided_conv(xc, n_batch, d_out, w, b, filters_in):
    """xc: (N*(D+2), Hc, Wc, 4*Cin) coarse bf16 input.  w: (3, 4, 4*Cin, Ca+Cb)."""
    NDp, Hc, Wc, K = xc.shape
    Dp = NDp // n_batch
    KD, T, _, Ctot = w.shape
    Ca = filters_in
    Cb = Ctot - Ca
    Ho, Wo = Hc - 1, Wc - 1
    M = Ho * Wo

    def x_map(k):
        return lambda n, d: (n * Dp + d + k, 0, 0, 0)

    const4 = lambda n, d: (0, 0, 0, 0)
    const2 = lambda n, d: (0, 0)
    o_map3 = lambda n, d: (n * d_out + d, 0, 0)
    o_map4 = lambda n, d: (n * d_out + d, 0, 0, 0)

    block_bytes = (3 * Hc * Wc * K * 2 + KD * T * K * Ctot * 2
                   + Ho * Wo * Ca * 2 + M * Cb * 4 + 2 * Ctot * 4) * 2

    return pl.pallas_call(
        _make_dual_conv_kernel(Ho, Wo, Ca),
        out_shape=(
            jax.ShapeDtypeStruct((n_batch * d_out, Ho, Wo, Ca), MATMUL_DTYPE),
            jax.ShapeDtypeStruct((n_batch * d_out, M, Cb), jnp.float32),
            jax.ShapeDtypeStruct((n_batch * d_out, 2, Ctot), jnp.float32),
        ),
        grid_spec=pltpu.PrefetchScalarGridSpec(
            num_scalar_prefetch=0,
            grid=(n_batch, d_out),
            in_specs=[
                pl.BlockSpec((1, Hc, Wc, K), x_map(0)),        # depth plane d
                pl.BlockSpec((1, Hc, Wc, K), x_map(1)),        # depth plane d+1
                pl.BlockSpec((1, Hc, Wc, K), x_map(2)),        # depth plane d+2
                pl.BlockSpec((KD, T, K, Ctot), const4),        # resident weights
                pl.BlockSpec((1, Ctot), const2),               # resident bias
            ],
            out_specs=(
                pl.BlockSpec((1, Ho, Wo, Ca), o_map4),         # conv1 raw (bf16)
                pl.BlockSpec((1, M, Cb), o_map3),              # conv3 raw (f32)
                pl.BlockSpec((1, 2, Ctot), o_map3),            # BN partial sums
            ),
        ),
        compiler_params=_mosaic_params(("parallel", "parallel"), block_bytes),
    )(xc, xc, xc, w, b.reshape(1, Ctot))


# --------------------------------------------------------------------------
# Kernel B: stride-1 conv2 with BN1-apply + LeakyReLU + zero-halo fused in-kernel
# --------------------------------------------------------------------------
def _make_dense_conv_kernel(Ho, Wo, slope):
    taps = tuple((kh, kw) for kh in range(3) for kw in range(3))

    def kernel(x0_ref, x1_ref, x2_ref, w_ref, b_ref, sc_ref, sh_ref,
               y_ref, s_ref, pad_ref):
        M = Ho * Wo
        Ca = x0_ref.shape[-1]
        Cout = w_ref.shape[-1]
        d = pl.program_id(1)
        n_d = pl.num_programs(1)

        pad_ref[...] = jnp.zeros_like(pad_ref)                 # halo stays zero
        sc = sc_ref[...].reshape(1, 1, Ca)
        sh = sh_ref[...].reshape(1, 1, Ca)

        acc = jnp.zeros((M, Cout), jnp.float32)
        for kd, x_ref in enumerate((x0_ref, x1_ref, x2_ref)):
            # depth halo: out-of-range (clamped) planes are masked to zero AFTER
            # activation, exactly matching zero padding of the activated conv1 out.
            dz = d + (kd - 1)
            valid = jnp.logical_and(dz >= 0, dz <= n_d - 1)
            a = x_ref[0].astype(jnp.float32) * sc + sh          # fused BN1 apply
            a = jnp.where(a > 0, a, slope * a)                  # fused LeakyReLU
            a = a * jnp.where(valid, 1.0, 0.0)
            pad_ref[1:Ho + 1, 1:Wo + 1, :] = a                  # H/W zero halo
            for t, (kh, kw) in enumerate(taps):                 # unrolled 3x3 taps
                patch = pad_ref[kh:kh + Ho, kw:kw + Wo, :].reshape(M, Ca)
                acc = acc + jnp.dot(patch.astype(MATMUL_DTYPE), w_ref[kd, t],
                                    preferred_element_type=jnp.float32)

        y = acc + b_ref[...]
        y_ref[0] = y.astype(y_ref.dtype)
        s1 = jnp.sum(y, axis=0, keepdims=True)
        s2 = jnp.sum(y * y, axis=0, keepdims=True)
        s_ref[0] = jnp.concatenate([s1, s2], axis=0)

    return kernel


def dense_conv_bn_in(y1, n_batch, d_out, w, bias, in_scale, in_shift, slope):
    """y1: (N*Do, Ho, Wo, Cin) raw conv1 output (bf16).  w: (3, 9, Cin, Cout)."""
    ND, Ho, Wo, Ca = y1.shape
    KD, T, _, Cout = w.shape
    M = Ho * Wo

    def x_map(k):
        def idx(n, d):
            dz = jnp.clip(d + (k - 1), 0, d_out - 1)           # clamp; kernel masks
            return (n * d_out + dz, 0, 0, 0)
        return idx

    const4 = lambda n, d: (0, 0, 0, 0)
    const2 = lambda n, d: (0, 0)
    o_map = lambda n, d: (n * d_out + d, 0, 0)

    block_bytes = ((3 * Ho * Wo * Ca * 2 + KD * T * Ca * Cout * 2
                    + M * Cout * 4 + 2 * Cout * 4) * 2
                   + (Ho + 2) * (Wo + 2) * Ca * 4)

    return pl.pallas_call(
        _make_dense_conv_kernel(Ho, Wo, slope),
        out_shape=(
            jax.ShapeDtypeStruct((n_batch * d_out, M, Cout), jnp.float32),
            jax.ShapeDtypeStruct((n_batch * d_out, 2, Cout), jnp.float32),
        ),
        grid_spec=pltpu.PrefetchScalarGridSpec(
            num_scalar_prefetch=0,
            grid=(n_batch, d_out),
            in_specs=[
                pl.BlockSpec((1, Ho, Wo, Ca), x_map(0)),
                pl.BlockSpec((1, Ho, Wo, Ca), x_map(1)),
                pl.BlockSpec((1, Ho, Wo, Ca), x_map(2)),
                pl.BlockSpec((KD, T, Ca, Cout), const4),       # resident weights
                pl.BlockSpec((1, Cout), const2),               # resident bias
                pl.BlockSpec((1, Ca), const2),                 # resident BN1 scale
                pl.BlockSpec((1, Ca), const2),                 # resident BN1 shift
            ],
            out_specs=(
                pl.BlockSpec((1, M, Cout), o_map),
                pl.BlockSpec((1, 2, Cout), o_map),
            ),
            scratch_shapes=[pltpu.VMEM((Ho + 2, Wo + 2, Ca), jnp.float32)],
        ),
        compiler_params=_mosaic_params(("parallel", "parallel"), block_bytes),
    )(y1, y1, y1, w, bias.reshape(1, Cout),
      in_scale.reshape(1, Ca), in_shift.reshape(1, Ca))


# --------------------------------------------------------------------------
# Kernel C: fused BN-apply (+ LeakyReLU) of both branches + residual add,
#           lane-dense (128-wide rows) whenever 128 % Cout == 0.
# --------------------------------------------------------------------------
def _make_finalize_kernel(slope, apply_act):
    def kernel(y2_ref, y3_ref, p_ref, o_ref):
        p = p_ref[...]                                         # (4, Cv)
        a = y2_ref[...] * p[0:1, :] + p[1:2, :]
        b = y3_ref[...] * p[2:3, :] + p[3:4, :]
        if apply_act:
            a = jnp.where(a > 0, a, slope * a)
            b = jnp.where(b > 0, b, slope * b)
        o_ref[...] = (a + b).astype(o_ref.dtype)
    return kernel


def bn_act_add(y2, sc2, sh2, y3, sc3, sh3, *, slope, apply_act):
    R, C = y2.shape
    if 128 % C == 0 and (R * C) % 128 == 0:
        # lane-dense view: every load/store is a full unmasked 128-lane row;
        # per-channel affines are lane-tiled to 128.
        reps = 128 // C
        y2v = y2.reshape(-1, 128)
        y3v = y3.reshape(-1, 128)
        p = jnp.stack([jnp.tile(sc2, reps), jnp.tile(sh2, reps),
                       jnp.tile(sc3, reps), jnp.tile(sh3, reps)], axis=0)
    else:
        y2v, y3v = y2, y3
        p = jnp.stack([sc2, sh2, sc3, sh3], axis=0)

    Rv, Cv = y2v.shape
    tile = min(2048, _round_up(Rv, 8))
    Rp = _round_up(Rv, tile)
    if Rp != Rv:
        y2v = jnp.pad(y2v, ((0, Rp - Rv), (0, 0)))
        y3v = jnp.pad(y3v, ((0, Rp - Rv), (0, 0)))

    row_map = lambda i: (i, 0)
    const2 = lambda i: (0, 0)
    block_bytes = 3 * tile * Cv * 4 * 2 + 4 * Cv * 4

    out = pl.pallas_call(
        _make_finalize_kernel(slope, apply_act),
        out_shape=jax.ShapeDtypeStruct((Rp, Cv), jnp.float32),
        grid_spec=pltpu.PrefetchScalarGridSpec(
            num_scalar_prefetch=0,
            grid=(Rp // tile,),
            in_specs=[pl.BlockSpec((tile, Cv), row_map),
                      pl.BlockSpec((tile, Cv), row_map),
                      pl.BlockSpec((4, Cv), const2)],
            out_specs=pl.BlockSpec((tile, Cv), row_map),
        ),
        compiler_params=_mosaic_params(("parallel",), block_bytes),
    )(y2v, y3v, p)
    return out[:Rv].reshape(R, C)


# --------------------------------------------------------------------------
# Full ResBlockDown forward
# --------------------------------------------------------------------------
@functools.partial(jax.jit, static_argnames=("act",))
def res_block_down_forward(x_ncdhw, params, act=True):
    x = jnp.transpose(x_ncdhw, (0, 2, 3, 4, 1))               # NCDHW -> NDHWC
    N, D, H, W, Cin = x.shape
    assert H % 2 == 0 and W % 2 == 0
    Do, Ho, Wo = D, H // 2, W // 2
    count = N * Do * Ho * Wo
    Cout = params["w2"].shape[0]

    # shared coarse (pixel-folded) bf16 input for both stride-(1,2,2) convs
    xc = _coarse_input(x).reshape(N * (D + 2), Ho + 1, Wo + 1, 4 * Cin)
    xc = xc.astype(MATMUL_DTYPE)

    # conv1 & conv3 weights fused along the output-channel axis
    w13 = jnp.concatenate([_coarse_weight(params["w1"]),
                           _coarse_weight(params["w3"])],
                          axis=-1).astype(MATMUL_DTYPE)
    b13 = jnp.concatenate([params["b1"], params["b3"]])

    y1, y3, s13 = dual_strided_conv(xc, N, Do, w13, b13, Cin)

    scale1, shift1 = _bn_affine(s13[:, :, :Cin], count,
                                params["gamma1"], params["beta1"])
    scale3, shift3 = _bn_affine(s13[:, :, Cin:], count,
                                params["gamma3"], params["beta3"])

    # conv2: BN1-apply + LeakyReLU + zero halo fused inside the kernel
    w2d = _dense_weight(params["w2"]).astype(MATMUL_DTYPE)
    y2, s2 = dense_conv_bn_in(y1, N, Do, w2d, params["b2"],
                              scale1, shift1, SLOPE)
    scale2, shift2 = _bn_affine(s2, count, params["gamma2"], params["beta2"])

    # BN-apply (+ LeakyReLU) of both branches + residual add, fused & lane-dense
    out = bn_act_add(y2.reshape(-1, Cout), scale2, shift2,
                     y3.reshape(-1, Cout), scale3, shift3,
                     slope=SLOPE, apply_act=act)
    out = out.reshape(N, Do, Ho, Wo, Cout)
    return jnp.transpose(out, (0, 4, 1, 2, 3))                # NDHWC -> NCDHW


def init_params(key, filters_in, filters_out):
    ks = jax.random.split(key, 3)

    def conv_init(k, o, i):
        bound = 1.0 / np.sqrt(i * 27)
        kw, kb = jax.random.split(k)
        w = jax.random.uniform(kw, (o, i, 3, 3, 3), jnp.float32, -bound, bound)
        b = jax.random.uniform(kb, (o,), jnp.float32, -bound, bound)
        return w, b

    w1, b1 = conv_init(ks[0], filters_in, filters_in)
    w2, b2 = conv_init(ks[1], filters_out, filters_in)
    w3, b3 = conv_init(ks[2], filters_out, filters_in)
    return dict(
        w1=w1, b1=b1,
        gamma1=jnp.ones((filters_in,), jnp.float32),
        beta1=jnp.zeros((filters_in,), jnp.float32),
        w2=w2, b2=b2,
        gamma2=jnp.ones((filters_out,), jnp.float32),
        beta2=jnp.zeros((filters_out,), jnp.float32),
        w3=w3, b3=b3,
        gamma3=jnp.ones((filters_out,), jnp.float32),
        beta3=jnp.zeros((filters_out,), jnp.float32),
    )


# --------------------------------------------------------------------------
# Pure-JAX reference (for correctness check only)
# --------------------------------------------------------------------------
def reference_forward(x, p, act=True):
    def conv(x_, w, b, stride):
        dn = jax.lax.conv_dimension_numbers(x_.shape, w.shape,
                                            ("NCDHW", "OIDHW", "NCDHW"))
        y = jax.lax.conv_general_dilated(
            x_, w, window_strides=stride, padding=((1, 1), (1, 1), (1, 1)),
            dimension_numbers=dn)
        return y + b[None, :, None, None, None]

    def bn(x_, g, b):
        m = jnp.mean(x_, axis=(0, 2, 3, 4), keepdims=True)
        v = jnp.mean(jnp.square(x_ - m), axis=(0, 2, 3, 4), keepdims=True)
        xh = (x_ - m) * jax.lax.rsqrt(v + EPS)
        return xh * g[None, :, None, None, None] + b[None, :, None, None, None]

    def lrelu(x_):
        return jnp.where(x_ > 0, x_, SLOPE * x_)

    c1 = lrelu(bn(conv(x, p["w1"], p["b1"], (1, 2, 2)), p["gamma1"], p["beta1"]))
    c2 = bn(conv(c1, p["w2"], p["b2"], (1, 1, 1)), p["gamma2"], p["beta2"])
    c3 = bn(conv(x, p["w3"], p["b3"], (1, 2, 2)), p["gamma3"], p["beta3"])
    if act:
        c2 = lrelu(c2)
        c3 = lrelu(c3)
    return c2 + c3


if __name__ == "__main__":
    filters_in, filters_out = 16, 32
    N, D, H, W = 2, 4, 16, 16

    key = jax.random.PRNGKey(0)
    kx, kp = jax.random.split(key)
    x = jax.random.normal(kx, (N, filters_in, D, H, W), jnp.float32)
    params = init_params(kp, filters_in, filters_out)

    out = jax.block_until_ready(res_block_down_forward(x, params, act=True))
    assert out.shape == (N, filters_out, D, H // 2, W // 2), out.shape

    ref = jax.block_until_ready(reference_forward(x, params, act=True))
    out_np, ref_np = np.asarray(out), np.asarray(ref)
    # bf16 MXU operands + bf16-stored conv1 activations => relaxed tolerance.
    if not np.allclose(out_np, ref_np, rtol=5e-2, atol=5e-2):
        err = np.max(np.abs(out_np - ref_np))
        raise AssertionError(f"Pallas output does not match reference (max err {err})")

    print("KERNEL_OK")
</pallas_src>

<mosaic_0001>
module attributes {stable_mosaic.version = 11 : i64} {
  func.func @kernel(%arg0: i32, %arg1: i32, %arg2: memref<1x9x9x64xbf16, #tpu.memory_space<vmem>>, %arg3: memref<1x9x9x64xbf16, #tpu.memory_space<vmem>>, %arg4: memref<1x9x9x64xbf16, #tpu.memory_space<vmem>>, %arg5: memref<3x4x64x48xbf16, #tpu.memory_space<vmem>>, %arg6: memref<1x48xf32, #tpu.memory_space<vmem>>, %arg7: memref<1x8x8x16xbf16, #tpu.memory_space<vmem>>, %arg8: memref<1x64x32xf32, #tpu.memory_space<vmem>>, %arg9: memref<1x2x48xf32, #tpu.memory_space<vmem>>) attributes {dimension_semantics = [#tpu.dimension_semantics<parallel>, #tpu.dimension_semantics<parallel>], iteration_bounds = array<i64: 2, 4>, scalar_prefetch = 0 : i64, scratch_operands = 0 : i64, tpu.core_type = #tpu.core_type<tc>, window_params = [{transform_indices = @transform_0, window_bounds = array<i64: 1, 9, 9, 64>}, {transform_indices = @transform_1, window_bounds = array<i64: 1, 9, 9, 64>}, {transform_indices = @transform_2, window_bounds = array<i64: 1, 9, 9, 64>}, {pipeline_mode = #tpu.pipeline_mode<synchronous>, transform_indices = @transform_3, window_bounds = array<i64: 3, 4, 64, 48>}, {pipeline_mode = #tpu.pipeline_mode<synchronous>, transform_indices = @transform_4, window_bounds = array<i64: 1, 48>}, {transform_indices = @transform_5, window_bounds = array<i64: 1, 8, 8, 16>}, {transform_indices = @transform_6, window_bounds = array<i64: 1, 64, 32>}, {transform_indices = @transform_7, window_bounds = array<i64: 1, 2, 48>}]} {
    %cst = arith.constant 0.000000e+00 : f32
    %0 = vector.broadcast %cst : f32 to vector<64x48xf32>
    %c0 = arith.constant 0 : index
    %c0_0 = arith.constant 0 : index
    %c0_1 = arith.constant 0 : index
    %c0_2 = arith.constant 0 : index
    %1 = vector.load %arg2[%c0, %c0_0, %c0_1, %c0_2] : memref<1x9x9x64xbf16, #tpu.memory_space<vmem>>, vector<1x9x9x64xbf16>
    %2 = vector.shape_cast %1 : vector<1x9x9x64xbf16> to vector<9x9x64xbf16>
    %3 = arith.extf %2 : vector<9x9x64xbf16> to vector<9x9x64xf32>
    %4 = vector.extract_strided_slice %3 {offsets = [0, 0, 0], sizes = [8, 8, 64], strides = [1, 1, 1]} : vector<9x9x64xf32> to vector<8x8x64xf32>
    %5 = vector.shape_cast %4 : vector<8x8x64xf32> to vector<64x64xf32>
    %6 = arith.truncf %5 : vector<64x64xf32> to vector<64x64xbf16>
    %c0_3 = arith.constant 0 : index
    %c0_4 = arith.constant 0 : index
    %c0_5 = arith.constant 0 : index
    %c0_6 = arith.constant 0 : index
    %7 = vector.load %arg5[%c0_3, %c0_4, %c0_5, %c0_6] : memref<3x4x64x48xbf16, #tpu.memory_space<vmem>>, vector<1x1x64x48xbf16>
    %8 = vector.shape_cast %7 : vector<1x1x64x48xbf16> to vector<64x48xbf16>
    %cst_7 = arith.constant dense<0.000000e+00> : vector<64x48xf32>
    %9 = tpu.matmul %6, %8, %cst_7 {dimension_numbers = #tpu.dot_dimension_numbers<[1], [0], [0], [1], [0, 0, 1, 1], [], []>} : vector<64x64xbf16>, vector<64x48xbf16>, vector<64x48xf32> -> vector<64x48xf32>
    %10 = arith.addf %0, %9 : vector<64x48xf32>
    %11 = vector.extract_strided_slice %3 {offsets = [0, 1, 0], sizes = [8, 8, 64], strides = [1, 1, 1]} : vector<9x9x64xf32> to vector<8x8x64xf32>
    %12 = vector.shape_cast %11 : vector<8x8x64xf32> to vector<64x64xf32>
    %13 = arith.truncf %12 : vector<64x64xf32> to vector<64x64xbf16>
    %c0_8 = arith.constant 0 : index
    %c1 = arith.constant 1 : index
    %c0_9 = arith.constant 0 : index
    %c0_10 = arith.constant 0 : index
    %14 = vector.load %arg5[%c0_8, %c1, %c0_9, %c0_10] : memref<3x4x64x48xbf16, #tpu.memory_space<vmem>>, vector<1x1x64x48xbf16>
    %15 = vector.shape_cast %14 : vector<1x1x64x48xbf16> to vector<64x48xbf16>
    %cst_11 = arith.constant dense<0.000000e+00> : vector<64x48xf32>
    %16 = tpu.matmul %13, %15, %cst_11 {dimension_numbers = #tpu.dot_dimension_numbers<[1], [0], [0], [1], [0, 0, 1, 1], [], []>} : vector<64x64xbf16>, vector<64x48xbf16>, vector<64x48xf32> -> vector<64x48xf32>
    %17 = arith.addf %10, %16 : vector<64x48xf32>
    %18 = vector.extract_strided_slice %3 {offsets = [1, 0, 0], sizes = [8, 8, 64], strides = [1, 1, 1]} : vector<9x9x64xf32> to vector<8x8x64xf32>
    %19 = vector.shape_cast %18 : vector<8x8x64xf32> to vector<64x64xf32>
    %20 = arith.truncf %19 : vector<64x64xf32> to vector<64x64xbf16>
    %c0_12 = arith.constant 0 : index
    %c2 = arith.constant 2 : index
    %c0_13 = arith.constant 0 : index
    %c0_14 = arith.constant 0 : index
    %21 = vector.load %arg5[%c0_12, %c2, %c0_13, %c0_14] : memref<3x4x64x48xbf16, #tpu.memory_space<vmem>>, vector<1x1x64x48xbf16>
    %22 = vector.shape_cast %21 : vector<1x1x64x48xbf16> to vector<64x48xbf16>
    %cst_15 = arith.constant dense<0.000000e+00> : vector<64x48xf32>
    %23 = tpu.matmul %20, %22, %cst_15 {dimension_numbers = #tpu.dot_dimension_numbers<[1], [0], [0], [1], [0, 0, 1, 1], [], []>} : vector<64x64xbf16>, vector<64x48xbf16>, vector<64x48xf32> -> vector<64x48xf32>
    %24 = arith.addf %17, %23 : vector<64x48xf32>
    %25 = vector.extract_strided_slice %3 {offsets = [1, 1, 0], sizes = [8, 8, 64], strides = [1, 1, 1]} : vector<9x9x64xf32> to vector<8x8x64xf32>
    %26 = vector.shape_cast %25 : vector<8x8x64xf32> to vector<64x64xf32>
    %27 = arith.truncf %26 : vector<64x64xf32> to vector<64x64xbf16>
    %c0_16 = arith.constant 0 : index
    %c3 = arith.constant 3 : index
    %c0_17 = arith.constant 0 : index
    %c0_18 = arith.constant 0 : index
    %28 = vector.load %arg5[%c0_16, %c3, %c0_17, %c0_18] : memref<3x4x64x48xbf16, #tpu.memory_space<vmem>>, vector<1x1x64x48xbf16>
    %29 = vector.shape_cast %28 : vector<1x1x64x48xbf16> to vector<64x48xbf16>
    %cst_19 = arith.constant dense<0.000000e+00> : vector<64x48xf32>
    %30 = tpu.matmul %27, %29, %cst_19 {dimension_numbers = #tpu.dot_dimension_numbers<[1], [0], [0], [1], [0, 0, 1, 1], [], []>} : vector<64x64xbf16>, vector<64x48xbf16>, vector<64x48xf32> -> vector<64x48xf32>
    %31 = arith.addf %24, %30 : vector<64x48xf32>
    %c0_20 = arith.constant 0 : index
    %c0_21 = arith.constant 0 : index
    %c0_22 = arith.constant 0 : index
    %c0_23 = arith.constant 0 : index
    %32 = vector.load %arg3[%c0_20, %c0_21, %c0_22, %c0_23] : memref<1x9x9x64xbf16, #tpu.memory_space<vmem>>, vector<1x9x9x64xbf16>
    %33 = vector.shape_cast %32 : vector<1x9x9x64xbf16> to vector<9x9x64xbf16>
    %34 = arith.extf %33 : vector<9x9x64xbf16> to vector<9x9x64xf32>
    %35 = vector.extract_strided_slice %34 {offsets = [0, 0, 0], sizes = [8, 8, 64], strides = [1, 1, 1]} : vector<9x9x64xf32> to vector<8x8x64xf32>
    %36 = vector.shape_cast %35 : vector<8x8x64xf32> to vector<64x64xf32>
    %37 = arith.truncf %36 : vector<64x64xf32> to vector<64x64xbf16>
    %c1_24 = arith.constant 1 : index
    %c0_25 = arith.constant 0 : index
    %c0_26 = arith.constant 0 : index
    %c0_27 = arith.constant 0 : index
    %38 = vector.load %arg5[%c1_24, %c0_25, %c0_26, %c0_27] : memref<3x4x64x48xbf16, #tpu.memory_space<vmem>>, vector<1x1x64x48xbf16>
    %39 = vector.shape_cast %38 : vector<1x1x64x48xbf16> to vector<64x48xbf16>
    %cst_28 = arith.constant dense<0.000000e+00> : vector<64x48xf32>
    %40 = tpu.matmul %37, %39, %cst_28 {dimension_numbers = #tpu.dot_dimension_numbers<[1], [0], [0], [1], [0, 0, 1, 1], [], []>} : vector<64x64xbf16>, vector<64x48xbf16>, vector<64x48xf32> -> vector<64x48xf32>
    %41 = arith.addf %31, %40 : vector<64x48xf32>
    %42 = vector.extract_strided_slice %34 {offsets = [0, 1, 0], sizes = [8, 8, 64], strides = [1, 1, 1]} : vector<9x9x64xf32> to vector<8x8x64xf32>
    %43 = vector.shape_cast %42 : vector<8x8x64xf32> to vector<64x64xf32>
    %44 = arith.truncf %43 : vector<64x64xf32> to vector<64x64xbf16>
    %c1_29 = arith.constant 1 : index
    %c1_30 = arith.constant 1 : index
    %c0_31 = arith.constant 0 : index
    %c0_32 = arith.constant 0 : index
    %45 = vector.load %arg5[%c1_29, %c1_30, %c0_31, %c0_32] : memref<3x4x64x48xbf16, #tpu.memory_space<vmem>>, vector<1x1x64x48xbf16>
    %46 = vector.shape_cast %45 : vector<1x1x64x48xbf16> to vector<64x48xbf16>
    %cst_33 = arith.constant dense<0.000000e+00> : vector<64x48xf32>
    %47 = tpu.matmul %44, %46, %cst_33 {dimension_numbers = #tpu.dot_dimension_numbers<[1], [0], [0], [1], [0, 0, 1, 1], [], []>} : vector<64x64xbf16>, vector<64x48xbf16>, vector<64x48xf32> -> vector<64x48xf32>
    %48 = arith.addf %41, %47 : vector<64x48xf32>
    %49 = vector.extract_strided_slice %34 {offsets = [1, 0, 0], sizes = [8, 8, 64], strides = [1, 1, 1]} : vector<9x9x64xf32> to vector<8x8x64xf32>
    %50 = vector.shape_cast %49 : vector<8x8x64xf32> to vector<64x64xf32>
    %51 = arith.truncf %50 : vector<64x64xf32> to vector<64x64xbf16>
    %c1_34 = arith.constant 1 : index
    %c2_35 = arith.constant 2 : index
    %c0_36 = arith.constant 0 : index
    %c0_37 = arith.constant 0 : index
    %52 = vector.load %arg5[%c1_34, %c2_35, %c0_36, %c0_37] : memref<3x4x64x48xbf16, #tpu.memory_space<vmem>>, vector<1x1x64x48xbf16>
    %53 = vector.shape_cast %52 : vector<1x1x64x48xbf16> to vector<64x48xbf16>
    %cst_38 = arith.constant dense<0.000000e+00> : vector<64x48xf32>
    %54 = tpu.matmul %51, %53, %cst_38 {dimension_numbers = #tpu.dot_dimension_numbers<[1], [0], [0], [1], [0, 0, 1, 1], [], []>} : vector<64x64xbf16>, vector<64x48xbf16>, vector<64x48xf32> -> vector<64x48xf32>
    %55 = arith.addf %48, %54 : vector<64x48xf32>
    %56 = vector.extract_strided_slice %34 {offsets = [1, 1, 0], sizes = [8, 8, 64], strides = [1, 1, 1]} : vector<9x9x64xf32> to vector<8x8x64xf32>
    %57 = vector.shape_cast %56 : vector<8x8x64xf32> to vector<64x64xf32>
    %58 = arith.truncf %57 : vector<64x64xf32> to vector<64x64xbf16>
    %c1_39 = arith.constant 1 : index
    %c3_40 = arith.constant 3 : index
    %c0_41 = arith.constant 0 : index
    %c0_42 = arith.constant 0 : index
    %59 = vector.load %arg5[%c1_39, %c3_40, %c0_41, %c0_42] : memref<3x4x64x48xbf16, #tpu.memory_space<vmem>>, vector<1x1x64x48xbf16>
    %60 = vector.shape_cast %59 : vector<1x1x64x48xbf16> to vector<64x48xbf16>
    %cst_43 = arith.constant dense<0.000000e+00> : vector<64x48xf32>
    %61 = tpu.matmul %58, %60, %cst_43 {dimension_numbers = #tpu.dot_dimension_numbers<[1], [0], [0], [1], [0, 0, 1, 1], [], []>} : vector<64x64xbf16>, vector<64x48xbf16>, vector<64x48xf32> -> vector<64x48xf32>
    %62 = arith.addf %55, %61 : vector<64x48xf32>
    %c0_44 = arith.constant 0 : index
    %c0_45 = arith.constant 0 : index
    %c0_46 = arith.constant 0 : index
    %c0_47 = arith.constant 0 : index
    %63 = vector.load %arg4[%c0_44, %c0_45, %c0_46, %c0_47] : memref<1x9x9x64xbf16, #tpu.memory_space<vmem>>, vector<1x9x9x64xbf16>
    %64 = vector.shape_cast %63 : vector<1x9x9x64xbf16> to vector<9x9x64xbf16>
    %65 = arith.extf %64 : vector<9x9x64xbf16> to vector<9x9x64xf32>
    %66 = vector.extract_strided_slice %65 {offsets = [0, 0, 0], sizes = [8, 8, 64], strides = [1, 1, 1]} : vector<9x9x64xf32> to vector<8x8x64xf32>
    %67 = vector.shape_cast %66 : vector<8x8x64xf32> to vector<64x64xf32>
    %68 = arith.truncf %67 : vector<64x64xf32> to vector<64x64xbf16>
    %c2_48 = arith.constant 2 : index
    %c0_49 = arith.constant 0 : index
    %c0_50 = arith.constant 0 : index
    %c0_51 = arith.constant 0 : index
    %69 = vector.load %arg5[%c2_48, %c0_49, %c0_50, %c0_51] : memref<3x4x64x48xbf16, #tpu.memory_space<vmem>>, vector<1x1x64x48xbf16>
    %70 = vector.shape_cast %69 : vector<1x1x64x48xbf16> to vector<64x48xbf16>
    %cst_52 = arith.constant dense<0.000000e+00> : vector<64x48xf32>
    %71 = tpu.matmul %68, %70, %cst_52 {dimension_numbers = #tpu.dot_dimension_numbers<[1], [0], [0], [1], [0, 0, 1, 1], [], []>} : vector<64x64xbf16>, vector<64x48xbf16>, vector<64x48xf32> -> vector<64x48xf32>
    %72 = arith.addf %62, %71 : vector<64x48xf32>
    %73 = vector.extract_strided_slice %65 {offsets = [0, 1, 0], sizes = [8, 8, 64], strides = [1, 1, 1]} : vector<9x9x64xf32> to vector<8x8x64xf32>
    %74 = vector.shape_cast %73 : vector<8x8x64xf32> to vector<64x64xf32>
    %75 = arith.truncf %74 : vector<64x64xf32> to vector<64x64xbf16>
    %c2_53 = arith.constant 2 : index
    %c1_54 = arith.constant 1 : index
    %c0_55 = arith.constant 0 : index
    %c0_56 = arith.constant 0 : index
    %76 = vector.load %arg5[%c2_53, %c1_54, %c0_55, %c0_56] : memref<3x4x64x48xbf16, #tpu.memory_space<vmem>>, vector<1x1x64x48xbf16>
    %77 = vector.shape_cast %76 : vector<1x1x64x48xbf16> to vector<64x48xbf16>
    %cst_57 = arith.constant dense<0.000000e+00> : vector<64x48xf32>
    %78 = tpu.matmul %75, %77, %cst_57 {dimension_numbers = #tpu.dot_dimension_numbers<[1], [0], [0], [1], [0, 0, 1, 1], [], []>} : vector<64x64xbf16>, vector<64x48xbf16>, vector<64x48xf32> -> vector<64x48xf32>
    %79 = arith.addf %72, %78 : vector<64x48xf32>
    %80 = vector.extract_strided_slice %65 {offsets = [1, 0, 0], sizes = [8, 8, 64], strides = [1, 1, 1]} : vector<9x9x64xf32> to vector<8x8x64xf32>
    %81 = vector.shape_cast %80 : vector<8x8x64xf32> to vector<64x64xf32>
    %82 = arith.truncf %81 : vector<64x64xf32> to vector<64x64xbf16>
    %c2_58 = arith.constant 2 : index
    %c2_59 = arith.constant 2 : index
    %c0_60 = arith.constant 0 : index
    %c0_61 = arith.constant 0 : index
    %83 = vector.load %arg5[%c2_58, %c2_59, %c0_60, %c0_61] : memref<3x4x64x48xbf16, #tpu.memory_space<vmem>>, vector<1x1x64x48xbf16>
    %84 = vector.shape_cast %83 : vector<1x1x64x48xbf16> to vector<64x48xbf16>
    %cst_62 = arith.constant dense<0.000000e+00> : vector<64x48xf32>
    %85 = tpu.matmul %82, %84, %cst_62 {dimension_numbers = #tpu.dot_dimension_numbers<[1], [0], [0], [1], [0, 0, 1, 1], [], []>} : vector<64x64xbf16>, vector<64x48xbf16>, vector<64x48xf32> -> vector<64x48xf32>
    %86 = arith.addf %79, %85 : vector<64x48xf32>
    %87 = vector.extract_strided_slice %65 {offsets = [1, 1, 0], sizes = [8, 8, 64], strides = [1, 1, 1]} : vector<9x9x64xf32> to vector<8x8x64xf32>
    %88 = vector.shape_cast %87 : vector<8x8x64xf32> to vector<64x64xf32>
    %89 = arith.truncf %88 : vector<64x64xf32> to vector<64x64xbf16>
    %c2_63 = arith.constant 2 : index
    %c3_64 = arith.constant 3 : index
    %c0_65 = arith.constant 0 : index
    %c0_66 = arith.constant 0 : index
    %90 = vector.load %arg5[%c2_63, %c3_64, %c0_65, %c0_66] : memref<3x4x64x48xbf16, #tpu.memory_space<vmem>>, vector<1x1x64x48xbf16>
    %91 = vector.shape_cast %90 : vector<1x1x64x48xbf16> to vector<64x48xbf16>
    %cst_67 = arith.constant dense<0.000000e+00> : vector<64x48xf32>
    %92 = tpu.matmul %89, %91, %cst_67 {dimension_numbers = #tpu.dot_dimension_numbers<[1], [0], [0], [1], [0, 0, 1, 1], [], []>} : vector<64x64xbf16>, vector<64x48xbf16>, vector<64x48xf32> -> vector<64x48xf32>
    %93 = arith.addf %86, %92 : vector<64x48xf32>
    %c0_68 = arith.constant 0 : index
    %c0_69 = arith.constant 0 : index
    %94 = vector.load %arg6[%c0_68, %c0_69] : memref<1x48xf32, #tpu.memory_space<vmem>>, vector<1x48xf32>
    %95 = vector.broadcast %94 : vector<1x48xf32> to vector<64x48xf32>
    %96 = arith.addf %93, %95 : vector<64x48xf32>
    %97 = vector.extract_strided_slice %96 {offsets = [0, 0], sizes = [64, 16], strides = [1, 1]} : vector<64x48xf32> to vector<64x16xf32>
    %98 = vector.shape_cast %97 : vector<64x16xf32> to vector<8x8x16xf32>
    %99 = arith.truncf %98 : vector<8x8x16xf32> to vector<8x8x16xbf16>
    %c0_70 = arith.constant 0 : index
    %c0_71 = arith.constant 0 : index
    %c0_72 = arith.constant 0 : index
    %c0_73 = arith.constant 0 : index
    %100 = vector.load %arg7[%c0_70, %c0_71, %c0_72, %c0_73] : memref<1x8x8x16xbf16, #tpu.memory_space<vmem>>, vector<1x8x8x16xbf16>
    %101 = vector.shape_cast %100 : vector<1x8x8x16xbf16> to vector<8x8x16xbf16>
    %102 = vector.shape_cast %99 : vector<8x8x16xbf16> to vector<1x8x8x16xbf16>
    tpu.vector_store %arg7[%c0_70, %c0_71, %c0_72, %c0_73], %102 {strides = array<i32>} : memref<1x8x8x16xbf16, #tpu.memory_space<vmem>>, vector<1x8x8x16xbf16>,
    %103 = vector.extract_strided_slice %96 {offsets = [0, 16], sizes = [64, 32], strides = [1, 1]} : vector<64x48xf32> to vector<64x32xf32>
    %c0_74 = arith.constant 0 : index
    %c0_75 = arith.constant 0 : index
    %c0_76 = arith.constant 0 : index
    %104 = vector.load %arg8[%c0_74, %c0_75, %c0_76] : memref<1x64x32xf32, #tpu.memory_space<vmem>>, vector<1x64x32xf32>
    %105 = vector.shape_cast %104 : vector<1x64x32xf32> to vector<64x32xf32>
    %106 = vector.shape_cast %103 : vector<64x32xf32> to vector<1x64x32xf32>
    tpu.vector_store %arg8[%c0_74, %c0_75, %c0_76], %106 {strides = array<i32>} : memref<1x64x32xf32, #tpu.memory_space<vmem>>, vector<1x64x32xf32>,
    %cst_77 = arith.constant dense<0.000000e+00> : vector<48xf32>
    %107 = vector.multi_reduction <add>, %96, %cst_77 [0] : vector<64x48xf32> to vector<48xf32>
    %108 = vector.shape_cast %107 : vector<48xf32> to vector<1x48xf32>
    %109 = arith.mulf %96, %96 : vector<64x48xf32>
    %cst_78 = arith.constant dense<0.000000e+00> : vector<48xf32>
    %110 = vector.multi_reduction <add>, %109, %cst_78 [0] : vector<64x48xf32> to vector<48xf32>
    %111 = vector.shape_cast %110 : vector<48xf32> to vector<1x48xf32>
    %112 = tpu.concatenate %108, %111 in 0 : vector<1x48xf32>, vector<1x48xf32> -> vector<2x48xf32>
    %c0_79 = arith.constant 0 : index
    %c0_80 = arith.constant 0 : index
    %c0_81 = arith.constant 0 : index
    %113 = vector.load %arg9[%c0_79, %c0_80, %c0_81] : memref<1x2x48xf32, #tpu.memory_space<vmem>>, vector<1x2x48xf32>
    %114 = vector.shape_cast %113 : vector<1x2x48xf32> to vector<2x48xf32>
    %115 = vector.shape_cast %112 : vector<2x48xf32> to vector<1x2x48xf32>
    tpu.vector_store %arg9[%c0_79, %c0_80, %c0_81], %115 {strides = array<i32>} : memref<1x2x48xf32, #tpu.memory_space<vmem>>, vector<1x2x48xf32>,
    return
  }
  func.func @transform_0(%arg0: i32, %arg1: i32) -> (i32, i32, i32, i32) {
    %c6_i32 = arith.constant 6 : i32
    %0 = arith.muli %arg0, %c6_i32 : i32
    %1 = arith.addi %0, %arg1 : i32
    %c0_i32 = arith.constant 0 : i32
    %2 = arith.addi %1, %c0_i32 : i32
    %c0_i32_0 = arith.constant 0 : i32
    %c0_i32_1 = arith.constant 0 : i32
    %c0_i32_2 = arith.constant 0 : i32
    %c0_i32_3 = arith.constant 0 : i32
    return %2, %c0_i32_0, %c0_i32_1, %c0_i32_2 : i32, i32, i32, i32
  }
  func.func @transform_1(%arg0: i32, %arg1: i32) -> (i32, i32, i32, i32) {
    %c6_i32 = arith.constant 6 : i32
    %0 = arith.muli %arg0, %c6_i32 : i32
    %1 = arith.addi %0, %arg1 : i32
    %c1_i32 = arith.constant 1 : i32
    %2 = arith.addi %1, %c1_i32 : i32
    %c0_i32 = arith.constant 0 : i32
    %c0_i32_0 = arith.constant 0 : i32
    %c0_i32_1 = arith.constant 0 : i32
    %c0_i32_2 = arith.constant 0 : i32
    return %2, %c0_i32, %c0_i32_0, %c0_i32_1 : i32, i32, i32, i32
  }
  func.func @transform_2(%arg0: i32, %arg1: i32) -> (i32, i32, i32, i32) {
    %c6_i32 = arith.constant 6 : i32
    %0 = arith.muli %arg0, %c6_i32 : i32
    %1 = arith.addi %0, %arg1 : i32
    %c2_i32 = arith.constant 2 : i32
    %2 = arith.addi %1, %c2_i32 : i32
    %c0_i32 = arith.constant 0 : i32
    %c0_i32_0 = arith.constant 0 : i32
    %c0_i32_1 = arith.constant 0 : i32
    %c0_i32_2 = arith.constant 0 : i32
    return %2, %c0_i32, %c0_i32_0, %c0_i32_1 : i32, i32, i32, i32
  }
  func.func @transform_3(%arg0: i32, %arg1: i32) -> (i32, i32, i32, i32) {
    %c0_i32 = arith.constant 0 : i32
    %c0_i32_0 = arith.constant 0 : i32
    %c0_i32_1 = arith.constant 0 : i32
    %c0_i32_2 = arith.constant 0 : i32
    %c0_i32_3 = arith.constant 0 : i32
    return %c0_i32, %c0_i32_0, %c0_i32_1, %c0_i32_2 : i32, i32, i32, i32
  }
  func.func @transform_4(%arg0: i32, %arg1: i32) -> (i32, i32) {
    %c0_i32 = arith.constant 0 : i32
    %c0_i32_0 = arith.constant 0 : i32
    %c0_i32_1 = arith.constant 0 : i32
    return %c0_i32, %c0_i32_0 : i32, i32
  }
  func.func @transform_5(%arg0: i32, %arg1: i32) -> (i32, i32, i32, i32) {
    %c4_i32 = arith.constant 4 : i32
    %0 = arith.muli %arg0, %c4_i32 : i32
    %1 = arith.addi %0, %arg1 : i32
    %c0_i32 = arith.constant 0 : i32
    %c0_i32_0 = arith.constant 0 : i32
    %c0_i32_1 = arith.constant 0 : i32
    %c0_i32_2 = arith.constant 0 : i32
    return %1, %c0_i32, %c0_i32_0, %c0_i32_1 : i32, i32, i32, i32
  }
  func.func @transform_6(%arg0: i32, %arg1: i32) -> (i32, i32, i32) {
    %c4_i32 = arith.constant 4 : i32
    %0 = arith.muli %arg0, %c4_i32 : i32
    %1 = arith.addi %0, %arg1 : i32
    %c0_i32 = arith.constant 0 : i32
    %c0_i32_0 = arith.constant 0 : i32
    %c0_i32_1 = arith.constant 0 : i32
    return %1, %c0_i32, %c0_i32_0 : i32, i32, i32
  }
  func.func @transform_7(%arg0: i32, %arg1: i32) -> (i32, i32, i32) {
    %c4_i32 = arith.constant 4 : i32
    %0 = arith.muli %arg0, %c4_i32 : i32
    %1 = arith.addi %0, %arg1 : i32
    %c0_i32 = arith.constant 0 : i32
    %c0_i32_0 = arith.constant 0 : i32
    %c0_i32_1 = arith.constant 0 : i32
    return %1, %c0_i32, %c0_i32_0 : i32, i32, i32
  }
}

module attributes {stable_mosaic.version = 11 : i64} {
  func.func @kernel(%arg0: i32, %arg1: i32, %arg2: memref<1x8x8x16xbf16, #tpu.memory_space<vmem>>, %arg3: memref<1x8x8x16xbf16, #tpu.memory_space<vmem>>, %arg4: memref<1x8x8x16xbf16, #tpu.memory_space<vmem>>, %arg5: memref<3x9x16x32xbf16, #tpu.memory_space<vmem>>, %arg6: memref<1x32xf32, #tpu.memory_space<vmem>>, %arg7: memref<1x16xf32, #tpu.memory_space<vmem>>, %arg8: memref<1x16xf32, #tpu.memory_space<vmem>>, %arg9: memref<1x64x32xf32, #tpu.memory_space<vmem>>, %arg10: memref<1x2x32xf32, #tpu.memory_space<vmem>>, %arg11: memref<10x10x16xf32, #tpu.memory_space<vmem>>) attributes {dimension_semantics = [#tpu.dimension_semantics<parallel>, #tpu.dimension_semantics<parallel>], iteration_bounds = array<i64: 2, 4>, scalar_prefetch = 0 : i64, scratch_operands = 1 : i64, tpu.core_type = #tpu.core_type<tc>, window_params = [{transform_indices = @transform_0, window_bounds = array<i64: 1, 8, 8, 16>}, {transform_indices = @transform_1, window_bounds = array<i64: 1, 8, 8, 16>}, {transform_indices = @transform_2, window_bounds = array<i64: 1, 8, 8, 16>}, {pipeline_mode = #tpu.pipeline_mode<synchronous>, transform_indices = @transform_3, window_bounds = array<i64: 3, 9, 16, 32>}, {pipeline_mode = #tpu.pipeline_mode<synchronous>, transform_indices = @transform_4, window_bounds = array<i64: 1, 32>}, {pipeline_mode = #tpu.pipeline_mode<synchronous>, transform_indices = @transform_5, window_bounds = array<i64: 1, 16>}, {pipeline_mode = #tpu.pipeline_mode<synchronous>, transform_indices = @transform_6, window_bounds = array<i64: 1, 16>}, {transform_indices = @transform_7, window_bounds = array<i64: 1, 64, 32>}, {transform_indices = @transform_8, window_bounds = array<i64: 1, 2, 32>}]} {
    %cst = arith.constant 0.000000e+00 : f32
    %0 = vector.broadcast %cst : f32 to vector<10x10x16xf32>
    %c0 = arith.constant 0 : index
    %c0_0 = arith.constant 0 : index
    %c0_1 = arith.constant 0 : index
    %1 = vector.load %arg11[%c0, %c0_0, %c0_1] : memref<10x10x16xf32, #tpu.memory_space<vmem>>, vector<10x10x16xf32>
    tpu.vector_store %arg11[%c0, %c0_0, %c0_1], %0 {strides = array<i32>} : memref<10x10x16xf32, #tpu.memory_space<vmem>>, vector<10x10x16xf32>,
    %c0_2 = arith.constant 0 : index
    %c0_3 = arith.constant 0 : index
    %2 = vector.load %arg7[%c0_2, %c0_3] : memref<1x16xf32, #tpu.memory_space<vmem>>, vector<1x16xf32>
    %3 = vector.shape_cast %2 : vector<1x16xf32> to vector<1x1x16xf32>
    %c0_4 = arith.constant 0 : index
    %c0_5 = arith.constant 0 : index
    %4 = vector.load %arg8[%c0_4, %c0_5] : memref<1x16xf32, #tpu.memory_space<vmem>>, vector<1x16xf32>
    %5 = vector.shape_cast %4 : vector<1x16xf32> to vector<1x1x16xf32>
    %cst_6 = arith.constant 0.000000e+00 : f32
    %6 = vector.broadcast %cst_6 : f32 to vector<64x32xf32>
    %c-1_i32 = arith.constant -1 : i32
    %7 = arith.addi %arg1, %c-1_i32 : i32
    %c0_i32 = arith.constant 0 : i32
    %8 = arith.cmpi sge, %7, %c0_i32 : i32
    %c3_i32 = arith.constant 3 : i32
    %9 = arith.cmpi sle, %7, %c3_i32 : i32
    %10 = arith.andi %8, %9 : i1
    %c0_7 = arith.constant 0 : index
    %c0_8 = arith.constant 0 : index
    %c0_9 = arith.constant 0 : index
    %c0_10 = arith.constant 0 : index
    %11 = vector.load %arg2[%c0_7, %c0_8, %c0_9, %c0_10] : memref<1x8x8x16xbf16, #tpu.memory_space<vmem>>, vector<1x8x8x16xbf16>
    %12 = vector.shape_cast %11 : vector<1x8x8x16xbf16> to vector<8x8x16xbf16>
    %13 = arith.extf %12 : vector<8x8x16xbf16> to vector<8x8x16xf32>
    %14 = vector.broadcast %3 : vector<1x1x16xf32> to vector<8x8x16xf32>
    %15 = arith.mulf %13, %14 : vector<8x8x16xf32>
    %16 = vector.broadcast %5 : vector<1x1x16xf32> to vector<8x8x16xf32>
    %17 = arith.addf %15, %16 : vector<8x8x16xf32>
    %cst_11 = arith.constant 0.000000e+00 : f32
    %18 = vector.broadcast %cst_11 : f32 to vector<8x8x16xf32>
    %19 = arith.cmpf ogt, %17, %18 : vector<8x8x16xf32>
    %cst_12 = arith.constant 2.000000e-01 : f32
    %20 = vector.broadcast %cst_12 : f32 to vector<8x8x16xf32>
    %21 = arith.mulf %20, %17 : vector<8x8x16xf32>
    %22 = arith.select %19, %17, %21 : vector<8x8x16xi1>, vector<8x8x16xf32>
    %cst_13 = arith.constant 1.000000e+00 : f32
    %cst_14 = arith.constant 0.000000e+00 : f32
    %23 = arith.select %10, %cst_13, %cst_14 : f32
    %24 = vector.broadcast %23 : f32 to vector<8x8x16xf32>
    %25 = arith.mulf %22, %24 : vector<8x8x16xf32>
    %c1 = arith.constant 1 : index
    %c1_15 = arith.constant 1 : index
    %c0_16 = arith.constant 0 : index
    %26 = vector.load %arg11[%c1, %c1_15, %c0_16] : memref<10x10x16xf32, #tpu.memory_space<vmem>>, vector<8x8x16xf32>
    tpu.vector_store %arg11[%c1, %c1_15, %c0_16], %25 {strides = array<i32>} : memref<10x10x16xf32, #tpu.memory_space<vmem>>, vector<8x8x16xf32>,
    %c0_17 = arith.constant 0 : index
    %c0_18 = arith.constant 0 : index
    %c0_19 = arith.constant 0 : index
    %27 = vector.load %arg11[%c0_17, %c0_18, %c0_19] : memref<10x10x16xf32, #tpu.memory_space<vmem>>, vector<8x8x16xf32>
    %28 = vector.shape_cast %27 : vector<8x8x16xf32> to vector<64x16xf32>
    %29 = arith.truncf %28 : vector<64x16xf32> to vector<64x16xbf16>
    %c0_20 = arith.constant 0 : index
    %c0_21 = arith.constant 0 : index
    %c0_22 = arith.constant 0 : index
    %c0_23 = arith.constant 0 : index
    %30 = vector.load %arg5[%c0_20, %c0_21, %c0_22, %c0_23] : memref<3x9x16x32xbf16, #tpu.memory_space<vmem>>, vector<1x1x16x32xbf16>
    %31 = vector.shape_cast %30 : vector<1x1x16x32xbf16> to vector<16x32xbf16>
    %cst_24 = arith.constant dense<0.000000e+00> : vector<64x32xf32>
    %32 = tpu.matmul %29, %31, %cst_24 {dimension_numbers = #tpu.dot_dimension_numbers<[1], [0], [0], [1], [0, 0, 1, 1], [], []>} : vector<64x16xbf16>, vector<16x32xbf16>, vector<64x32xf32> -> vector<64x32xf32>
    %33 = arith.addf %6, %32 : vector<64x32xf32>
    %c0_25 = arith.constant 0 : index
    %c1_26 = arith.constant 1 : index
    %c0_27 = arith.constant 0 : index
    %34 = vector.load %arg11[%c0_25, %c1_26, %c0_27] : memref<10x10x16xf32, #tpu.memory_space<vmem>>, vector<8x8x16xf32>
    %35 = vector.shape_cast %34 : vector<8x8x16xf32> to vector<64x16xf32>
    %36 = arith.truncf %35 : vector<64x16xf32> to vector<64x16xbf16>
    %c0_28 = arith.constant 0 : index
    %c1_29 = arith.constant 1 : index
    %c0_30 = arith.constant 0 : index
    %c0_31 = arith.constant 0 : index
    %37 = vector.load %arg5[%c0_28, %c1_29, %c0_30, %c0_31] : memref<3x9x16x32xbf16, #tpu.memory_space<vmem>>, vector<1x1x16x32xbf16>
    %38 = vector.shape_cast %37 : vector<1x1x16x32xbf16> to vector<16x32xbf16>
    %cst_32 = arith.constant dense<0.000000e+00> : vector<64x32xf32>
    %39 = tpu.matmul %36, %38, %cst_32 {dimension_numbers = #tpu.dot_dimension_numbers<[1], [0], [0], [1], [0, 0, 1, 1], [], []>} : vector<64x16xbf16>, vector<16x32xbf16>, vector<64x32xf32> -> vector<64x32xf32>
    %40 = arith.addf %33, %39 : vector<64x32xf32>
    %c0_33 = arith.constant 0 : index
    %c2 = arith.constant 2 : index
    %c0_34 = arith.constant 0 : index
    %41 = vector.load %arg11[%c0_33, %c2, %c0_34] : memref<10x10x16xf32, #tpu.memory_space<vmem>>, vector<8x8x16xf32>
    %42 = vector.shape_cast %41 : vector<8x8x16xf32> to vector<64x16xf32>
    %43 = arith.truncf %42 : vector<64x16xf32> to vector<64x16xbf16>
    %c0_35 = arith.constant 0 : index
    %c2_36 = arith.constant 2 : index
    %c0_37 = arith.constant 0 : index
    %c0_38 = arith.constant 0 : index
    %44 = vector.load %arg5[%c0_35, %c2_36, %c0_37, %c0_38] : memref<3x9x16x32xbf16, #tpu.memory_space<vmem>>, vector<1x1x16x32xbf16>
    %45 = vector.shape_cast %44 : vector<1x1x16x32xbf16> to vector<16x32xbf16>
    %cst_39 = arith.constant dense<0.000000e+00> : vector<64x32xf32>
    %46 = tpu.matmul %43, %45, %cst_39 {dimension_numbers = #tpu.dot_dimension_numbers<[1], [0], [0], [1], [0, 0, 1, 1], [], []>} : vector<64x16xbf16>, vector<16x32xbf16>, vector<64x32xf32> -> vector<64x32xf32>
    %47 = arith.addf %40, %46 : vector<64x32xf32>
    %c1_40 = arith.constant 1 : index
    %c0_41 = arith.constant 0 : index
    %c0_42 = arith.constant 0 : index
    %48 = vector.load %arg11[%c1_40, %c0_41, %c0_42] : memref<10x10x16xf32, #tpu.memory_space<vmem>>, vector<8x8x16xf32>
    %49 = vector.shape_cast %48 : vector<8x8x16xf32> to vector<64x16xf32>
    %50 = arith.truncf %49 : vector<64x16xf32> to vector<64x16xbf16>
    %c0_43 = arith.constant 0 : index
    %c3 = arith.constant 3 : index
    %c0_44 = arith.constant 0 : index
    %c0_45 = arith.constant 0 : index
    %51 = vector.load %arg5[%c0_43, %c3, %c0_44, %c0_45] : memref<3x9x16x32xbf16, #tpu.memory_space<vmem>>, vector<1x1x16x32xbf16>
    %52 = vector.shape_cast %51 : vector<1x1x16x32xbf16> to vector<16x32xbf16>
    %cst_46 = arith.constant dense<0.000000e+00> : vector<64x32xf32>
    %53 = tpu.matmul %50, %52, %cst_46 {dimension_numbers = #tpu.dot_dimension_numbers<[1], [0], [0], [1], [0, 0, 1, 1], [], []>} : vector<64x16xbf16>, vector<16x32xbf16>, vector<64x32xf32> -> vector<64x32xf32>
    %54 = arith.addf %47, %53 : vector<64x32xf32>
    %c1_47 = arith.constant 1 : index
    %c1_48 = arith.constant 1 : index
    %c0_49 = arith.constant 0 : index
    %55 = vector.load %arg11[%c1_47, %c1_48, %c0_49] : memref<10x10x16xf32, #tpu.memory_space<vmem>>, vector<8x8x16xf32>
    %56 = vector.shape_cast %55 : vector<8x8x16xf32> to vector<64x16xf32>
    %57 = arith.truncf %56 : vector<64x16xf32> to vector<64x16xbf16>
    %c0_50 = arith.constant 0 : index
    %c4 = arith.constant 4 : index
    %c0_51 = arith.constant 0 : index
    %c0_52 = arith.constant 0 : index
    %58 = vector.load %arg5[%c0_50, %c4, %c0_51, %c0_52] : memref<3x9x16x32xbf16, #tpu.memory_space<vmem>>, vector<1x1x16x32xbf16>
    %59 = vector.shape_cast %58 : vector<1x1x16x32xbf16> to vector<16x32xbf16>
    %cst_53 = arith.constant dense<0.000000e+00> : vector<64x32xf32>
    %60 = tpu.matmul %57, %59, %cst_53 {dimension_numbers = #tpu.dot_dimension_numbers<[1], [0], [0], [1], [0, 0, 1, 1], [], []>} : vector<64x16xbf16>, vector<16x32xbf16>, vector<64x32xf32> -> vector<64x32xf32>
    %61 = arith.addf %54, %60 : vector<64x32xf32>
    %c1_54 = arith.constant 1 : index
    %c2_55 = arith.constant 2 : index
    %c0_56 = arith.constant 0 : index
    %62 = vector.load %arg11[%c1_54, %c2_55, %c0_56] : memref<10x10x16xf32, #tpu.memory_space<vmem>>, vector<8x8x16xf32>
    %63 = vector.shape_cast %62 : vector<8x8x16xf32> to vector<64x16xf32>
    %64 = arith.truncf %63 : vector<64x16xf32> to vector<64x16xbf16>
    %c0_57 = arith.constant 0 : index
    %c5 = arith.constant 5 : index
    %c0_58 = arith.constant 0 : index
    %c0_59 = arith.constant 0 : index
    %65 = vector.load %arg5[%c0_57, %c5, %c0_58, %c0_59] : memref<3x9x16x32xbf16, #tpu.memory_space<vmem>>, vector<1x1x16x32xbf16>
    %66 = vector.shape_cast %65 : vector<1x1x16x32xbf16> to vector<16x32xbf16>
    %cst_60 = arith.constant dense<0.000000e+00> : vector<64x32xf32>
    %67 = tpu.matmul %64, %66, %cst_60 {dimension_numbers = #tpu.dot_dimension_numbers<[1], [0], [0], [1], [0, 0, 1, 1], [], []>} : vector<64x16xbf16>, vector<16x32xbf16>, vector<64x32xf32> -> vector<64x32xf32>
    %68 = arith.addf %61, %67 : vector<64x32xf32>
    %c2_61 = arith.constant 2 : index
    %c0_62 = arith.constant 0 : index
    %c0_63 = arith.constant 0 : index
    %69 = vector.load %arg11[%c2_61, %c0_62, %c0_63] : memref<10x10x16xf32, #tpu.memory_space<vmem>>, vector<8x8x16xf32>
    %70 = vector.shape_cast %69 : vector<8x8x16xf32> to vector<64x16xf32>
    %71 = arith.truncf %70 : vector<64x16xf32> to vector<64x16xbf16>
    %c0_64 = arith.constant 0 : index
    %c6 = arith.constant 6 : index
    %c0_65 = arith.constant 0 : index
    %c0_66 = arith.constant 0 : index
    %72 = vector.load %arg5[%c0_64, %c6, %c0_65, %c0_66] : memref<3x9x16x32xbf16, #tpu.memory_space<vmem>>, vector<1x1x16x32xbf16>
    %73 = vector.shape_cast %72 : vector<1x1x16x32xbf16> to vector<16x32xbf16>
    %cst_67 = arith.constant dense<0.000000e+00> : vector<64x32xf32>
    %74 = tpu.matmul %71, %73, %cst_67 {dimension_numbers = #tpu.dot_dimension_numbers<[1], [0], [0], [1], [0, 0, 1, 1], [], []>} : vector<64x16xbf16>, vector<16x32xbf16>, vector<64x32xf32> -> vector<64x32xf32>
    %75 = arith.addf %68, %74 : vector<64x32xf32>
    %c2_68 = arith.constant 2 : index
    %c1_69 = arith.constant 1 : index
    %c0_70 = arith.constant 0 : index
    %76 = vector.load %arg11[%c2_68, %c1_69, %c0_70] : memref<10x10x16xf32, #tpu.memory_space<vmem>>, vector<8x8x16xf32>
    %77 = vector.shape_cast %76 : vector<8x8x16xf32> to vector<64x16xf32>
    %78 = arith.truncf %77 : vector<64x16xf32> to vector<64x16xbf16>
    %c0_71 = arith.constant 0 : index
    %c7 = arith.constant 7 : index
    %c0_72 = arith.constant 0 : index
    %c0_73 = arith.constant 0 : index
    %79 = vector.load %arg5[%c0_71, %c7, %c0_72, %c0_73] : memref<3x9x16x32xbf16, #tpu.memory_space<vmem>>, vector<1x1x16x32xbf16>
    %80 = vector.shape_cast %79 : vector<1x1x16x32xbf16> to vector<16x32xbf16>
    %cst_74 = arith.constant dense<0.000000e+00> : vector<64x32xf32>
    %81 = tpu.matmul %78, %80, %cst_74 {dimension_numbers = #tpu.dot_dimension_numbers<[1], [0], [0], [1], [0, 0, 1, 1], [], []>} : vector<64x16xbf16>, vector<16x32xbf16>, vector<64x32xf32> -> vector<64x32xf32>
    %82 = arith.addf %75, %81 : vector<64x32xf32>
    %c2_75 = arith.constant 2 : index
    %c2_76 = arith.constant 2 : index
    %c0_77 = arith.constant 0 : index
    %83 = vector.load %arg11[%c2_75, %c2_76, %c0_77] : memref<10x10x16xf32, #tpu.memory_space<vmem>>, vector<8x8x16xf32>
    %84 = vector.shape_cast %83 : vector<8x8x16xf32> to vector<64x16xf32>
    %85 = arith.truncf %84 : vector<64x16xf32> to vector<64x16xbf16>
    %c0_78 = arith.constant 0 : index
    %c8 = arith.constant 8 : index
    %c0_79 = arith.constant 0 : index
    %c0_80 = arith.constant 0 : index
    %86 = vector.load %arg5[%c0_78, %c8, %c0_79, %c0_80] : memref<3x9x16x32xbf16, #tpu.memory_space<vmem>>, vector<1x1x16x32xbf16>
    %87 = vector.shape_cast %86 : vector<1x1x16x32xbf16> to vector<16x32xbf16>
    %cst_81 = arith.constant dense<0.000000e+00> : vector<64x32xf32>
    %88 = tpu.matmul %85, %87, %cst_81 {dimension_numbers = #tpu.dot_dimension_numbers<[1], [0], [0], [1], [0, 0, 1, 1], [], []>} : vector<64x16xbf16>, vector<16x32xbf16>, vector<64x32xf32> -> vector<64x32xf32>
    %89 = arith.addf %82, %88 : vector<64x32xf32>
    %c0_i32_82 = arith.constant 0 : i32
    %90 = arith.addi %arg1, %c0_i32_82 : i32
    %c0_i32_83 = arith.constant 0 : i32
    %91 = arith.cmpi sge, %90, %c0_i32_83 : i32
    %c3_i32_84 = arith.constant 3 : i32
    %92 = arith.cmpi sle, %90, %c3_i32_84 : i32
    %93 = arith.andi %91, %92 : i1
    %c0_85 = arith.constant 0 : index
    %c0_86 = arith.constant 0 : index
    %c0_87 = arith.constant 0 : index
    %c0_88 = arith.constant 0 : index
    %94 = vector.load %arg3[%c0_85, %c0_86, %c0_87, %c0_88] : memref<1x8x8x16xbf16, #tpu.memory_space<vmem>>, vector<1x8x8x16xbf16>
    %95 = vector.shape_cast %94 : vector<1x8x8x16xbf16> to vector<8x8x16xbf16>
    %96 = arith.extf %95 : vector<8x8x16xbf16> to vector<8x8x16xf32>
    %97 = vector.broadcast %3 : vector<1x1x16xf32> to vector<8x8x16xf32>
    %98 = arith.mulf %96, %97 : vector<8x8x16xf32>
    %99 = vector.broadcast %5 : vector<1x1x16xf32> to vector<8x8x16xf32>
    %100 = arith.addf %98, %99 : vector<8x8x16xf32>
    %cst_89 = arith.constant 0.000000e+00 : f32
    %101 = vector.broadcast %cst_89 : f32 to vector<8x8x16xf32>
    %102 = arith.cmpf ogt, %100, %101 : vector<8x8x16xf32>
    %cst_90 = arith.constant 2.000000e-01 : f32
    %103 = vector.broadcast %cst_90 : f32 to vector<8x8x16xf32>
    %104 = arith.mulf %103, %100 : vector<8x8x16xf32>
    %105 = arith.select %102, %100, %104 : vector<8x8x16xi1>, vector<8x8x16xf32>
    %cst_91 = arith.constant 1.000000e+00 : f32
    %cst_92 = arith.constant 0.000000e+00 : f32
    %106 = arith.select %93, %cst_91, %cst_92 : f32
    %107 = vector.broadcast %106 : f32 to vector<8x8x16xf32>
    %108 = arith.mulf %105, %107 : vector<8x8x16xf32>
    %c1_93 = arith.constant 1 : index
    %c1_94 = arith.constant 1 : index
    %c0_95 = arith.constant 0 : index
    %109 = vector.load %arg11[%c1_93, %c1_94, %c0_95] : memref<10x10x16xf32, #tpu.memory_space<vmem>>, vector<8x8x16xf32>
    tpu.vector_store %arg11[%c1_93, %c1_94, %c0_95], %108 {strides = array<i32>} : memref<10x10x16xf32, #tpu.memory_space<vmem>>, vector<8x8x16xf32>,
    %c0_96 = arith.constant 0 : index
    %c0_97 = arith.constant 0 : index
    %c0_98 = arith.constant 0 : index
    %110 = vector.load %arg11[%c0_96, %c0_97, %c0_98] : memref<10x10x16xf32, #tpu.memory_space<vmem>>, vector<8x8x16xf32>
    %111 = vector.shape_cast %110 : vector<8x8x16xf32> to vector<64x16xf32>
    %112 = arith.truncf %111 : vector<64x16xf32> to vector<64x16xbf16>
    %c1_99 = arith.constant 1 : index
    %c0_100 = arith.constant 0 : index
    %c0_101 = arith.constant 0 : index
    %c0_102 = arith.constant 0 : index
    %113 = vector.load %arg5[%c1_99, %c0_100, %c0_101, %c0_102] : memref<3x9x16x32xbf16, #tpu.memory_space<vmem>>, vector<1x1x16x32xbf16>
    %114 = vector.shape_cast %113 : vector<1x1x16x32xbf16> to vector<16x32xbf16>
    %cst_103 = arith.constant dense<0.000000e+00> : vector<64x32xf32>
    %115 = tpu.matmul %112, %114, %cst_103 {dimension_numbers = #tpu.dot_dimension_numbers<[1], [0], [0], [1], [0, 0, 1, 1], [], []>} : vector<64x16xbf16>, vector<16x32xbf16>, vector<64x32xf32> -> vector<64x32xf32>
    %116 = arith.addf %89, %115 : vector<64x32xf32>
    %c0_104 = arith.constant 0 : index
    %c1_105 = arith.constant 1 : index
    %c0_106 = arith.constant 0 : index
    %117 = vector.load %arg11[%c0_104, %c1_105, %c0_106] : memref<10x10x16xf32, #tpu.memory_space<vmem>>, vector<8x8x16xf32>
    %118 = vector.shape_cast %117 : vector<8x8x16xf32> to vector<64x16xf32>
    %119 = arith.truncf %118 : vector<64x16xf32> to vector<64x16xbf16>
    %c1_107 = arith.constant 1 : index
    %c1_108 = arith.constant 1 : index
    %c0_109 = arith.constant 0 : index
    %c0_110 = arith.constant 0 : index
    %120 = vector.load %arg5[%c1_107, %c1_108, %c0_109, %c0_110] : memref<3x9x16x32xbf16, #tpu.memory_space<vmem>>, vector<1x1x16x32xbf16>
    %121 = vector.shape_cast %120 : vector<1x1x16x32xbf16> to vector<16x32xbf16>
    %cst_111 = arith.constant dense<0.000000e+00> : vector<64x32xf32>
    %122 = tpu.matmul %119, %121, %cst_111 {dimension_numbers = #tpu.dot_dimension_numbers<[1], [0], [0], [1], [0, 0, 1, 1], [], []>} : vector<64x16xbf16>, vector<16x32xbf16>, vector<64x32xf32> -> vector<64x32xf32>
    %123 = arith.addf %116, %122 : vector<64x32xf32>
    %c0_112 = arith.constant 0 : index
    %c2_113 = arith.constant 2 : index
    %c0_114 = arith.constant 0 : index
    %124 = vector.load %arg11[%c0_112, %c2_113, %c0_114] : memref<10x10x16xf32, #tpu.memory_space<vmem>>, vector<8x8x16xf32>
    %125 = vector.shape_cast %124 : vector<8x8x16xf32> to vector<64x16xf32>
    %126 = arith.truncf %125 : vector<64x16xf32> to vector<64x16xbf16>
    %c1_115 = arith.constant 1 : index
    %c2_116 = arith.constant 2 : index
    %c0_117 = arith.constant 0 : index
    %c0_118 = arith.constant 0 : index
    %127 = vector.load %arg5[%c1_115, %c2_116, %c0_117, %c0_118] : memref<3x9x16x32xbf16, #tpu.memory_space<vmem>>, vector<1x1x16x32xbf16>
    %128 = vector.shape_cast %127 : vector<1x1x16x32xbf16> to vector<16x32xbf16>
    %cst_119 = arith.constant dense<0.000000e+00> : vector<64x32xf32>
    %129 = tpu.matmul %126, %128, %cst_119 {dimension_numbers = #tpu.dot_dimension_numbers<[1], [0], [0], [1], [0, 0, 1, 1], [], []>} : vector<64x16xbf16>, vector<16x32xbf16>, vector<64x32xf32> -> vector<64x32xf32>
    %130 = arith.addf %123, %129 : vector<64x32xf32>
    %c1_120 = arith.constant 1 : index
    %c0_121 = arith.constant 0 : index
    %c0_122 = arith.constant 0 : index
    %131 = vector.load %arg11[%c1_120, %c0_121, %c0_122] : memref<10x10x16xf32, #tpu.memory_space<vmem>>, vector<8x8x16xf32>
    %132 = vector.shape_cast %131 : vector<8x8x16xf32> to vector<64x16xf32>
    %133 = arith.truncf %132 : vector<64x16xf32> to vector<64x16xbf16>
    %c1_123 = arith.constant 1 : index
    %c3_124 = arith.constant 3 : index
    %c0_125 = arith.constant 0 : index
    %c0_126 = arith.constant 0 : index
    %134 = vector.load %arg5[%c1_123, %c3_124, %c0_125, %c0_126] : memref<3x9x16x32xbf16, #tpu.memory_space<vmem>>, vector<1x1x16x32xbf16>
    %135 = vector.shape_cast %134 : vector<1x1x16x32xbf16> to vector<16x32xbf16>
    %cst_127 = arith.constant dense<0.000000e+00> : vector<64x32xf32>
    %136 = tpu.matmul %133, %135, %cst_127 {dimension_numbers = #tpu.dot_dimension_numbers<[1], [0], [0], [1], [0, 0, 1, 1], [], []>} : vector<64x16xbf16>, vector<16x32xbf16>, vector<64x32xf32> -> vector<64x32xf32>
    %137 = arith.addf %130, %136 : vector<64x32xf32>
    %c1_128 = arith.constant 1 : index
    %c1_129 = arith.constant 1 : index
    %c0_130 = arith.constant 0 : index
    %138 = vector.load %arg11[%c1_128, %c1_129, %c0_130] : memref<10x10x16xf32, #tpu.memory_space<vmem>>, vector<8x8x16xf32>
    %139 = vector.shape_cast %138 : vector<8x8x16xf32> to vector<64x16xf32>
    %140 = arith.truncf %139 : vector<64x16xf32> to vector<64x16xbf16>
    %c1_131 = arith.constant 1 : index
    %c4_132 = arith.constant 4 : index
    %c0_133 = arith.constant 0 : index
    %c0_134 = arith.constant 0 : index
    %141 = vector.load %arg5[%c1_131, %c4_132, %c0_133, %c0_134] : memref<3x9x16x32xbf16, #tpu.memory_space<vmem>>, vector<1x1x16x32xbf16>
    %142 = vector.shape_cast %141 : vector<1x1x16x32xbf16> to vector<16x32xbf16>
    %cst_135 = arith.constant dense<0.000000e+00> : vector<64x32xf32>
    %143 = tpu.matmul %140, %142, %cst_135 {dimension_numbers = #tpu.dot_dimension_numbers<[1], [0], [0], [1], [0, 0, 1, 1], [], []>} : vector<64x16xbf16>, vector<16x32xbf16>, vector<64x32xf32> -> vector<64x32xf32>
    %144 = arith.addf %137, %143 : vector<64x32xf32>
    %c1_136 = arith.constant 1 : index
    %c2_137 = arith.constant 2 : index
    %c0_138 = arith.constant 0 : index
    %145 = vector.load %arg11[%c1_136, %c2_137, %c0_138] : memref<10x10x16xf32, #tpu.memory_space<vmem>>, vector<8x8x16xf32>
    %146 = vector.shape_cast %145 : vector<8x8x16xf32> to vector<64x16xf32>
    %147 = arith.truncf %146 : vector<64x16xf32> to vector<64x16xbf16>
    %c1_139 = arith.constant 1 : index
    %c5_140 = arith.constant 5 : index
    %c0_141 = arith.constant 0 : index
    %c0_142 = arith.constant 0 : index
    %148 = vector.load %arg5[%c1_139, %c5_140, %c0_141, %c0_142] : memref<3x9x16x32xbf16, #tpu.memory_space<vmem>>, vector<1x1x16x32xbf16>
    %149 = vector.shape_cast %148 : vector<1x1x16x32xbf16> to vector<16x32xbf16>
    %cst_143 = arith.constant dense<0.000000e+00> : vector<64x32xf32>
    %150 = tpu.matmul %147, %149, %cst_143 {dimension_numbers = #tpu.dot_dimension_numbers<[1], [0], [0], [1], [0, 0, 1, 1], [], []>} : vector<64x16xbf16>, vector<16x32xbf16>, vector<64x32xf32> -> vector<64x32xf32>
    %151 = arith.addf %144, %150 : vector<64x32xf32>
    %c2_144 = arith.constant 2 : index
    %c0_145 = arith.constant 0 : index
    %c0_146 = arith.constant 0 : index
    %152 = vector.load %arg11[%c2_144, %c0_145, %c0_146] : memref<10x10x16xf32, #tpu.memory_space<vmem>>, vector<8x8x16xf32>
    %153 = vector.shape_cast %152 : vector<8x8x16xf32> to vector<64x16xf32>
    %154 = arith.truncf %153 : vector<64x16xf32> to vector<64x16xbf16>
    %c1_147 = arith.constant 1 : index
    %c6_148 = arith.constant 6 : index
    %c0_149 = arith.constant 0 : index
    %c0_150 = arith.constant 0 : index
    %155 = vector.load %arg5[%c1_147, %c6_148, %c0_149, %c0_150] : memref<3x9x16x32xbf16, #tpu.memory_space<vmem>>, vector<1x1x16x32xbf16>
    %156 = vector.shape_cast %155 : vector<1x1x16x32xbf16> to vector<16x32xbf16>
    %cst_151 = arith.constant dense<0.000000e+00> : vector<64x32xf32>
    %157 = tpu.matmul %154, %156, %cst_151 {dimension_numbers = #tpu.dot_dimension_numbers<[1], [0], [0], [1], [0, 0, 1, 1], [], []>} : vector<64x16xbf16>, vector<16x32xbf16>, vector<64x32xf32> -> vector<64x32xf32>
    %158 = arith.addf %151, %157 : vector<64x32xf32>
    %c2_152 = arith.constant 2 : index
    %c1_153 = arith.constant 1 : index
    %c0_154 = arith.constant 0 : index
    %159 = vector.load %arg11[%c2_152, %c1_153, %c0_154] : memref<10x10x16xf32, #tpu.memory_space<vmem>>, vector<8x8x16xf32>
    %160 = vector.shape_cast %159 : vector<8x8x16xf32> to vector<64x16xf32>
    %161 = arith.truncf %160 : vector<64x16xf32> to vector<64x16xbf16>
    %c1_155 = arith.constant 1 : index
    %c7_156 = arith.constant 7 : index
    %c0_157 = arith.constant 0 : index
    %c0_158 = arith.constant 0 : index
    %162 = vector.load %arg5[%c1_155, %c7_156, %c0_157, %c0_158] : memref<3x9x16x32xbf16, #tpu.memory_space<vmem>>, vector<1x1x16x32xbf16>
    %163 = vector.shape_cast %162 : vector<1x1x16x32xbf16> to vector<16x32xbf16>
    %cst_159 = arith.constant dense<0.000000e+00> : vector<64x32xf32>
    %164 = tpu.matmul %161, %163, %cst_159 {dimension_numbers = #tpu.dot_dimension_numbers<[1], [0], [0], [1], [0, 0, 1, 1], [], []>} : vector<64x16xbf16>, vector<16x32xbf16>, vector<64x32xf32> -> vector<64x32xf32>
    %165 = arith.addf %158, %164 : vector<64x32xf32>
    %c2_160 = arith.constant 2 : index
    %c2_161 = arith.constant 2 : index
    %c0_162 = arith.constant 0 : index
    %166 = vector.load %arg11[%c2_160, %c2_161, %c0_162] : memref<10x10x16xf32, #tpu.memory_space<vmem>>, vector<8x8x16xf32>
    %167 = vector.shape_cast %166 : vector<8x8x16xf32> to vector<64x16xf32>
    %168 = arith.truncf %167 : vector<64x16xf32> to vector<64x16xbf16>
    %c1_163 = arith.constant 1 : index
    %c8_164 = arith.constant 8 : index
    %c0_165 = arith.constant 0 : index
    %c0_166 = arith.constant 0 : index
    %169 = vector.load %arg5[%c1_163, %c8_164, %c0_165, %c0_166] : memref<3x9x16x32xbf16, #tpu.memory_space<vmem>>, vector<1x1x16x32xbf16>
    %170 = vector.shape_cast %169 : vector<1x1x16x32xbf16> to vector<16x32xbf16>
    %cst_167 = arith.constant dense<0.000000e+00> : vector<64x32xf32>
    %171 = tpu.matmul %168, %170, %cst_167 {dimension_numbers = #tpu.dot_dimension_numbers<[1], [0], [0], [1], [0, 0, 1, 1], [], []>} : vector<64x16xbf16>, vector<16x32xbf16>, vector<64x32xf32> -> vector<64x32xf32>
    %172 = arith.addf %165, %171 : vector<64x32xf32>
    %c1_i32 = arith.constant 1 : i32
    %173 = arith.addi %arg1, %c1_i32 : i32
    %c0_i32_168 = arith.constant 0 : i32
    %174 = arith.cmpi sge, %173, %c0_i32_168 : i32
    %c3_i32_169 = arith.constant 3 : i32
    %175 = arith.cmpi sle, %173, %c3_i32_169 : i32
    %176 = arith.andi %174, %175 : i1
    %c0_170 = arith.constant 0 : index
    %c0_171 = arith.constant 0 : index
    %c0_172 = arith.constant 0 : index
    %c0_173 = arith.constant 0 : index
    %177 = vector.load %arg4[%c0_170, %c0_171, %c0_172, %c0_173] : memref<1x8x8x16xbf16, #tpu.memory_space<vmem>>, vector<1x8x8x16xbf16>
    %178 = vector.shape_cast %177 : vector<1x8x8x16xbf16> to vector<8x8x16xbf16>
    %179 = arith.extf %178 : vector<8x8x16xbf16> to vector<8x8x16xf32>
    %180 = vector.broadcast %3 : vector<1x1x16xf32> to vector<8x8x16xf32>
    %181 = arith.mulf %179, %180 : vector<8x8x16xf32>
    %182 = vector.broadcast %5 : vector<1x1x16xf32> to vector<8x8x16xf32>
    %183 = arith.addf %181, %182 : vector<8x8x16xf32>
    %cst_174 = arith.constant 0.000000e+00 : f32
    %184 = vector.broadcast %cst_174 : f32 to vector<8x8x16xf32>
    %185 = arith.cmpf ogt, %183, %184 : vector<8x8x16xf32>
    %cst_175 = arith.constant 2.000000e-01 : f32
    %186 = vector.broadcast %cst_175 : f32 to vector<8x8x16xf32>
    %187 = arith.mulf %186, %183 : vector<8x8x16xf32>
    %188 = arith.select %185, %183, %187 : vector<8x8x16xi1>, vector<8x8x16xf32>
    %cst_176 = arith.constant 1.000000e+00 : f32
    %cst_177 = arith.constant 0.000000e+00 : f32
    %189 = arith.select %176, %cst_176, %cst_177 : f32
    %190 = vector.broadcast %189 : f32 to vector<8x8x16xf32>
    %191 = arith.mulf %188, %190 : vector<8x8x16xf32>
    %c1_178 = arith.constant 1 : index
    %c1_179 = arith.constant 1 : index
    %c0_180 = arith.constant 0 : index
    %192 = vector.load %arg11[%c1_178, %c1_179, %c0_180] : memref<10x10x16xf32, #tpu.memory_space<vmem>>, vector<8x8x16xf32>
    tpu.vector_store %arg11[%c1_178, %c1_179, %c0_180], %191 {strides = array<i32>} : memref<10x10x16xf32, #tpu.memory_space<vmem>>, vector<8x8x16xf32>,
    %c0_181 = arith.constant 0 : index
    %c0_182 = arith.constant 0 : index
    %c0_183 = arith.constant 0 : index
    %193 = vector.load %arg11[%c0_181, %c0_182, %c0_183] : memref<10x10x16xf32, #tpu.memory_space<vmem>>, vector<8x8x16xf32>
    %194 = vector.shape_cast %193 : vector<8x8x16xf32> to vector<64x16xf32>
    %195 = arith.truncf %194 : vector<64x16xf32> to vector<64x16xbf16>
    %c2_184 = arith.constant 2 : index
    %c0_185 = arith.constant 0 : index
    %c0_186 = arith.constant 0 : index
    %c0_187 = arith.constant 0 : index
    %196 = vector.load %arg5[%c2_184, %c0_185, %c0_186, %c0_187] : memref<3x9x16x32xbf16, #tpu.memory_space<vmem>>, vector<1x1x16x32xbf16>
    %197 = vector.shape_cast %196 : vector<1x1x16x32xbf16> to vector<16x32xbf16>
    %cst_188 = arith.constant dense<0.000000e+00> : vector<64x32xf32>
    %198 = tpu.matmul %195, %197, %cst_188 {dimension_numbers = #tpu.dot_dimension_numbers<[1], [0], [0], [1], [0, 0, 1, 1], [], []>} : vector<64x16xbf16>, vector<16x32xbf16>, vector<64x32xf32> -> vector<64x32xf32>
    %199 = arith.addf %172, %198 : vector<64x32xf32>
    %c0_189 = arith.constant 0 : index
    %c1_190 = arith.constant 1 : index
    %c0_191 = arith.constant 0 : index
    %200 = vector.load %arg11[%c0_189, %c1_190, %c0_191] : memref<10x10x16xf32, #tpu.memory_space<vmem>>, vector<8x8x16xf32>
    %201 = vector.shape_cast %200 : vector<8x8x16xf32> to vector<64x16xf32>
    %202 = arith.truncf %201 : vector<64x16xf32> to vector<64x16xbf16>
    %c2_192 = arith.constant 2 : index
    %c1_193 = arith.constant 1 : index
    %c0_194 = arith.constant 0 : index
    %c0_195 = arith.constant 0 : index
    %203 = vector.load %arg5[%c2_192, %c1_193, %c0_194, %c0_195] : memref<3x9x16x32xbf16, #tpu.memory_space<vmem>>, vector<1x1x16x32xbf16>
    %204 = vector.shape_cast %203 : vector<1x1x16x32xbf16> to vector<16x32xbf16>
    %cst_196 = arith.constant dense<0.000000e+00> : vector<64x32xf32>
    %205 = tpu.matmul %202, %204, %cst_196 {dimension_numbers = #tpu.dot_dimension_numbers<[1], [0], [0], [1], [0, 0, 1, 1], [], []>} : vector<64x16xbf16>, vector<16x32xbf16>, vector<64x32xf32> -> vector<64x32xf32>
    %206 = arith.addf %199, %205 : vector<64x32xf32>
    %c0_197 = arith.constant 0 : index
    %c2_198 = arith.constant 2 : index
    %c0_199 = arith.constant 0 : index
    %207 = vector.load %arg11[%c0_197, %c2_198, %c0_199] : memref<10x10x16xf32, #tpu.memory_space<vmem>>, vector<8x8x16xf32>
    %208 = vector.shape_cast %207 : vector<8x8x16xf32> to vector<64x16xf32>
    %209 = arith.truncf %208 : vector<64x16xf32> to vector<64x16xbf16>
    %c2_200 = arith.constant 2 : index
    %c2_201 = arith.constant 2 : index
    %c0_202 = arith.constant 0 : index
    %c0_203 = arith.constant 0 : index
    %210 = vector.load %arg5[%c2_200, %c2_201, %c0_202, %c0_203] : memref<3x9x16x32xbf16, #tpu.memory_space<vmem>>, vector<1x1x16x32xbf16>
    %211 = vector.shape_cast %210 : vector<1x1x16x32xbf16> to vector<16x32xbf16>
    %cst_204 = arith.constant dense<0.000000e+00> : vector<64x32xf32>
    %212 = tpu.matmul %209, %211, %cst_204 {dimension_numbers = #tpu.dot_dimension_numbers<[1], [0], [0], [1], [0, 0, 1, 1], [], []>} : vector<64x16xbf16>, vector<16x32xbf16>, vector<64x32xf32> -> vector<64x32xf32>
    %213 = arith.addf %206, %212 : vector<64x32xf32>
    %c1_205 = arith.constant 1 : index
    %c0_206 = arith.constant 0 : index
    %c0_207 = arith.constant 0 : index
    %214 = vector.load %arg11[%c1_205, %c0_206, %c0_207] : memref<10x10x16xf32, #tpu.memory_space<vmem>>, vector<8x8x16xf32>
    %215 = vector.shape_cast %214 : vector<8x8x16xf32> to vector<64x16xf32>
    %216 = arith.truncf %215 : vector<64x16xf32> to vector<64x16xbf16>
    %c2_208 = arith.constant 2 : index
    %c3_209 = arith.constant 3 : index
    %c0_210 = arith.constant 0 : index
    %c0_211 = arith.constant 0 : index
    %217 = vector.load %arg5[%c2_208, %c3_209, %c0_210, %c0_211] : memref<3x9x16x32xbf16, #tpu.memory_space<vmem>>, vector<1x1x16x32xbf16>
    %218 = vector.shape_cast %217 : vector<1x1x16x32xbf16> to vector<16x32xbf16>
    %cst_212 = arith.constant dense<0.000000e+00> : vector<64x32xf32>
    %219 = tpu.matmul %216, %218, %cst_212 {dimension_numbers = #tpu.dot_dimension_numbers<[1], [0], [0], [1], [0, 0, 1, 1], [], []>} : vector<64x16xbf16>, vector<16x32xbf16>, vector<64x32xf32> -> vector<64x32xf32>
    %220 = arith.addf %213, %219 : vector<64x32xf32>
    %c1_213 = arith.constant 1 : index
    %c1_214 = arith.constant 1 : index
    %c0_215 = arith.constant 0 : index
    %221 = vector.load %arg11[%c1_213, %c1_214, %c0_215] : memref<10x10x16xf32, #tpu.memory_space<vmem>>, vector<8x8x16xf32>
    %222 = vector.shape_cast %221 : vector<8x8x16xf32> to vector<64x16xf32>
    %223 = arith.truncf %222 : vector<64x16xf32> to vector<64x16xbf16>
    %c2_216 = arith.constant 2 : index
    %c4_217 = arith.constant 4 : index
    %c0_218 = arith.constant 0 : index
    %c0_219 = arith.constant 0 : index
    %224 = vector.load %arg5[%c2_216, %c4_217, %c0_218, %c0_219] : memref<3x9x16x32xbf16, #tpu.memory_space<vmem>>, vector<1x1x16x32xbf16>
    %225 = vector.shape_cast %224 : vector<1x1x16x32xbf16> to vector<16x32xbf16>
    %cst_220 = arith.constant dense<0.000000e+00> : vector<64x32xf32>
    %226 = tpu.matmul %223, %225, %cst_220 {dimension_numbers = #tpu.dot_dimension_numbers<[1], [0], [0], [1], [0, 0, 1, 1], [], []>} : vector<64x16xbf16>, vector<16x32xbf16>, vector<64x32xf32> -> vector<64x32xf32>
    %227 = arith.addf %220, %226 : vector<64x32xf32>
    %c1_221 = arith.constant 1 : index
    %c2_222 = arith.constant 2 : index
    %c0_223 = arith.constant 0 : index
    %228 = vector.load %arg11[%c1_221, %c2_222, %c0_223] : memref<10x10x16xf32, #tpu.memory_space<vmem>>, vector<8x8x16xf32>
    %229 = vector.shape_cast %228 : vector<8x8x16xf32> to vector<64x16xf32>
    %230 = arith.truncf %229 : vector<64x16xf32> to vector<64x16xbf16>
    %c2_224 = arith.constant 2 : index
    %c5_225 = arith.constant 5 : index
    %c0_226 = arith.constant 0 : index
    %c0_227 = arith.constant 0 : index
    %231 = vector.load %arg5[%c2_224, %c5_225, %c0_226, %c0_227] : memref<3x9x16x32xbf16, #tpu.memory_space<vmem>>, vector<1x1x16x32xbf16>
    %232 = vector.shape_cast %231 : vector<1x1x16x32xbf16> to vector<16x32xbf16>
    %cst_228 = arith.constant dense<0.000000e+00> : vector<64x32xf32>
    %233 = tpu.matmul %230, %232, %cst_228 {dimension_numbers = #tpu.dot_dimension_numbers<[1], [0], [0], [1], [0, 0, 1, 1], [], []>} : vector<64x16xbf16>, vector<16x32xbf16>, vector<64x32xf32> -> vector<64x32xf32>
    %234 = arith.addf %227, %233 : vector<64x32xf32>
    %c2_229 = arith.constant 2 : index
    %c0_230 = arith.constant 0 : index
    %c0_231 = arith.constant 0 : index
    %235 = vector.load %arg11[%c2_229, %c0_230, %c0_231] : memref<10x10x16xf32, #tpu.memory_space<vmem>>, vector<8x8x16xf32>
    %236 = vector.shape_cast %235 : vector<8x8x16xf32> to vector<64x16xf32>
    %237 = arith.truncf %236 : vector<64x16xf32> to vector<64x16xbf16>
    %c2_232 = arith.constant 2 : index
    %c6_233 = arith.constant 6 : index
    %c0_234 = arith.constant 0 : index
    %c0_235 = arith.constant 0 : index
    %238 = vector.load %arg5[%c2_232, %c6_233, %c0_234, %c0_235] : memref<3x9x16x32xbf16, #tpu.memory_space<vmem>>, vector<1x1x16x32xbf16>
    %239 = vector.shape_cast %238 : vector<1x1x16x32xbf16> to vector<16x32xbf16>
    %cst_236 = arith.constant dense<0.000000e+00> : vector<64x32xf32>
    %240 = tpu.matmul %237, %239, %cst_236 {dimension_numbers = #tpu.dot_dimension_numbers<[1], [0], [0], [1], [0, 0, 1, 1], [], []>} : vector<64x16xbf16>, vector<16x32xbf16>, vector<64x32xf32> -> vector<64x32xf32>
    %241 = arith.addf %234, %240 : vector<64x32xf32>
    %c2_237 = arith.constant 2 : index
    %c1_238 = arith.constant 1 : index
    %c0_239 = arith.constant 0 : index
    %242 = vector.load %arg11[%c2_237, %c1_238, %c0_239] : memref<10x10x16xf32, #tpu.memory_space<vmem>>, vector<8x8x16xf32>
    %243 = vector.shape_cast %242 : vector<8x8x16xf32> to vector<64x16xf32>
    %244 = arith.truncf %243 : vector<64x16xf32> to vector<64x16xbf16>
    %c2_240 = arith.constant 2 : index
    %c7_241 = arith.constant 7 : index
    %c0_242 = arith.constant 0 : index
    %c0_243 = arith.constant 0 : index
    %245 = vector.load %arg5[%c2_240, %c7_241, %c0_242, %c0_243] : memref<3x9x16x32xbf16, #tpu.memory_space<vmem>>, vector<1x1x16x32xbf16>
    %246 = vector.shape_cast %245 : vector<1x1x16x32xbf16> to vector<16x32xbf16>
    %cst_244 = arith.constant dense<0.000000e+00> : vector<64x32xf32>
    %247 = tpu.matmul %244, %246, %cst_244 {dimension_numbers = #tpu.dot_dimension_numbers<[1], [0], [0], [1], [0, 0, 1, 1], [], []>} : vector<64x16xbf16>, vector<16x32xbf16>, vector<64x32xf32> -> vector<64x32xf32>
    %248 = arith.addf %241, %247 : vector<64x32xf32>
    %c2_245 = arith.constant 2 : index
    %c2_246 = arith.constant 2 : index
    %c0_247 = arith.constant 0 : index
    %249 = vector.load %arg11[%c2_245, %c2_246, %c0_247] : memref<10x10x16xf32, #tpu.memory_space<vmem>>, vector<8x8x16xf32>
    %250 = vector.shape_cast %249 : vector<8x8x16xf32> to vector<64x16xf32>
    %251 = arith.truncf %250 : vector<64x16xf32> to vector<64x16xbf16>
    %c2_248 = arith.constant 2 : index
    %c8_249 = arith.constant 8 : index
    %c0_250 = arith.constant 0 : index
    %c0_251 = arith.constant 0 : index
    %252 = vector.load %arg5[%c2_248, %c8_249, %c0_250, %c0_251] : memref<3x9x16x32xbf16, #tpu.memory_space<vmem>>, vector<1x1x16x32xbf16>
    %253 = vector.shape_cast %252 : vector<1x1x16x32xbf16> to vector<16x32xbf16>
    %cst_252 = arith.constant dense<0.000000e+00> : vector<64x32xf32>
    %254 = tpu.matmul %251, %253, %cst_252 {dimension_numbers = #tpu.dot_dimension_numbers<[1], [0], [0], [1], [0, 0, 1, 1], [], []>} : vector<64x16xbf16>, vector<16x32xbf16>, vector<64x32xf32> -> vector<64x32xf32>
    %255 = arith.addf %248, %254 : vector<64x32xf32>
    %c0_253 = arith.constant 0 : index
    %c0_254 = arith.constant 0 : index
    %256 = vector.load %arg6[%c0_253, %c0_254] : memref<1x32xf32, #tpu.memory_space<vmem>>, vector<1x32xf32>
    %257 = vector.broadcast %256 : vector<1x32xf32> to vector<64x32xf32>
    %258 = arith.addf %255, %257 : vector<64x32xf32>
    %c0_255 = arith.constant 0 : index
    %c0_256 = arith.constant 0 : index
    %c0_257 = arith.constant 0 : index
    %259 = vector.load %arg9[%c0_255, %c0_256, %c0_257] : memref<1x64x32xf32, #tpu.memory_space<vmem>>, vector<1x64x32xf32>
    %260 = vector.shape_cast %259 : vector<1x64x32xf32> to vector<64x32xf32>
    %261 = vector.shape_cast %258 : vector<64x32xf32> to vector<1x64x32xf32>
    tpu.vector_store %arg9[%c0_255, %c0_256, %c0_257], %261 {strides = array<i32>} : memref<1x64x32xf32, #tpu.memory_space<vmem>>, vector<1x64x32xf32>,
    %cst_258 = arith.constant dense<0.000000e+00> : vector<32xf32>
    %262 = vector.multi_reduction <add>, %258, %cst_258 [0] : vector<64x32xf32> to vector<32xf32>
    %263 = vector.shape_cast %262 : vector<32xf32> to vector<1x32xf32>
    %264 = arith.mulf %258, %258 : vector<64x32xf32>
    %cst_259 = arith.constant dense<0.000000e+00> : vector<32xf32>
    %265 = vector.multi_reduction <add>, %264, %cst_259 [0] : vector<64x32xf32> to vector<32xf32>
    %266 = vector.shape_cast %265 : vector<32xf32> to vector<1x32xf32>
    %267 = tpu.concatenate %263, %266 in 0 : vector<1x32xf32>, vector<1x32xf32> -> vector<2x32xf32>
    %c0_260 = arith.constant 0 : index
    %c0_261 = arith.constant 0 : index
    %c0_262 = arith.constant 0 : index
    %268 = vector.load %arg10[%c0_260, %c0_261, %c0_262] : memref<1x2x32xf32, #tpu.memory_space<vmem>>, vector<1x2x32xf32>
    %269 = vector.shape_cast %268 : vector<1x2x32xf32> to vector<2x32xf32>
    %270 = vector.shape_cast %267 : vector<2x32xf32> to vector<1x2x32xf32>
    tpu.vector_store %arg10[%c0_260, %c0_261, %c0_262], %270 {strides = array<i32>} : memref<1x2x32xf32, #tpu.memory_space<vmem>>, vector<1x2x32xf32>,
    return
  }
  func.func @transform_0(%arg0: i32, %arg1: i32) -> (i32, i32, i32, i32) {
    %c-1_i32 = arith.constant -1 : i32
    %0 = arith.addi %arg1, %c-1_i32 : i32
    %c0_i32 = arith.constant 0 : i32
    %c3_i32 = arith.constant 3 : i32
    %1 = arith.maxsi %c0_i32, %0 : i32
    %2 = arith.minsi %c3_i32, %1 : i32
    %c4_i32 = arith.constant 4 : i32
    %3 = arith.muli %arg0, %c4_i32 : i32
    %4 = arith.addi %3, %2 : i32
    %c0_i32_0 = arith.constant 0 : i32
    %c0_i32_1 = arith.constant 0 : i32
    %c0_i32_2 = arith.constant 0 : i32
    %c0_i32_3 = arith.constant 0 : i32
    return %4, %c0_i32_0, %c0_i32_1, %c0_i32_2 : i32, i32, i32, i32
  }
  func.func @transform_1(%arg0: i32, %arg1: i32) -> (i32, i32, i32, i32) {
    %c0_i32 = arith.constant 0 : i32
    %0 = arith.addi %arg1, %c0_i32 : i32
    %c0_i32_0 = arith.constant 0 : i32
    %c3_i32 = arith.constant 3 : i32
    %1 = arith.maxsi %c0_i32_0, %0 : i32
    %2 = arith.minsi %c3_i32, %1 : i32
    %c4_i32 = arith.constant 4 : i32
    %3 = arith.muli %arg0, %c4_i32 : i32
    %4 = arith.addi %3, %2 : i32
    %c0_i32_1 = arith.constant 0 : i32
    %c0_i32_2 = arith.constant 0 : i32
    %c0_i32_3 = arith.constant 0 : i32
    %c0_i32_4 = arith.constant 0 : i32
    return %4, %c0_i32_1, %c0_i32_2, %c0_i32_3 : i32, i32, i32, i32
  }
  func.func @transform_2(%arg0: i32, %arg1: i32) -> (i32, i32, i32, i32) {
    %c1_i32 = arith.constant 1 : i32
    %0 = arith.addi %arg1, %c1_i32 : i32
    %c0_i32 = arith.constant 0 : i32
    %c3_i32 = arith.constant 3 : i32
    %1 = arith.maxsi %c0_i32, %0 : i32
    %2 = arith.minsi %c3_i32, %1 : i32
    %c4_i32 = arith.constant 4 : i32
    %3 = arith.muli %arg0, %c4_i32 : i32
    %4 = arith.addi %3, %2 : i32
    %c0_i32_0 = arith.constant 0 : i32
    %c0_i32_1 = arith.constant 0 : i32
    %c0_i32_2 = arith.constant 0 : i32
    %c0_i32_3 = arith.constant 0 : i32
    return %4, %c0_i32_0, %c0_i32_1, %c0_i32_2 : i32, i32, i32, i32
  }
  func.func @transform_3(%arg0: i32, %arg1: i32) -> (i32, i32, i32, i32) {
    %c0_i32 = arith.constant 0 : i32
    %c0_i32_0 = arith.constant 0 : i32
    %c0_i32_1 = arith.constant 0 : i32
    %c0_i32_2 = arith.constant 0 : i32
    %c0_i32_3 = arith.constant 0 : i32
    return %c0_i32, %c0_i32_0, %c0_i32_1, %c0_i32_2 : i32, i32, i32, i32
  }
  func.func @transform_4(%arg0: i32, %arg1: i32) -> (i32, i32) {
    %c0_i32 = arith.constant 0 : i32
    %c0_i32_0 = arith.constant 0 : i32
    %c0_i32_1 = arith.constant 0 : i32
    return %c0_i32, %c0_i32_0 : i32, i32
  }
  func.func @transform_5(%arg0: i32, %arg1: i32) -> (i32, i32) {
    %c0_i32 = arith.constant 0 : i32
    %c0_i32_0 = arith.constant 0 : i32
    %c0_i32_1 = arith.constant 0 : i32
    return %c0_i32, %c0_i32_0 : i32, i32
  }
  func.func @transform_6(%arg0: i32, %arg1: i32) -> (i32, i32) {
    %c0_i32 = arith.constant 0 : i32
    %c0_i32_0 = arith.constant 0 : i32
    %c0_i32_1 = arith.constant 0 : i32
    return %c0_i32, %c0_i32_0 : i32, i32
  }
  func.func @transform_7(%arg0: i32, %arg1: i32) -> (i32, i32, i32) {
    %c4_i32 = arith.constant 4 : i32
    %0 = arith.muli %arg0, %c4_i32 : i32
    %1 = arith.addi %0, %arg1 : i32
    %c0_i32 = arith.constant 0 : i32
    %c0_i32_0 = arith.constant 0 : i32
    %c0_i32_1 = arith.constant 0 : i32
    return %1, %c0_i32, %c0_i32_0 : i32, i32, i32
  }
  func.func @transform_8(%arg0: i32, %arg1: i32) -> (i32, i32, i32) {
    %c4_i32 = arith.constant 4 : i32
    %0 = arith.muli %arg0, %c4_i32 : i32
    %1 = arith.addi %0, %arg1 : i32
    %c0_i32 = arith.constant 0 : i32
    %c0_i32_0 = arith.constant 0 : i32
    %c0_i32_1 = arith.constant 0 : i32
    return %1, %c0_i32, %c0_i32_0 : i32, i32, i32
  }
}

module attributes {stable_mosaic.version = 11 : i64} {
  func.func @kernel(%arg0: i32, %arg1: memref<128x128xf32, #tpu.memory_space<vmem>>, %arg2: memref<128x128xf32, #tpu.memory_space<vmem>>, %arg3: memref<4x128xf32, #tpu.memory_space<vmem>>, %arg4: memref<128x128xf32, #tpu.memory_space<vmem>>) attributes {dimension_semantics = [#tpu.dimension_semantics<parallel>], iteration_bounds = array<i64: 1>, scalar_prefetch = 0 : i64, scratch_operands = 0 : i64, tpu.core_type = #tpu.core_type<tc>, window_params = [{transform_indices = @transform_0, window_bounds = array<i64: 128, 128>}, {transform_indices = @transform_1, window_bounds = array<i64: 128, 128>}, {pipeline_mode = #tpu.pipeline_mode<synchronous>, transform_indices = @transform_2, window_bounds = array<i64: 4, 128>}, {transform_indices = @transform_3, window_bounds = array<i64: 128, 128>}]} {
    %c0 = arith.constant 0 : index
    %c0_0 = arith.constant 0 : index
    %0 = vector.load %arg3[%c0, %c0_0] : memref<4x128xf32, #tpu.memory_space<vmem>>, vector<4x128xf32>
    %c0_1 = arith.constant 0 : index
    %c0_2 = arith.constant 0 : index
    %1 = vector.load %arg1[%c0_1, %c0_2] : memref<128x128xf32, #tpu.memory_space<vmem>>, vector<128x128xf32>
    %2 = vector.extract_strided_slice %0 {offsets = [0, 0], sizes = [1, 128], strides = [1, 1]} : vector<4x128xf32> to vector<1x128xf32>
    %3 = vector.broadcast %2 : vector<1x128xf32> to vector<128x128xf32>
    %4 = arith.mulf %1, %3 : vector<128x128xf32>
    %5 = vector.extract_strided_slice %0 {offsets = [1, 0], sizes = [1, 128], strides = [1, 1]} : vector<4x128xf32> to vector<1x128xf32>
    %6 = vector.broadcast %5 : vector<1x128xf32> to vector<128x128xf32>
    %7 = arith.addf %4, %6 : vector<128x128xf32>
    %c0_3 = arith.constant 0 : index
    %c0_4 = arith.constant 0 : index
    %8 = vector.load %arg2[%c0_3, %c0_4] : memref<128x128xf32, #tpu.memory_space<vmem>>, vector<128x128xf32>
    %9 = vector.extract_strided_slice %0 {offsets = [2, 0], sizes = [1, 128], strides = [1, 1]} : vector<4x128xf32> to vector<1x128xf32>
    %10 = vector.broadcast %9 : vector<1x128xf32> to vector<128x128xf32>
    %11 = arith.mulf %8, %10 : vector<128x128xf32>
    %12 = vector.extract_strided_slice %0 {offsets = [3, 0], sizes = [1, 128], strides = [1, 1]} : vector<4x128xf32> to vector<1x128xf32>
    %13 = vector.broadcast %12 : vector<1x128xf32> to vector<128x128xf32>
    %14 = arith.addf %11, %13 : vector<128x128xf32>
    %cst = arith.constant 0.000000e+00 : f32
    %15 = vector.broadcast %cst : f32 to vector<128x128xf32>
    %16 = arith.cmpf ogt, %7, %15 : vector<128x128xf32>
    %cst_5 = arith.constant 2.000000e-01 : f32
    %17 = vector.broadcast %cst_5 : f32 to vector<128x128xf32>
    %18 = arith.mulf %17, %7 : vector<128x128xf32>
    %19 = arith.select %16, %7, %18 : vector<128x128xi1>, vector<128x128xf32>
    %cst_6 = arith.constant 0.000000e+00 : f32
    %20 = vector.broadcast %cst_6 : f32 to vector<128x128xf32>
    %21 = arith.cmpf ogt, %14, %20 : vector<128x128xf32>
    %cst_7 = arith.constant 2.000000e-01 : f32
    %22 = vector.broadcast %cst_7 : f32 to vector<128x128xf32>
    %23 = arith.mulf %22, %14 : vector<128x128xf32>
    %24 = arith.select %21, %14, %23 : vector<128x128xi1>, vector<128x128xf32>
    %25 = arith.addf %19, %24 : vector<128x128xf32>
    %c0_8 = arith.constant 0 : index
    %c0_9 = arith.constant 0 : index
    %26 = vector.load %arg4[%c0_8, %c0_9] : memref<128x128xf32, #tpu.memory_space<vmem>>, vector<128x128xf32>
    tpu.vector_store %arg4[%c0_8, %c0_9], %25 {strides = array<i32>} : memref<128x128xf32, #tpu.memory_space<vmem>>, vector<128x128xf32>,
    return
  }
  func.func @transform_0(%arg0: i32) -> (i32, i32) {
    %c0_i32 = arith.constant 0 : i32
    %c0_i32_0 = arith.constant 0 : i32
    return %arg0, %c0_i32 : i32, i32
  }
  func.func @transform_1(%arg0: i32) -> (i32, i32) {
    %c0_i32 = arith.constant 0 : i32
    %c0_i32_0 = arith.constant 0 : i32
    return %arg0, %c0_i32 : i32, i32
  }
  func.func @transform_2(%arg0: i32) -> (i32, i32) {
    %c0_i32 = arith.constant 0 : i32
    %c0_i32_0 = arith.constant 0 : i32
    %c0_i32_1 = arith.constant 0 : i32
    return %c0_i32, %c0_i32_0 : i32, i32
  }
  func.func @transform_3(%arg0: i32) -> (i32, i32) {
    %c0_i32 = arith.constant 0 : i32
    %c0_i32_0 = arith.constant 0 : i32
    return %arg0, %c0_i32 : i32, i32
  }
}

</mosaic_0001>

<bundles_post_ra>
// kernel: tile.23
= control target key start
LH: loop header
LB: loop body
LE: loop exit
PB: predicated region body
PF: predicated region fallthrough
CT: control target
= control target key end

     0   :  { %s22_s0 = inlined_call_operand.vmem [shape: f32[32], index: 0, kind: input, shape index: {}]   ;;  %s23_s1 = inlined_call_operand.vmem [shape: f32[4,32], index: 1, kind: output, shape index: {}]  }
   0x1   :  { %v4_v0 = vld [vmem:[%s22_s0] ss:$0 sm:$0xff] }
   0x2   :  { %5 = vst [vmem:[%s23_s1] sm:$0xf] %v4_v0 }

// kernel: tile.36
= control target key start
LH: loop header
LB: loop body
LE: loop exit
PB: predicated region body
PF: predicated region fallthrough
CT: control target
= control target key end

     0   :  { %vm8_vm0 = vcmask 261120   ;;  %s40_s8 = smov 32   ;;  %s41_s9 = smov 64   ;;  %vm14_vm1 = vcmask 1048320   ;;  %vm20_vm2 = vcmask 785920   ;;  %vm26_vm3 = vcmask 523520   ;;  %s58_s0 = inlined_call_operand.vmem [shape: f32[4,32], index: 0, kind: input, shape index: {}]   ;;  %s59_s1 = inlined_call_operand.vmem [shape: f32[1,128], index: 1, kind: output, shape index: {}]  }
   0x1   :  { %v5_v0 = vld [vmem:[%s58_s0] sm:$0xf]  ;;  %s39_s0 = smov 96  }
   0x2   :  { %6 = vst [vmem:[#allocation1] sm:$0xf] %v5_v0 }
   0x9   :  { %v11_v1 = vld [vmem:[#allocation1 + $0x3] sm:$0x1]   ;;  %v23_v2 = vld [vmem:[#allocation1 + $0x1] sm:$0x1]   ;;  %v7_v3 = vld [vmem:[#allocation1] sm:$0x1]  }
   0xa   :  { %12 = vrot.lane.b32.xlu0 %v11_v1, %s39_s0  ;;  %24 = vrot.lane.b32.xlu1 %v23_v2, %s40_s8  ;;  %v17_v4 = vld [vmem:[#allocation1 + $0x2] sm:$0x1]   ;;  %9 = vst.msk [vmem:[#allocation0] sm:$0x1] %vm8_vm0, %v7_v3  }
   0xe   :  { %18 = vrot.lane.b32.xlu0 %v17_v4, %s41_s9 }
  0x7c   :  { %v13_v5 = vpop.permute.xlu0 %12   ;;  %v25_v6 = vpop.permute.xlu1 %24  }
  0x7d   :  { %15 = vst.msk [vmem:[#allocation0] sm:$0x1] %vm14_vm1, %v13_v5  }
  0x80   :  { %v19_v7 = vpop.permute.xlu0 %18  }
  0x81   :  { %21 = vst.msk [vmem:[#allocation0] sm:$0x1] %vm20_vm2, %v19_v7  }
  0x82   :  { %27 = vst.msk [vmem:[#allocation0] sm:$0x1] %vm26_vm3, %v25_v6  }
  0x89   :  { %v32_v8 = vld [vmem:[#allocation0] sm:$0x1] }
  0x8a   :  { %35 = vst [vmem:[%s59_s1] sm:$0x1] %v32_v8 }

// kernel: res_block_down_forward.3
= control target key start
LH: loop header
LB: loop body
LE: loop exit
PB: predicated region body
PF: predicated region fallthrough
CT: control target
= control target key end

     0   :  { %s3181_s24 = smov 0   ;;  %s3183_s25 = smov 0   ;;  %s3942_s0 = inlined_call_operand.vmem [shape: bf16[12,9,9,64], index: 0, kind: input, shape index: {}, may-alias: {0,1,2}]   ;;  %s3943_s1 = inlined_call_operand.vmem [shape: bf16[12,9,9,64], index: 1, kind: input, shape index: {}, may-alias: {0,1,2}]   ;;  %s3944_s2 = inlined_call_operand.vmem [shape: bf16[12,9,9,64], index: 2, kind: input, shape index: {}, may-alias: {0,1,2}]   ;;  %s3945_s3 = inlined_call_operand.vmem [shape: bf16[3,4,64,48], index: 3, kind: input, shape index: {}]   ;;  %s3946_s4 = inlined_call_operand.vmem [shape: f32[1,48], index: 4, kind: input, shape index: {}]   ;;  %s3947_s5 = inlined_call_operand.vmem [shape: bf16[8,8,8,16], index: 5, kind: output, shape index: {0}]   ;;  %s3948_s6 = inlined_call_operand.vmem [shape: f32[8,64,32], index: 6, kind: output, shape index: {1}]   ;;  %s3949_s7 = inlined_call_operand.vmem [shape: f32[8,2,48], index: 7, kind: output, shape index: {2}]  }
   0x1   :  { %s3185_s26 = smov 0   ;;  %s3187_s27 = smov 0  }
   0x2   :  { %s3189_s28 = smov 0  }
   0x3 LB: > { %s27_s29 = sadd.s32 1, %s3130_s26  ;;  %s30_s30 = sadd.s32 1, %s3134_s27  ;;  %s3138_s28 = sphi %s3189_s28, %s18_s28   ;;  %s3134_s27 = sphi %s3187_s27, %s3967_s27   ;;  %s3130_s26 = sphi %s3185_s26, %s3966_s26   ;;  %s3126_s25 = sphi %s3183_s25, %s3965_s25   ;;  %s3122_s24 = sphi %s3181_s24, %s3964_s24  }
   0x4   : > { %p28_p0 = scmp.ge.s32.totalorder %s27_s29, 4  ;;  %p2471_p1 = scmp.ge.s32.totalorder %s3138_s28, 1 }
   0x5   : > { %p318_p2 = scmp.lt.s32.totalorder %s3138_s28, 9 }
   0x6   : > { %s3969_s29 = smov (%p28_p0, %s27_s29), 0  ;;  %s3971_s30 = smov (!%p28_p0, %s30_s30), %s3134_s27 }
   0x7   : > { %p319_p3 = pnand %p2471_p1, %p318_p2  ;;  %p32_p4 = scmp.ge.s32.totalorder %s3971_s30, 2 }
   0x9   : > { %s3973_s30 = smov (%p32_p4, %s3971_s30), 0  ;;  %322 = sbr.rel (%p319_p3) target bundleno = 448 (0x1c0), region = 40 }
   0xe   : > { %v3028_v0 = vld [vmem:[%s3945_s3 + $0x38] sm:$0xff]   ;;  %s383_s10 = smul.u32 6, %s3126_s25  ;;  %v3030_v2 = vld [vmem:[%s3945_s3 + $0x30] sm:$0xff]   ;;  %v3032_v4 = vld [vmem:[%s3945_s3 + $0x28] sm:$0xff]   ;;  %vm505_vm0 = vcmask 1046528   ;;  %vm575_vm1 = vcmask 523264  }
   0xf   : > { %v3029_v1 = vld [vmem:[%s3945_s3 + $0x18] sm:$0xff]   ;;  %2792 = vmatprep.subr.bf16.mxu0 %v3028_v0  ;;  %v3031_v3 = vld [vmem:[%s3945_s3 + $0x10] sm:$0xff]   ;;  %v3033_v5 = vld [vmem:[%s3945_s3 + $0x8] sm:$0xff]   ;;  %vm2183_vm2 = vcmask 125952   ;;  %vm2233_vm3 = vcmask 392192   ;;  %vm2284_vm4 = vcmask 1040384  }
  0x10   : > { %s3226_s15 = sadd.s32 %s3122_s24, %s383_s10  ;;  %2808 = vmatprep.subr.bf16.mxu1 %v3029_v1  ;;  %2793 = vmatpush3.bf16.msra.mxu0 %v3028_v0  ;;  %v3034_v6 = vld [vmem:[%s3945_s3 + $0x20] sm:$0xff]   ;;  %v3259_v11 = vld [vmem:[%s3945_s3 + $0x58] sm:$0xff]   ;;  %v3041_v43 = vld [vmem:[%s3945_s3 + $0x50] sm:$0xff]   ;;  %vm2286_vm5 = vcmask 386048   ;;  %vm2224_vm6 = vcmask 261120  }
  0x11   : > { %p385_p5 = scmp.lt.s32.totalorder %s3226_s15, 11  ;;  %2809 = vmatpush3.bf16.msra.mxu1 %v3029_v1  ;;  %2794 = vmatprep.subr.bf16.mxu0 %v3030_v2  ;;  %v3035_v7 = vld [vmem:[%s3945_s3] sm:$0xff]   ;;  %s394_s16 = sadd.s32 1, %s3226_s15  ;;  %v3040_v30 = vld [vmem:[%s3945_s3 + $0x78] sm:$0xff]   ;;  %v3042_v44 = vld [vmem:[%s3945_s3 + $0x70] sm:$0xff]  }
  0x12   : > { %2810 = vmatprep.subr.bf16.mxu1 %v3031_v3  ;;  %p3285_p6 = scmp.lt.s32.totalorder %s394_s16, 11 }
  0x13   : > { %s386_s22 = scalar_select %p385_p5, %s3226_s15, 11 }
  0x14   : > { %2795 = vmatpush3.bf16.msra.mxu0 %v3030_v2  ;;  %s3975_s16 = smov (!%p3285_p6, %s394_s16), 11  ;;  %v3045_v2 = vld [vmem:[%s3945_s3 + $0x48] sm:$0xff]  }
  0x15   : > { %s2984_s23 = smul.u32 72, %s386_s22  ;;  %2811 = vmatpush3.bf16.msra.mxu1 %v3031_v3  ;;  %2796 = vmatprep.subr.bf16.mxu0 %v3032_v4  ;;  %v3046_v3 = vld [vmem:[%s3945_s3 + $0x68] sm:$0xff]  }
  0x16   : > { %2812 = vmatprep.subr.bf16.mxu1 %v3033_v5  ;;  %s2985_s19 = smul.u32 72, %s3975_s16  ;;  %s405_s16 = sadd.s32 2, %s3226_s15 }
  0x17   : > { %s3248_s14 = scalar_lea.vmem %s3942_s0, %s2984_s23  ;;  %p3472_p7 = scmp.lt.s32.totalorder %s405_s16, 11 }
  0x18   : > { %v441_v8 = vld [vmem:[%s3248_s14] sm:$0xf]  ;;  %v442_v9 = vld [vmem:[%s3248_s14 + $0x4] sm:$0x1]  ;;  %v3254_v10 = vld [vmem:[%s3248_s14 + $0x8] sm:$0xf]  ;;  %2797 = vmatpush3.bf16.msra.mxu0 %v3032_v4  ;;  %s3388_s9 = scalar_lea.vmem %s3943_s1, %s2985_s19 }
  0x19   : > { %v444_v12 = vld [vmem:[%s3248_s14 + $0xc] sm:$0x1]  ;;  %v3263_v13 = vld [vmem:[%s3248_s14 + $0x10] sm:$0xf]  ;;  %v446_v14 = vld [vmem:[%s3248_s14 + $0x14] sm:$0x1]  ;;  %v459_v15 = vunpack.c.l.bf16 %v441_v8  ;;  %v460_v16 = vunpack.c.l.bf16 %v442_v9  ;;  %v461_v17 = vunpack.c.l.bf16 %v3254_v10  ;;  %v2483_v18 = vcombine.low %v441_v8, %v3254_v10  ;;  %2813 = vmatpush3.bf16.msra.mxu1 %v3033_v5  ;;  %2798 = vmatprep.subr.bf16.mxu0 %v3034_v6 }
  0x1a   : > { %v3269_v19 = vld [vmem:[%s3248_s14 + $0x18] sm:$0xf]  ;;  %v448_v20 = vld [vmem:[%s3248_s14 + $0x1c] sm:$0x1]  ;;  %v3273_v21 = vld [vmem:[%s3248_s14 + $0x20] sm:$0xf]  ;;  %v462_v22 = vunpack.c.l.bf16 %v444_v12  ;;  %v463_v23 = vunpack.c.l.bf16 %v3263_v13  ;;  %v464_v24 = vunpack.c.l.bf16 %v446_v14  ;;  %2814 = vmatprep.subr.bf16.mxu1 %v3035_v7 }
  0x1b   : > { %v450_v25 = vld [vmem:[%s3248_s14 + $0x24] sm:$0x1]  ;;  %v465_v26 = vunpack.c.l.bf16 %v3269_v19  ;;  %v466_v27 = vunpack.c.l.bf16 %v448_v20  ;;  %v467_v28 = vunpack.c.l.bf16 %v3273_v21  ;;  %v506_v29 = vrot.slane %v459_v15, 1  ;;  %2816 = vmatprep.mubr.msk.bf16.mxu1 %vm575_vm1, %v2483_v18  ;;  %v3301_v45 = vld [vmem:[%s3248_s14 + $0x28] sm:$0xf]  ;;  %s3977_s16 = smov (!%p3472_p7, %s405_s16), 11 }
  0x1c   : > { %v468_v31 = vunpack.c.l.bf16 %v450_v25  ;;  %v507_v32 = vrot.slane %v460_v16, 1  ;;  %v509_v33 = vrot.slane %v461_v17, 1  ;;  %v510_v34 = vrot.slane %v462_v22, 1  ;;  %2799 = vmatpush3.bf16.msra.mxu0 %v3034_v6  ;;  %v452_v49 = vld [vmem:[%s3248_s14 + $0x2c] sm:$0x1]  ;;  %v3047_v16 = vld [vmem:[%s3945_s3 + $0x40] sm:$0xff]  }
  0x1d   : > { %v512_v35 = vrot.slane %v463_v23, 1  ;;  %v513_v36 = vrot.slane %v464_v24, 1  ;;  %v515_v37 = vrot.slane %v465_v26, 1  ;;  %v516_v38 = vrot.slane %v466_v27, 1  ;;  %2815 = vmatpush3.bf16.msra.mxu1 %v3035_v7  ;;  %2824 = vmatprep.subr.bf16.mxu0 %v3259_v11  ;;  %v3312_v50 = vld [vmem:[%s3248_s14 + $0x30] sm:$0xf] }
  0x1e   : > { %v508_v39 = vsel %vm505_vm0, %v506_v29, %v507_v32  ;;  %v3291_v40 = vsel %vm505_vm0, %v509_v33, %v510_v34  ;;  %v518_v41 = vrot.slane %v467_v28, 1  ;;  %v519_v42 = vrot.slane %v468_v31, 1  ;;  %2840 = vmatprep.subr.bf16.mxu1 %v3040_v30  ;;  %v454_v51 = vld [vmem:[%s3248_s14 + $0x34] sm:$0x1]  ;;  %v3320_v54 = vld [vmem:[%s3248_s14 + $0x38] sm:$0xf] }
  0x1f   : > { %v3304_v46 = vsel %vm505_vm0, %v512_v35, %v513_v36  ;;  %v3307_v47 = vsel %vm505_vm0, %v515_v37, %v516_v38  ;;  %v538_v48 = vpack.c.bf16 %v3291_v40, %v508_v39  ;;  %v2484_v53 = vcombine.low %v3263_v13, %v3269_v19  ;;  %v456_v55 = vld [vmem:[%s3248_s14 + $0x3c] sm:$0x1]  ;;  %v3048_v17 = vld [vmem:[%s3945_s3 + $0x60] sm:$0xff]   ;;  %v3052_v28 = vld [vmem:[%s3945_s3 + $0x90] sm:$0xff]   ;;  %s2986_s21 = smul.u32 72, %s3977_s16  ;;  %s3140_s23 = smov 112  }
  0x20   : > { %v539_v52 = vpack.c.bf16 %v3307_v47, %v3304_v46  ;;  %v469_v56 = vunpack.c.l.bf16 %v3301_v45  ;;  %v470_v57 = vunpack.c.l.bf16 %v452_v49  ;;  %v2485_v58 = vcombine.low %v3273_v21, %v3301_v45  ;;  %v3376_v22 = vld [vmem:[%s3248_s14 + $0x40] sm:$0xf]  ;;  %v458_v23 = vld [vmem:[%s3248_s14 + $0x44] sm:$0x1]  ;;  %v3050_v26 = vld [vmem:[%s3945_s3 + $0x98] sm:$0xff]  }
  0x21   : > { %2800 = vmatprep.mubr.msk.bf16.mxu0 %vm575_vm1, %v538_v48  ;;  %2817 = vmatmul.mubr.msk.bf16.vlgmr.msra.gmra.mxu1 %vm575_vm1, %v2484_v53  ;;  %v471_v59 = vunpack.c.l.bf16 %v3312_v50  ;;  %v472_v60 = vunpack.c.l.bf16 %v454_v51  ;;  %v473_v61 = vunpack.c.l.bf16 %v3320_v54  ;;  %v474_v62 = vunpack.c.l.bf16 %v456_v55  ;;  %v3053_v29 = vld [vmem:[%s3945_s3 + $0xb0] sm:$0xff]   ;;  %v3406_v32 = vld [vmem:[%s3388_s9] sm:$0xf]  ;;  %v3409_v33 = vld [vmem:[%s3388_s9 + $0x8] sm:$0xf]  ;;  %s3543_s11 = scalar_lea.vmem %s3944_s2, %s2986_s21 }
  0x22   : > { %2801 = vmatmul.mubr.msk.bf16.vlgmr.msra.gmra.mxu0 %vm575_vm1, %v539_v52  ;;  %v3338_v63 = vsel %vm505_vm0, %v518_v41, %v519_v42  ;;  %2841 = vmatpush3.bf16.msra.mxu1 %v3040_v30  ;;  %v521_v0 = vrot.slane %v469_v56, 1  ;;  %v522_v1 = vrot.slane %v470_v57, 1  ;;  %v2486_v14 = vcombine.low %v3312_v50, %v3320_v54  ;;  %v1005_v34 = vld [vmem:[%s3388_s9 + $0x4] sm:$0x1]  ;;  %v1007_v35 = vld [vmem:[%s3388_s9 + $0xc] sm:$0x1] }
  0x23   : > { %2825 = vmatpush3.bf16.msra.mxu0 %v3259_v11  ;;  %2842 = vmatprep.subr.bf16.mxu1 %v3042_v44  ;;  %v524_v4 = vrot.slane %v471_v59, 1  ;;  %v525_v5 = vrot.slane %v472_v60, 1  ;;  %v527_v6 = vrot.slane %v473_v61, 1  ;;  %v528_v7 = vrot.slane %v474_v62, 1  ;;  %v3416_v36 = vld [vmem:[%s3388_s9 + $0x10] sm:$0xf] }
  0x24   : > { %2826 = vmatprep.subr.bf16.mxu0 %v3041_v43  ;;  %v3348_v8 = vsel %vm505_vm0, %v521_v0, %v522_v1  ;;  %2820 = vmatprep.mubr.msk.bf16.mxu1 %vm575_vm1, %v2485_v58  ;;  %v882_v18 = vpack.c.bf16 %v3304_v46, %v3291_v40  ;;  %v2511_v20 = vcombine.low %v3254_v10, %v3263_v13  ;;  %v475_v24 = vunpack.c.l.bf16 %v3376_v22  ;;  %v3051_v10 = vld [vmem:[%s3945_s3 + $0xb8] sm:$0xff]   ;;  %v1009_v42 = vld [vmem:[%s3388_s9 + $0x14] sm:$0x1]  ;;  %v3057_v53 = vld [vmem:[%s3945_s3 + $0xa8] sm:$0xff]  }
  0x25   : > { %v540_v9 = vpack.c.bf16 %v3348_v8, %v3338_v63  ;;  %v3354_v11 = vsel %vm505_vm0, %v524_v4, %v525_v5  ;;  %v3357_v12 = vsel %vm505_vm0, %v527_v6, %v528_v7  ;;  %v476_v25 = vunpack.c.l.bf16 %v458_v23  ;;  %v3421_v40 = vld [vmem:[%s3388_s9 + $0x18] sm:$0xf]  ;;  %v3446_v62 = vld [vmem:[%s3388_s9 + $0x20] sm:$0xf]  ;;  %v1013_v4 = vld [vmem:[%s3388_s9 + $0x24] sm:$0x1] }
  0x26   : > { %2843 = vmatpush3.bf16.msra.mxu1 %v3042_v44  ;;  %v541_v15 = vpack.c.bf16 %v3357_v12, %v3354_v11  ;;  %v2512_v13 = vcombine.low %v3269_v19, %v3273_v21  ;;  %v883_v27 = vpack.c.bf16 %v3338_v63, %v3307_v47  ;;  %v878_v30 = vrot.slane %v475_v24, 1  ;;  %v3058_v1 = vld [vmem:[%s3945_s3 + $0x80] sm:$0xff]   ;;  %v1015_v5 = vld [vmem:[%s3388_s9 + $0x2c] sm:$0x1] }
  0x27   : > { %2827 = vmatpush3.bf16.msra.mxu0 %v3041_v43  ;;  %2804 = vmatprep.mubr.msk.bf16.mxu0 %vm575_vm1, %v540_v9  ;;  %v879_v31 = vrot.slane %v476_v25, 1  ;;  %v1022_v19 = vunpack.c.l.bf16 %v3406_v32  ;;  %v1024_v21 = vunpack.c.l.bf16 %v3409_v33  ;;  %v2513_v37 = vcombine.low %v3301_v45, %v3312_v50  ;;  %v1011_v43 = vld [vmem:[%s3388_s9 + $0x1c] sm:$0x1]  ;;  %v3056_v45 = vld [vmem:[%s3945_s3 + $0x88] sm:$0xff]   ;;  %v3468_v9 = vld [vmem:[%s3388_s9 + $0x38] sm:$0xf] }
  0x28   : > { %2828 = vmatprep.subr.bf16.mxu0 %v3045_v2  ;;  %2844 = vmatprep.subr.bf16.mxu1 %v3046_v3  ;;  %v1023_v38 = vunpack.c.l.bf16 %v1005_v34  ;;  %v1025_v39 = vunpack.c.l.bf16 %v1007_v35  ;;  %v1026_v41 = vunpack.c.l.bf16 %v3416_v36  ;;  %v884_v44 = vpack.c.bf16 %v3354_v11, %v3348_v8  ;;  %v3465_v8 = vld [vmem:[%s3388_s9 + $0x30] sm:$0xf] }
  0x29   : > { %2821 = vmatmul.mubr.msk.bf16.gmra.mxu1 %vm575_vm1, %v2486_v14  ;;  %v1178_v46 = vrot.slane %v1022_v19, 1  ;;  %v1181_v47 = vrot.slane %v1024_v21, 1  ;;  %v1028_v48 = vunpack.c.l.bf16 %v3421_v40  ;;  %v1027_v51 = vunpack.c.l.bf16 %v1009_v42 }
  0x2a   : > { %2805 = vmatmul.mubr.msk.bf16.gmra.mxu0 %vm575_vm1, %v541_v15  ;;  %2845 = vmatpush3.bf16.msra.mxu1 %v3046_v3  ;;  %v1179_v49 = vrot.slane %v1023_v38, 1  ;;  %v1182_v50 = vrot.slane %v1025_v39, 1  ;;  %v880_v52 = vsel %vm505_vm0, %v878_v30, %v879_v31  ;;  %v1029_v55 = vunpack.c.l.bf16 %v1011_v43  ;;  %v1017_v15 = vld [vmem:[%s3388_s9 + $0x34] sm:$0x1] }
  0x2b   : > { %2829 = vmatpush3.bf16.msra.mxu0 %v3045_v2  ;;  %2846 = vmatprep.subr.bf16.mxu1 %v3048_v17  ;;  %v1184_v56 = vrot.slane %v1026_v41, 1  ;;  %v1187_v57 = vrot.slane %v1028_v48, 1  ;;  %v1185_v60 = vrot.slane %v1027_v51, 1  ;;  %v2514_v63 = vcombine.low %v3320_v54, %v3376_v22  ;;  %v3455_v2 = vld [vmem:[%s3388_s9 + $0x28] sm:$0xf]  ;;  %v3059_v54 = vld [vmem:[%s3945_s3 + $0xa0] sm:$0xff]  }
  0x2c   : > { %2830 = vmatprep.subr.bf16.mxu0 %v3047_v16  ;;  %2832 = vmatprep.mubr.msk.bf16.mxu0 %vm575_vm1, %v2511_v20  ;;  %v1180_v58 = vsel %vm505_vm0, %v1178_v46, %v1179_v49  ;;  %v3443_v59 = vsel %vm505_vm0, %v1181_v47, %v1182_v50  ;;  %v1188_v61 = vrot.slane %v1029_v55, 1  ;;  %v885_v0 = vpack.c.bf16 %v880_v52, %v3357_v12  ;;  %v3064_v31 = vld [vmem:[%s3945_s3 + $0xd0] sm:$0xff]   ;;  %v3070_v46 = vld [vmem:[%s3945_s3 + $0xe8] sm:$0xff]   ;;  %v1021_v49 = vld [vmem:[%s3388_s9 + $0x44] sm:$0x1] }
  0x2d   : > { %2848 = vmatprep.mubr.msk.bf16.mxu1 %vm575_vm1, %v882_v18  ;;  %v1030_v3 = vunpack.c.l.bf16 %v3446_v62  ;;  %v1032_v6 = vunpack.c.l.bf16 %v3455_v2  ;;  %v1031_v7 = vunpack.c.l.bf16 %v1013_v4  ;;  %v2547_v11 = vcombine.low %v3406_v32, %v3409_v33  ;;  %v3065_v38 = vld [vmem:[%s3945_s3 + $0xf0] sm:$0xff]   ;;  %v3071_v50 = vld [vmem:[%s3945_s3 + $0xc0] sm:$0xff]  }
  0x2e   : > { %2847 = vmatpush3.bf16.msra.mxu1 %v3048_v17  ;;  %v1210_v12 = vpack.c.bf16 %v3443_v59, %v1180_v58  ;;  %v1033_v14 = vunpack.c.l.bf16 %v1015_v5  ;;  %v3482_v17 = vsel %vm505_vm0, %v1184_v56, %v1185_v60  ;;  %v3485_v18 = vsel %vm505_vm0, %v1187_v57, %v1188_v61  ;;  %v3072_v51 = vld [vmem:[%s3945_s3 + $0xe0] sm:$0xff]   ;;  %v1585_v61 = vld [vmem:[%s3543_s11 + $0xc] sm:$0x1] }
  0x2f   : > { %2831 = vmatpush3.bf16.msra.mxu0 %v3047_v16  ;;  %2872 = vmatprep.subr.bf16.mxu1 %v3051_v10  ;;  %v1019_v16 = vld [vmem:[%s3388_s9 + $0x3c] sm:$0x1]  ;;  %v1190_v20 = vrot.slane %v1030_v3, 1  ;;  %v1034_v22 = vunpack.c.l.bf16 %v3465_v8  ;;  %v1193_v23 = vrot.slane %v1032_v6, 1  ;;  %v1191_v24 = vrot.slane %v1031_v7, 1 }
  0x30   : > { %2856 = vmatprep.subr.bf16.mxu0 %v3050_v26  ;;  %v1194_v25 = vrot.slane %v1033_v14, 1  ;;  %v1211_v30 = vpack.c.bf16 %v3485_v18, %v3482_v17  ;;  %v2549_v39 = vcombine.low %v3446_v62, %v3455_v2  ;;  %v2550_v47 = vcombine.low %v3465_v8, %v3468_v9  ;;  %v3562_v52 = vld [vmem:[%s3543_s11] sm:$0xf]  ;;  %v1583_v55 = vld [vmem:[%s3543_s11 + $0x4] sm:$0x1]  ;;  %v3076_v14 = vld [vmem:[%s3945_s3 + $0x110] sm:$0xff]  }
  0x31   : > { %2849 = vmatmul.mubr.msk.bf16.vlgmr.msra.gmra.mxu1 %vm575_vm1, %v883_v27  ;;  %v1037_v27 = vunpack.c.l.bf16 %v1019_v16  ;;  %v3513_v32 = vsel %vm505_vm0, %v1190_v20, %v1191_v24  ;;  %v1196_v21 = vrot.slane %v1034_v22, 1  ;;  %v2583_v56 = vcombine.low %v3409_v33, %v3416_v36  ;;  %v3075_v33 = vld [vmem:[%s3945_s3 + $0x138] sm:$0xff]   ;;  %v3585_v3 = vld [vmem:[%s3543_s11 + $0x10] sm:$0xf] }
  0x32   : > { %2833 = vmatmul.mubr.msk.bf16.vlgmr.msra.gmra.mxu0 %vm575_vm1, %v2512_v13  ;;  %2873 = vmatpush3.bf16.msra.mxu1 %v3051_v10  ;;  %v3062_v10 = vld [vmem:[%s3945_s3 + $0xd8] sm:$0xff]   ;;  %v1035_v13 = vunpack.c.l.bf16 %v1017_v15  ;;  %v3516_v19 = vsel %vm505_vm0, %v1193_v23, %v1194_v25  ;;  %v1460_v57 = vpack.c.bf16 %v3482_v17, %v3443_v59  ;;  %v1039_v60 = vunpack.c.l.bf16 %v1021_v49  ;;  %v3612_v25 = vld [vmem:[%s3543_s11 + $0x20] sm:$0xf] }
  0x33   : > { %2857 = vmatpush3.bf16.msra.mxu0 %v3050_v26  ;;  %2874 = vmatprep.subr.bf16.mxu1 %v3053_v29  ;;  %v1036_v26 = vunpack.c.l.bf16 %v3468_v9  ;;  %v1212_v41 = vpack.c.bf16 %v3516_v19, %v3513_v32  ;;  %v2584_v6 = vcombine.low %v3421_v40, %v3446_v62  ;;  %v1461_v7 = vpack.c.bf16 %v3513_v32, %v3485_v18 }
  0x34   : > { %2858 = vmatprep.subr.bf16.mxu0 %v3052_v28  ;;  %2836 = vmatprep.mubr.msk.bf16.mxu0 %vm575_vm1, %v2513_v37  ;;  %v1197_v35 = vrot.slane %v1035_v13, 1  ;;  %v1200_v37 = vrot.slane %v1037_v27, 1  ;;  %v1457_v5 = vrot.slane %v1039_v60, 1  ;;  %v2585_v15 = vcombine.low %v3455_v2, %v3465_v8  ;;  %v1593_v13 = vld [vmem:[%s3543_s11 + $0x2c] sm:$0x1] }
  0x35   : > { %2852 = vmatprep.mubr.msk.bf16.mxu1 %vm575_vm1, %v884_v44  ;;  %v1199_v34 = vrot.slane %v1036_v26, 1  ;;  %v3069_v44 = vld [vmem:[%s3945_s3 + $0xc8] sm:$0xff]   ;;  %v1604_v17 = vunpack.c.l.bf16 %v3585_v3 }
  0x36   : > { %2875 = vmatpush3.bf16.msra.mxu1 %v3053_v29  ;;  %v2548_v29 = vcombine.low %v3416_v36, %v3421_v40  ;;  %v3529_v42 = vsel %vm505_vm0, %v1196_v21, %v1197_v35  ;;  %v1600_v36 = vunpack.c.l.bf16 %v3562_v52  ;;  %v3077_v40 = vld [vmem:[%s3945_s3 + $0x130] sm:$0xff]   ;;  %v3615_v26 = vld [vmem:[%s3543_s11 + $0x28] sm:$0xf]  ;;  %v1608_v35 = vunpack.c.l.bf16 %v3612_v25 }
  0x37   : > { %2859 = vmatpush3.bf16.msra.mxu0 %v3052_v28  ;;  %2876 = vmatprep.subr.bf16.mxu1 %v3057_v53  ;;  %v3063_v28 = vld [vmem:[%s3945_s3 + $0xf8] sm:$0xff]   ;;  %v3532_v43 = vsel %vm505_vm0, %v1199_v34, %v1200_v37  ;;  %v1462_v23 = vpack.c.bf16 %v3529_v42, %v3516_v19  ;;  %v1610_v37 = vunpack.c.l.bf16 %v3615_v26 }
  0x38   : > { %2860 = vmatprep.subr.bf16.mxu0 %v3056_v45  ;;  %v1213_v48 = vpack.c.bf16 %v3532_v43, %v3529_v42  ;;  %v1756_v16 = vrot.slane %v1600_v36, 1  ;;  %v3083_v42 = vld [vmem:[%s3945_s3 + $0x120] sm:$0xff]  }
  0x39   : > { %2853 = vmatmul.mubr.msk.bf16.gmra.mxu1 %vm575_vm1, %v885_v0  ;;  %v1601_v0 = vunpack.c.l.bf16 %v1583_v55  ;;  %v1771_v55 = vrot.slane %v1610_v37, 1 }
  0x3a   : > { %2837 = vmatmul.mubr.msk.bf16.gmra.mxu0 %vm575_vm1, %v2514_v63  ;;  %2877 = vmatpush3.bf16.msra.mxu1 %v3057_v53  ;;  %v3565_v53 = vld [vmem:[%s3543_s11 + $0x8] sm:$0xf]  ;;  %v3074_v63 = vld [vmem:[%s3945_s3 + $0x118] sm:$0xff]  }
  0x3b   : > { %2861 = vmatpush3.bf16.msra.mxu0 %v3056_v45  ;;  %2878 = vmatprep.subr.bf16.mxu1 %v3059_v54  ;;  %v3552_v45 = vld [vmem:[%s3388_s9 + $0x40] sm:$0xf]  ;;  %v1602_v59 = vunpack.c.l.bf16 %v3565_v53  ;;  %v1757_v18 = vrot.slane %v1601_v0, 1 }
  0x3c   : > { %2862 = vmatprep.subr.bf16.mxu0 %v3058_v1  ;;  %2864 = vmatprep.mubr.msk.bf16.mxu0 %vm575_vm1, %v2547_v11  ;;  %v1038_v58 = vunpack.c.l.bf16 %v3552_v45  ;;  %v1587_v11 = vld [vmem:[%s3543_s11 + $0x14] sm:$0x1]  ;;  %v2586_v27 = vcombine.low %v3468_v9, %v3552_v45 }
  0x3d   : > { %2880 = vmatprep.mubr.msk.bf16.mxu1 %vm575_vm1, %v1210_v12  ;;  %v1589_v12 = vld [vmem:[%s3543_s11 + $0x1c] sm:$0x1]  ;;  %v1759_v62 = vrot.slane %v1602_v59, 1  ;;  %v1605_v8 = vunpack.c.l.bf16 %v1587_v11  ;;  %v1758_v9 = vsel %vm505_vm0, %v1756_v16, %v1757_v18  ;;  %v3088_v11 = vld [vmem:[%s3945_s3 + $0x150] sm:$0xff]  }
  0x3e   : > { %2879 = vmatpush3.bf16.msra.mxu1 %v3059_v54  ;;  %v1456_v4 = vrot.slane %v1038_v58, 1  ;;  %v3590_v54 = vld [vmem:[%s3543_s11 + $0x18] sm:$0xf]  ;;  %v1607_v24 = vunpack.c.l.bf16 %v1589_v12  ;;  %v3089_v12 = vld [vmem:[%s3945_s3 + $0x170] sm:$0xff]  }
  0x3f   : > { %2863 = vmatpush3.bf16.msra.mxu0 %v3058_v1  ;;  %2904 = vmatprep.subr.bf16.mxu1 %v3063_v28  ;;  %v1603_v1 = vunpack.c.l.bf16 %v1585_v61  ;;  %v1606_v22 = vunpack.c.l.bf16 %v3590_v54  ;;  %v1763_v21 = vrot.slane %v1605_v8, 1  ;;  %v2620_v36 = vcombine.low %v3585_v3, %v3590_v54  ;;  %v1599_v8 = vld [vmem:[%s3543_s11 + $0x44] sm:$0x1] }
  0x40   : > { %2888 = vmatprep.subr.bf16.mxu0 %v3062_v10  ;;  %v1458_v2 = vsel %vm505_vm0, %v1456_v4, %v1457_v5  ;;  %v1766_v34 = vrot.slane %v1607_v24, 1  ;;  %v2655_v24 = vcombine.low %v3565_v53, %v3585_v3 }
  0x41   : > { %2881 = vmatmul.mubr.msk.bf16.vlgmr.msra.gmra.mxu1 %vm575_vm1, %v1211_v30  ;;  %v1760_v20 = vrot.slane %v1603_v1, 1  ;;  %v3081_v30 = vld [vmem:[%s3945_s3 + $0x128] sm:$0xff]   ;;  %v1765_v32 = vrot.slane %v1606_v22, 1  ;;  %v3095_v22 = vld [vmem:[%s3945_s3 + $0x140] sm:$0xff]  }
  0x42   : > { %2865 = vmatmul.mubr.msk.bf16.vlgmr.msra.gmra.mxu0 %vm575_vm1, %v2548_v29  ;;  %2905 = vmatpush3.bf16.msra.mxu1 %v3063_v28  ;;  %v1463_v28 = vpack.c.bf16 %v1458_v2, %v3532_v43  ;;  %v3080_v29 = vld [vmem:[%s3945_s3 + $0x108] sm:$0xff]   ;;  %v3645_v43 = vld [vmem:[%s3543_s11 + $0x30] sm:$0xf]  ;;  %v1598_v2 = vld [vmem:[%s3543_s11 + $0x40] sm:$0xf] }
  0x43   : > { %2889 = vmatpush3.bf16.msra.mxu0 %v3062_v10  ;;  %2906 = vmatprep.subr.bf16.mxu1 %v3065_v38  ;;  %v1591_v10 = vld [vmem:[%s3543_s11 + $0x24] sm:$0x1]  ;;  %v3634_v19 = vsel %vm505_vm0, %v1759_v62, %v1760_v20  ;;  %v3094_v62 = vld [vmem:[%s3945_s3 + $0x168] sm:$0xff]  }
  0x44   : > { %2890 = vmatprep.subr.bf16.mxu0 %v3064_v31  ;;  %2868 = vmatprep.mubr.msk.bf16.mxu0 %vm575_vm1, %v2549_v39  ;;  %v1611_v39 = vunpack.c.l.bf16 %v1593_v13  ;;  %v1788_v45 = vpack.c.bf16 %v3634_v19, %v1758_v9  ;;  %v1616_v13 = vunpack.c.l.bf16 %v1598_v2 }
  0x45   : > { %2884 = vmatprep.mubr.msk.bf16.mxu1 %vm575_vm1, %v1212_v41  ;;  %v3082_v41 = vld [vmem:[%s3945_s3 + $0x100] sm:$0xff]  }
  0x46   : > { %2907 = vmatpush3.bf16.msra.mxu1 %v3065_v38  ;;  %v1609_v38 = vunpack.c.l.bf16 %v1591_v10 }
  0x47   : > { %2891 = vmatpush3.bf16.msra.mxu0 %v3064_v31  ;;  %2908 = vmatprep.subr.bf16.mxu1 %v3070_v46  ;;  %v1762_v31 = vrot.slane %v1604_v17, 1 }
  0x48   : > { %2892 = vmatprep.subr.bf16.mxu0 %v3069_v44 }
  0x49   : > { %2885 = vmatmul.mubr.msk.bf16.gmra.mxu1 %vm575_vm1, %v1213_v48  ;;  %v2619_v48 = vcombine.low %v3562_v52, %v3565_v53  ;;  %v3656_v49 = vsel %vm505_vm0, %v1762_v31, %v1763_v21  ;;  %v1612_v52 = vunpack.c.l.bf16 %v3645_v43  ;;  %v2656_v53 = vcombine.low %v3590_v54, %v3612_v25 }
  0x4a   : > { %2869 = vmatmul.mubr.msk.bf16.gmra.mxu0 %vm575_vm1, %v2550_v47  ;;  %2909 = vmatpush3.bf16.msra.mxu1 %v3070_v46  ;;  %v1595_v46 = vld [vmem:[%s3543_s11 + $0x34] sm:$0x1]  ;;  %v1597_v47 = vld [vmem:[%s3543_s11 + $0x3c] sm:$0x1]  ;;  %v2038_v10 = vpack.c.bf16 %v3656_v49, %v3634_v19 }
  0x4b   : > { %2893 = vmatpush3.bf16.msra.mxu0 %v3069_v44  ;;  %2910 = vmatprep.subr.bf16.mxu1 %v3072_v51  ;;  %v3648_v44 = vld [vmem:[%s3543_s11 + $0x38] sm:$0xf]  ;;  %v1613_v60 = vunpack.c.l.bf16 %v1595_v46  ;;  %v1615_v61 = vunpack.c.l.bf16 %v1597_v47  ;;  %v1774_v4 = vrot.slane %v1612_v52, 1  ;;  %s2475_s11 = sshll.u32 %s3126_s25, 2 }
  0x4c   : > { %2894 = vmatprep.subr.bf16.mxu0 %v3071_v50  ;;  %2896 = vmatprep.mubr.msk.bf16.mxu0 %vm575_vm1, %v2583_v56  ;;  %v1769_v56 = vrot.slane %v1609_v38, 1  ;;  %v1614_v58 = vunpack.c.l.bf16 %v3648_v44  ;;  %v2622_v18 = vcombine.low %v3645_v43, %v3648_v44  ;;  %s415_s25 = sadd.s32 %s3122_s24, %s2475_s11 }
  0x4d   : > { %2912 = vmatprep.mubr.msk.bf16.mxu1 %vm575_vm1, %v1460_v57  ;;  %v1772_v57 = vrot.slane %v1611_v39, 1  ;;  %p416_p8 = scmp.lt.s32.totalorder %s415_s25, 7 }
  0x4e   : > { %2911 = vmatpush3.bf16.msra.mxu1 %v3072_v51  ;;  %v1768_v51 = vrot.slane %v1608_v35, 1  ;;  %v1777_v5 = vrot.slane %v1614_v58, 1 }
  0x4f   : > { %2895 = vmatpush3.bf16.msra.mxu0 %v3071_v50  ;;  %2936 = vmatprep.subr.bf16.mxu1 %v3075_v33  ;;  %v3659_v50 = vsel %vm505_vm0, %v1765_v32, %v1766_v34  ;;  %v1773_v1 = vsel %vm505_vm0, %v1771_v55, %v1772_v57  ;;  %s3979_s25 = smov (!%p416_p8, %s415_s25), 7 }
  0x50   : > { %2920 = vmatprep.subr.bf16.mxu0 %v3074_v63  ;;  %v1789_v59 = vpack.c.bf16 %v3659_v50, %v3656_v49  ;;  %v1770_v0 = vsel %vm505_vm0, %v1768_v51, %v1769_v56  ;;  %s2694_s20 = sshll.u32 %s3979_s25, 5  ;;  %s2482_s8 = sshll.u32 %s3979_s25, 1 }
  0x51   : > { %2913 = vmatmul.mubr.msk.bf16.vlgmr.msra.gmra.mxu1 %vm575_vm1, %v1461_v7  ;;  %v1778_v7 = vrot.slane %v1615_v61, 1  ;;  %v2039_v3 = vpack.c.bf16 %v1770_v0, %v3659_v50  ;;  %s3860_s22 = scalar_lea.vmem %s3947_s5, %s2694_s20  ;;  %s437_s12 = scalar_lea.vmem %s3949_s7, %s2482_s8 }
  0x52   : > { %2897 = vmatmul.mubr.msk.bf16.vlgmr.msra.gmra.mxu0 %vm575_vm1, %v2584_v6  ;;  %2937 = vmatpush3.bf16.msra.mxu1 %v3075_v33  ;;  %v3087_v33 = vld [vmem:[%s3945_s3 + $0x178] sm:$0xff]   ;;  %v1775_v6 = vrot.slane %v1613_v60, 1  ;;  %s2695_s13 = sshll.u32 %s3979_s25, 6 }
  0x53   : > { %2921 = vmatpush3.bf16.msra.mxu0 %v3074_v63  ;;  %2938 = vmatprep.subr.bf16.mxu1 %v3077_v40  ;;  %v3086_v63 = vld [vmem:[%s3945_s3 + $0x158] sm:$0xff]   ;;  %v1779_v17 = vsel %vm505_vm0, %v1777_v5, %v1778_v7  ;;  %s429_s9 = scalar_lea.vmem %s3948_s6, %s2695_s13 }
  0x54   : > { %2922 = vmatprep.subr.bf16.mxu0 %v3076_v14  ;;  %2900 = vmatprep.mubr.msk.bf16.mxu0 %vm575_vm1, %v2585_v15  ;;  %v1790_v15 = vpack.c.bf16 %v1773_v1, %v1770_v0  ;;  %v1776_v16 = vsel %vm505_vm0, %v1774_v4, %v1775_v6 }
  0x55   : > { %2916 = vmatprep.mubr.msk.bf16.mxu1 %vm575_vm1, %v1462_v23  ;;  %v1791_v20 = vpack.c.bf16 %v1779_v17, %v1776_v16  ;;  %v3096_v23 = vld [vmem:[%s3945_s3 + $0x160] sm:$0xff]  }
  0x56   : > { %2939 = vmatpush3.bf16.msra.mxu1 %v3077_v40  ;;  %v3093_v40 = vld [vmem:[%s3945_s3 + $0x148] sm:$0xff]  }
  0x57   : > { %2923 = vmatpush3.bf16.msra.mxu0 %v3076_v14  ;;  %2940 = vmatprep.subr.bf16.mxu1 %v3081_v30  ;;  %v2621_v14 = vcombine.low %v3612_v25, %v3615_v26  ;;  %v2658_v25 = vcombine.low %v3648_v44, %v1598_v2 }
  0x58   : > { %2924 = vmatprep.subr.bf16.mxu0 %v3080_v29 }
  0x59   : > { %2917 = vmatmul.mubr.msk.bf16.gmra.mxu1 %vm575_vm1, %v1463_v28  ;;  %v2657_v28 = vcombine.low %v3615_v26, %v3645_v43 }
  0x5a   : > { %2901 = vmatmul.mubr.msk.bf16.gmra.mxu0 %vm575_vm1, %v2586_v27  ;;  %2941 = vmatpush3.bf16.msra.mxu1 %v3081_v30  ;;  %v1617_v27 = vunpack.c.l.bf16 %v1599_v8  ;;  %v2034_v30 = vrot.slane %v1616_v13, 1 }
  0x5b   : > { %2925 = vmatpush3.bf16.msra.mxu0 %v3080_v29  ;;  %2942 = vmatprep.subr.bf16.mxu1 %v3083_v42  ;;  %v2040_v29 = vpack.c.bf16 %v1776_v16, %v1773_v1 }
  0x5c   : > { %2926 = vmatprep.subr.bf16.mxu0 %v3082_v41  ;;  %2928 = vmatprep.mubr.msk.bf16.mxu0 %vm575_vm1, %v2619_v48  ;;  %v2035_v31 = vrot.slane %v1617_v27, 1 }
  0x5d   : > { %2944 = vmatprep.mubr.msk.bf16.mxu1 %vm575_vm1, %v1788_v45 }
  0x5e   : > { %2943 = vmatpush3.bf16.msra.mxu1 %v3083_v42  ;;  %v2036_v54 = vsel %vm505_vm0, %v2034_v30, %v2035_v31 }
  0x5f   : > { %2927 = vmatpush3.bf16.msra.mxu0 %v3082_v41  ;;  %2968 = vmatprep.subr.bf16.mxu1 %v3087_v33  ;;  %v2041_v32 = vpack.c.bf16 %v2036_v54, %v1779_v17 }
  0x60   : > { %2952 = vmatprep.subr.bf16.mxu0 %v3086_v63 }
  0x61   : > { %2945 = vmatmul.mubr.msk.bf16.vlgmr.msra.gmra.mxu1 %vm575_vm1, %v1789_v59 }
  0x62   : > { %2929 = vmatmul.mubr.msk.bf16.vlgmr.msra.gmra.mxu0 %vm575_vm1, %v2620_v36  ;;  %2969 = vmatpush3.bf16.msra.mxu1 %v3087_v33 }
  0x63   : > { %2953 = vmatpush3.bf16.msra.mxu0 %v3086_v63  ;;  %2970 = vmatprep.subr.bf16.mxu1 %v3089_v12 }
  0x64   : > { %2954 = vmatprep.subr.bf16.mxu0 %v3088_v11  ;;  %2932 = vmatprep.mubr.msk.bf16.mxu0 %vm575_vm1, %v2621_v14 }
  0x65   : > { %2948 = vmatprep.mubr.msk.bf16.mxu1 %vm575_vm1, %v1790_v15 }
  0x66   : > { %2971 = vmatpush3.bf16.msra.mxu1 %v3089_v12 }
  0x67   : > { %2955 = vmatpush3.bf16.msra.mxu0 %v3088_v11  ;;  %2972 = vmatprep.subr.bf16.mxu1 %v3094_v62 }
  0x68   : > { %2956 = vmatprep.subr.bf16.mxu0 %v3093_v40 }
  0x69   : > { %2949 = vmatmul.mubr.msk.bf16.gmra.mxu1 %vm575_vm1, %v1791_v20 }
  0x6a   : > { %2933 = vmatmul.mubr.msk.bf16.gmra.mxu0 %vm575_vm1, %v2622_v18  ;;  %2973 = vmatpush3.bf16.msra.mxu1 %v3094_v62 }
  0x6b   : > { %2957 = vmatpush3.bf16.msra.mxu0 %v3093_v40  ;;  %2974 = vmatprep.subr.bf16.mxu1 %v3096_v23 }
  0x6c   : > { %2958 = vmatprep.subr.bf16.mxu0 %v3095_v22  ;;  %2960 = vmatprep.mubr.msk.bf16.mxu0 %vm575_vm1, %v2655_v24 }
  0x6d   : > { %2976 = vmatprep.mubr.msk.bf16.mxu1 %vm575_vm1, %v2038_v10 }
  0x6e   : > { %2975 = vmatpush3.bf16.msra.mxu1 %v3096_v23 }
  0x6f   : > { %2959 = vmatpush3.bf16.msra.mxu0 %v3095_v22 }
  0x71   : > { %2977 = vmatmul.mubr.msk.bf16.vlgmr.msra.gmra.mxu1 %vm575_vm1, %v2039_v3 }
  0x72   : > { %2961 = vmatmul.mubr.msk.bf16.vlgmr.msra.gmra.mxu0 %vm575_vm1, %v2656_v53  ;;  %2980 = vmatprep.mubr.msk.bf16.mxu1 %vm575_vm1, %v2040_v29 }
  0x73   : > { %2964 = vmatprep.mubr.msk.bf16.mxu0 %vm575_vm1, %v2657_v28 }
  0x79   : > { %2981 = vmatmul.mubr.msk.bf16.gmra.mxu1 %vm575_vm1, %v2041_v32 }
  0x7a   : > { %2965 = vmatmul.mubr.msk.bf16.gmra.mxu0 %vm575_vm1, %v2658_v25 }
  0xe1   : > { %v2818_v9 = vpop.f32.mrf.mxu1 }
  0xe2   : > { %v2802_v26 = vpop.f32.mrf.mxu0 }
  0xe3   : > { %v723_v21 = vpop.f32.mrf.mxu1  ;;  %v732_v3 = vadd.f32 %v2818_v9, %v2802_v26 }
  0xe4   : > { %v622_v19 = vpop.f32.mrf.mxu0 }
  0xe5   : > { %v2819_v35 = vpop.f32.mrf.mxu1  ;;  %v724_v30 = vadd.f32 %v723_v21, %v622_v19 }
  0xe6   : > { %v2803_v34 = vpop.f32.mrf.mxu0 }
  0xe7   : > { %v726_v38 = vpop.f32.mrf.mxu1  ;;  %v735_v32 = vadd.f32 %v2819_v35, %v2803_v34 }
  0xe8   : > { %v3730_v37 = vpop.f32.mrf.mxu0 }
  0xe9   : > { %v3734_v41 = vpop.f32.mrf.mxu1  ;;  %v727_v26 = vadd.f32 %v726_v38, %v3730_v37 }
  0xea   : > { %v3732_v39 = vpop.f32.mrf.mxu0 }
  0xeb   : > { %v3738_v43 = vpop.f32.mrf.mxu1 }
  0xec   : > { %v3736_v42 = vpop.f32.mrf.mxu0 }
  0xed   : > { %v3742_v46 = vpop.f32.mrf.mxu1 }
  0xee   : > { %v3740_v44 = vpop.f32.mrf.mxu0 }
  0xef   : > { %v3746_v48 = vpop.f32.mrf.mxu1  ;;  %v751_v37 = vadd.f32 %v3742_v46, %v3740_v44 }
  0xf0   : > { %v3744_v47 = vpop.f32.mrf.mxu0 }
  0xf1   : > { %v2850_v49 = vpop.f32.mrf.mxu1  ;;  %v743_v38 = vadd.f32 %v3746_v48, %v3744_v47 }
  0xf2   : > { %v2834_v45 = vpop.f32.mrf.mxu0 }
  0xf3   : > { %v965_v51 = vpop.f32.mrf.mxu1  ;;  %v870_v31 = vadd.f32 %v2834_v45, %v732_v3  ;;  %v748_v45 = vadd.f32 %v3734_v41, %v3732_v39 }
  0xf4   : > { %v837_v50 = vpop.f32.mrf.mxu0 }
  0xf5   : > { %v2851_v56 = vpop.f32.mrf.mxu1 }
  0xf6   : > { %v2835_v55 = vpop.f32.mrf.mxu0 }
  0xf7   : > { %v3748_v52 = vpop.f32.mrf.mxu1 }
  0xf8   : > { %v840_v57 = vpop.f32.mrf.mxu0 }
  0xf9   : > { %v3750_v60 = vpop.f32.mrf.mxu1  ;;  %v869_v3 = vadd.f32 %v840_v57, %v727_v26 }
  0xfa   : > { %v2838_v58 = vpop.f32.mrf.mxu0 }
  0xfb   : > { %v3752_v63 = vpop.f32.mrf.mxu1  ;;  %v997_v57 = vadd.f32 %v3748_v52, %v869_v3 }
  0xfc   : > { %v853_v61 = vpop.f32.mrf.mxu0 }
  0xfd   : > { %v3754_v36 = vpop.f32.mrf.mxu1 }
  0xfe   : > { %v2839_v33 = vpop.f32.mrf.mxu0 }
  0xff   : > { %v3756_v0 = vpop.f32.mrf.mxu1 }
 0x100   : > { %v856_v59 = vpop.f32.mrf.mxu0 }
 0x101   : > { %v2882_v4 = vpop.f32.mrf.mxu1 }
 0x102   : > { %v2866_v1 = vpop.f32.mrf.mxu0 }
 0x103   : > { %v1293_v6 = vpop.f32.mrf.mxu1 }
 0x104   : > { %v1123_v5 = vpop.f32.mrf.mxu0 }
 0x105   : > { %v3758_v11 = vpop.f32.mrf.mxu1 }
 0x106   : > { %v2867_v7 = vpop.f32.mrf.mxu0 }
 0x107   : > { %v3760_v14 = vpop.f32.mrf.mxu1 }
 0x108   : > { %v1126_v12 = vpop.f32.mrf.mxu0 }
 0x109   : > { %v3764_v16 = vpop.f32.mrf.mxu1  ;;  %v1155_v46 = vadd.f32 %v1126_v12, %v997_v57 }
 0x10a   : > { %v3762_v15 = vpop.f32.mrf.mxu0 }
 0x10b   : > { %v3768_v40 = vpop.f32.mrf.mxu1 }
 0x10c   : > { %v3766_v17 = vpop.f32.mrf.mxu0  ;;  %3952 = vst [vmem:[#allocation2_spill] sm:$0xff] %v3768_v40  ;;  %v998_v40 = vadd.f32 %v2850_v49, %v870_v31  ;;  %v873_v31 = vadd.f32 %v856_v59, %v743_v38 }
 0x10d   : > { %v3772_v18 = vpop.f32.mrf.mxu1 }
 0x10e   : > { %v3770_v62 = vpop.f32.mrf.mxu0  ;;  %3953 = vst [vmem:[#allocation3_spill] sm:$0xff] %v3772_v18  ;;  %v1156_v21 = vadd.f32 %v2866_v1, %v998_v40 }
 0x10f   : > { %v3776_v22 = vpop.f32.mrf.mxu1 }
 0x110   : > { %v3774_v20 = vpop.f32.mrf.mxu0  ;;  %3954 = vst [vmem:[#allocation4_spill] sm:$0xff] %v3776_v22  ;;  %v868_v22 = vadd.f32 %v837_v50, %v724_v30  ;;  %v740_v50 = vadd.f32 %v3738_v43, %v3736_v42  ;;  %v1326_v39 = vadd.f32 %v2882_v4, %v1156_v21 }
 0x111   : > { %v2914_v2 = vpop.f32.mrf.mxu1 }
 0x112   : > { %v2898_v23 = vpop.f32.mrf.mxu0  ;;  %v996_v19 = vadd.f32 %v965_v51, %v868_v22  ;;  %v874_v51 = vadd.f32 %v2838_v58, %v748_v45  ;;  %v872_v40 = vadd.f32 %v853_v61, %v740_v50  ;;  %v875_v22 = vadd.f32 %v2839_v33, %v751_v37 }
 0x113   : > { %v3778_v24 = vpop.f32.mrf.mxu1  ;;  %v1001_v33 = vadd.f32 %v3756_v0, %v873_v31 }
 0x114   : > { %v1415_v8 = vpop.f32.mrf.mxu0  ;;  %v1154_v49 = vadd.f32 %v1123_v5, %v996_v19  ;;  %v1448_v5 = vadd.f32 %v2898_v23, %v1326_v39  ;;  %v1002_v44 = vadd.f32 %v3750_v60, %v874_v51  ;;  %v1000_v58 = vadd.f32 %v3752_v63, %v872_v40 }
 0x115   : > { %v3780_v13 = vpop.f32.mrf.mxu1  ;;  %v1003_v52 = vadd.f32 %v3754_v36, %v875_v22  ;;  %v3961_v3 = vld [vmem:[#allocation3_spill] sm:$0xff] }
 0x116   : > { %v2899_v10 = vpop.f32.mrf.mxu0  ;;  %3955 = vst [vmem:[#allocation5_spill] sm:$0xff] %v3780_v13  ;;  %v1160_v59 = vadd.f32 %v3762_v15, %v1002_v44  ;;  %v1158_v60 = vadd.f32 %v3766_v17, %v1000_v58  ;;  %v1576_v12 = vadd.f32 %v2914_v2, %v1448_v5  ;;  %v3959_v2 = vld [vmem:[#allocation2_spill] sm:$0xff] }
 0x117   : > { %v3784_v53 = vpop.f32.mrf.mxu1  ;;  %v1161_v63 = vadd.f32 %v3770_v62, %v1003_v52  ;;  %v3962_v50 = vld [vmem:[#allocation4_spill] sm:$0xff] }
 0x118   : > { %v3782_v27 = vpop.f32.mrf.mxu0  ;;  %3957 = vst [vmem:[#allocation7_spill] sm:$0xff] %v3784_v53  ;;  %v1330_v15 = vadd.f32 %v3764_v16, %v1160_v59 }
 0x119   : > { %3956 = vst [vmem:[#allocation6_spill] sm:$0xff] %v3782_v27  ;;  %v3788_v29 = vpop.f32.mrf.mxu1  ;;  %v871_v27 = vadd.f32 %v2835_v55, %v735_v32 }
 0x11a   : > { %v3786_v28 = vpop.f32.mrf.mxu0 }
 0x11b   : > { %v3792_v25 = vpop.f32.mrf.mxu1  ;;  %v999_v30 = vadd.f32 %v2851_v56, %v871_v27  ;;  %v1324_v56 = vadd.f32 %v1293_v6, %v1154_v49  ;;  %v1325_v27 = vadd.f32 %v3760_v14, %v1155_v46 }
 0x11c   : > { %v3790_v54 = vpop.f32.mrf.mxu0 }
 0x11d   : > { %v3796_v13 = vpop.f32.mrf.mxu1  ;;  %v1157_v41 = vadd.f32 %v2867_v7, %v999_v30  ;;  %v1446_v4 = vadd.f32 %v1415_v8, %v1324_v56  ;;  %v3960_v14 = vld [vmem:[#allocation5_spill] sm:$0xff] }
 0x11e   : > { %v3794_v18 = vpop.f32.mrf.mxu0 }
 0x11f   : > { %v3801_v53 = vpop.f32.mrf.mxu1  ;;  %v1327_v61 = vadd.f32 %v3758_v11, %v1157_v41  ;;  %v1159_v11 = vadd.f32 %v3774_v20, %v1001_v33  ;;  %v1574_v0 = vadd.f32 %v3778_v24, %v1446_v4  ;;  %v1331_v20 = vadd.f32 %v3961_v3, %v1161_v63  ;;  %v3963_v51 = vld [vmem:[#allocation7_spill] sm:$0xff] }
 0x120   : > { %v3799_v9 = vpop.f32.mrf.mxu0  ;;  %v3958_v26 = vld [vmem:[#allocation6_spill] sm:$0xff]  ;;  %v1452_v24 = vadd.f32 %v3786_v28, %v1330_v15 }
 0x121   : > { %v2946_v35 = vpop.f32.mrf.mxu1  ;;  %v1449_v23 = vadd.f32 %v2899_v10, %v1327_v61  ;;  %v1447_v19 = vadd.f32 %v3958_v26, %v1325_v27  ;;  %v1328_v10 = vadd.f32 %v3959_v2, %v1158_v60  ;;  %v1329_v30 = vadd.f32 %v3962_v50, %v1159_v11 }
 0x122   : > { %v2930_v34 = vpop.f32.mrf.mxu0  ;;  %v1580_v31 = vadd.f32 %v3788_v29, %v1452_v24 }
 0x123   : > { %v1871_v1 = vpop.f32.mrf.mxu1  ;;  %v1734_v32 = vadd.f32 %v2930_v34, %v1576_v12  ;;  %v1577_v45 = vadd.f32 %v3960_v14, %v1449_v23  ;;  %v1450_v16 = vadd.f32 %v3790_v54, %v1328_v10  ;;  %v1575_v40 = vadd.f32 %v3963_v51, %v1447_v19  ;;  %v3849_v54 = vld [vmem:[%s3946_s4] ss:$0 sm:$0xff] }
 0x124   : > { %v1701_v55 = vpop.f32.mrf.mxu0  ;;  %v1451_v39 = vadd.f32 %v3799_v9, %v1329_v30 }
 0x125   : > { %v2947_v43 = vpop.f32.mrf.mxu1  ;;  %v1732_v62 = vadd.f32 %v1701_v55, %v1574_v0  ;;  %v1904_v37 = vadd.f32 %v2946_v35, %v1734_v32  ;;  %v1453_v55 = vadd.f32 %v3794_v18, %v1331_v20  ;;  %v1578_v5 = vadd.f32 %v3792_v25, %v1450_v16 }
 0x126   : > { %v2931_v42 = vpop.f32.mrf.mxu0 }
 0x127   : > { %v3814_v48 = vpop.f32.mrf.mxu1  ;;  %v1735_v38 = vadd.f32 %v2931_v42, %v1577_v45  ;;  %v1902_v22 = vadd.f32 %v1871_v1, %v1732_v62  ;;  %v1581_v46 = vadd.f32 %v3796_v13, %v1453_v55  ;;  %v1579_v1 = vadd.f32 %v3801_v53, %v1451_v39 }
 0x128   : > { %v1704_v47 = vpop.f32.mrf.mxu0 }
 0x129   : > { %v3821_v7 = vpop.f32.mrf.mxu1  ;;  %v1733_v56 = vadd.f32 %v1704_v47, %v1575_v40  ;;  %v1905_v44 = vadd.f32 %v2947_v43, %v1735_v38 }
 0x12a   : > { %v2934_v6 = vpop.f32.mrf.mxu0 }
 0x12b   : > { %v1887_v36 = vpop.f32.mrf.mxu1  ;;  %v1738_v58 = vadd.f32 %v2934_v6, %v1580_v31  ;;  %v1903_v59 = vadd.f32 %v3814_v48, %v1733_v56 }
 0x12c   : > { %v1717_v8 = vpop.f32.mrf.mxu0 }
 0x12d   : > { %v3831_v17 = vpop.f32.mrf.mxu1  ;;  %v1736_v61 = vadd.f32 %v1717_v8, %v1578_v5  ;;  %v1908_v12 = vadd.f32 %v3821_v7, %v1738_v58 }
 0x12e   : > { %v2935_v21 = vpop.f32.mrf.mxu0 }
 0x12f   : > { %v1890_v49 = vpop.f32.mrf.mxu1  ;;  %v1739_v53 = vadd.f32 %v2935_v21, %v1581_v46  ;;  %v1906_v11 = vadd.f32 %v1887_v36, %v1736_v61 }
 0x130   : > { %v1720_v34 = vpop.f32.mrf.mxu0 }
 0x131   : > { %v2978_v57 = vpop.f32.mrf.mxu1  ;;  %v1737_v43 = vadd.f32 %v1720_v34, %v1579_v1  ;;  %v1909_v7 = vadd.f32 %v3831_v17, %v1739_v53 }
 0x132   : > { %v2962_v41 = vpop.f32.mrf.mxu0 }
 0x133   : > { %v2026_v28 = vadd.f32 %v2962_v41, %v1904_v37  ;;  %v2121_v42 = vpop.f32.mrf.mxu1  ;;  %v1907_v21 = vadd.f32 %v1890_v49, %v1737_v43 }
 0x134   : > { %v1993_v35 = vpop.f32.mrf.mxu0 }
 0x135   : > { %v2154_v18 = vadd.f32 %v2978_v57, %v2026_v28  ;;  %v2024_v9 = vadd.f32 %v1993_v35, %v1902_v22  ;;  %v2979_v47 = vpop.f32.mrf.mxu1 }
 0x136   : > { %v2963_v29 = vpop.f32.mrf.mxu0 }
 0x137   : > { %v2169_v4 = vadd.f32 %v3849_v54, %v2154_v18  ;;  %v2152_v52 = vadd.f32 %v2121_v42, %v2024_v9  ;;  %v2027_v33 = vadd.f32 %v2963_v29, %v1905_v44  ;;  %v2124_v25 = vpop.f32.mrf.mxu1 }
 0x138   : > { %v1996_v13 = vpop.f32.mrf.mxu0 }
 0x139   : > { %v2177_v6 = vpack.c.bf16 %v2169_v4, %v2169_v4  ;;  %v2167_v60 = vadd.f32 %v3849_v54, %v2152_v52  ;;  %2204 = vrot.lane.b32.xlu1 %v2169_v4, %s3140_s23  ;;  %v2155_v48 = vadd.f32 %v2979_v47, %v2027_v33  ;;  %v2025_v23 = vadd.f32 %v1996_v13, %v1903_v59  ;;  %v2982_v63 = vpop.f32.mrf.mxu1 }
 0x13a   : > { %v2966_v27 = vpop.f32.mrf.mxu0  ;;  %v2237_v36 = vsel %vm2233_vm3, %v2169_v4, 0.0  ;;  %v2257_v3 = vmul.f32 %v2169_v4, %v2169_v4 }
 0x13b   : > { %2186 = vst.msk [vmem:[%s3860_s22 + $0x8] sm:$0xf] %vm2183_vm2, %v2177_v6  ;;  %v2175_v8 = vpack.c.bf16 %v2167_v60, %v2167_v60  ;;  %2200 = vrot.lane.b32.xlu0 %v2167_v60, %s3140_s23  ;;  %v2170_v0 = vadd.f32 %v3849_v54, %v2155_v48  ;;  %v2153_v32 = vadd.f32 %v2124_v25, %v2025_v23  ;;  %v2137_v19 = vpop.f32.mrf.mxu1  ;;  %v2234_v17 = vsel %vm2233_vm3, %v2167_v60, 0.0 }
 0x13c   : > { %v2030_v15 = vadd.f32 %v2966_v27, %v1908_v12  ;;  %v2009_v26 = vpop.f32.mrf.mxu0  ;;  %v2255_v10 = vmul.f32 %v2167_v60, %v2167_v60  ;;  %v2266_v35 = vsel %vm2233_vm3, %v2257_v3, 0.0 }
 0x13d   : > { %2184 = vst.msk [vmem:[%s3860_s22] sm:$0xf] %vm2183_vm2, %v2175_v8  ;;  %v2028_v2 = vadd.f32 %v2009_v26, %v1906_v11  ;;  %v2178_v14 = vpack.c.bf16 %v2170_v0, %v2170_v0  ;;  %v2168_v45 = vadd.f32 %v3849_v54, %v2153_v32  ;;  %2206 = vrot.lane.b32.xlu1 %v2170_v0, %s3140_s23  ;;  %v2983_v16 = vpop.f32.mrf.mxu1  ;;  %v2239_v42 = vsel %vm2233_vm3, %v2170_v0, 0.0 }
 0x13e   : > { %v2967_v62 = vpop.f32.mrf.mxu0  ;;  %v2158_v20 = vadd.f32 %v2982_v63, %v2030_v15  ;;  %v2263_v39 = vsel %vm2233_vm3, %v2255_v10, 0.0  ;;  %v2258_v41 = vmul.f32 %v2170_v0, %v2170_v0 }
 0x13f   : > { %v2156_v50 = vadd.f32 %v2137_v19, %v2028_v2  ;;  %v2031_v30 = vadd.f32 %v2967_v62, %v1909_v7  ;;  %2187 = vst.msk [vmem:[%s3860_s22 + $0xc] sm:$0xf] %vm2183_vm2, %v2178_v14  ;;  %v2176_v24 = vpack.c.bf16 %v2168_v45, %v2168_v45  ;;  %v2235_v34 = vsel %vm2233_vm3, %v2168_v45, 0.0  ;;  %2202 = vrot.lane.b32.xlu0 %v2168_v45, %s3140_s23  ;;  %v2140_v18 = vpop.f32.mrf.mxu1 }
 0x140   : > { %v2256_v49 = vmul.f32 %v2168_v45, %v2168_v45  ;;  %v2012_v37 = vpop.f32.mrf.mxu0  ;;  %v2236_v38 = vadd.f32 %v2235_v34, %v2234_v17  ;;  %v2173_v51 = vadd.f32 %v3849_v54, %v2158_v20  ;;  %v2268_v29 = vsel %vm2233_vm3, %v2258_v41, 0.0 }
 0x141   : > { %v2171_v40 = vadd.f32 %v3849_v54, %v2156_v50  ;;  %v2159_v55 = vadd.f32 %v2983_v16, %v2031_v30  ;;  %2185 = vst.msk [vmem:[%s3860_s22 + $0x4] sm:$0xf] %vm2183_vm2, %v2176_v24  ;;  %v2029_v22 = vadd.f32 %v2012_v37, %v1907_v21 }
 0x142   : > { %v2264_v57 = vsel %vm2233_vm3, %v2256_v49, 0.0  ;;  %v2238_v28 = vadd.f32 %v2237_v36, %v2236_v38  ;;  %v2181_v56 = vpack.c.bf16 %v2173_v51, %v2173_v51  ;;  %v2261_v25 = vmul.f32 %v2173_v51, %v2173_v51 }
 0x143   : > { %v2265_v31 = vadd.f32 %v2264_v57, %v2263_v39  ;;  %v2179_v5 = vpack.c.bf16 %v2171_v40, %v2171_v40  ;;  %v2259_v44 = vmul.f32 %v2171_v40, %v2171_v40  ;;  %2208 = vrot.lane.b32.xlu0 %v2171_v40, %s3140_s23  ;;  %v2174_v1 = vadd.f32 %v3849_v54, %v2159_v55 }
 0x144   : > { %2190 = vst.msk [vmem:[%s3860_s22 + $0x18] sm:$0xf] %vm2183_vm2, %v2181_v56  ;;  %v2240_v46 = vadd.f32 %v2239_v42, %v2238_v28  ;;  %v2157_v58 = vadd.f32 %v2140_v18, %v2029_v22  ;;  %v2241_v47 = vsel %vm2233_vm3, %v2171_v40, 0.0  ;;  %v2245_v12 = vsel %vm2233_vm3, %v2173_v51, 0.0 }
 0x145   : > { %v2267_v9 = vadd.f32 %v2266_v35, %v2265_v31  ;;  %2188 = vst.msk [vmem:[%s3860_s22 + $0x10] sm:$0xf] %vm2183_vm2, %v2179_v5  ;;  %v2182_v52 = vpack.c.bf16 %v2174_v1, %v2174_v1  ;;  %v2270_v33 = vsel %vm2233_vm3, %v2259_v44, 0.0  ;;  %v2262_v48 = vmul.f32 %v2174_v1, %v2174_v1 }
 0x146   : > { %v2242_v61 = vadd.f32 %v2241_v47, %v2240_v46  ;;  %v2172_v59 = vadd.f32 %v3849_v54, %v2157_v58  ;;  %v2274_v63 = vsel %vm2233_vm3, %v2261_v25, 0.0  ;;  %v2247_v11 = vsel %vm2233_vm3, %v2174_v1, 0.0 }
 0x147   : > { %v2269_v4 = vadd.f32 %v2268_v29, %v2267_v9  ;;  %2212 = vrot.lane.b32.xlu0 %v2173_v51, %s3140_s23  ;;  %2191 = vst.msk [vmem:[%s3860_s22 + $0x1c] sm:$0xf] %vm2183_vm2, %v2182_v52  ;;  %v2276_v32 = vsel %vm2233_vm3, %v2262_v48, 0.0 }
 0x148   : > { %v2180_v53 = vpack.c.bf16 %v2172_v59, %v2172_v59  ;;  %v2243_v43 = vsel %vm2233_vm3, %v2172_v59, 0.0  ;;  %v2260_v6 = vmul.f32 %v2172_v59, %v2172_v59  ;;  %2210 = vrot.lane.b32.xlu1 %v2172_v59, %s3140_s23 }
 0x149   : > { %v2271_v13 = vadd.f32 %v2270_v33, %v2269_v4  ;;  %v2244_v60 = vadd.f32 %v2243_v43, %v2242_v61 }
 0x14a   : > { %2189 = vst.msk [vmem:[%s3860_s22 + $0x14] sm:$0xf] %vm2183_vm2, %v2180_v53  ;;  %v2272_v54 = vsel %vm2233_vm3, %v2260_v6, 0.0 }
 0x14b   : > { %v2246_v23 = vadd.f32 %v2245_v12, %v2244_v60  ;;  %v2273_v27 = vadd.f32 %v2272_v54, %v2271_v13 }
 0x14c   : > { %2214 = vrot.lane.b32.xlu1 %v2174_v1, %s3140_s23 }
 0x14d   : > { %v2248_v8 = vadd.f32 %v2247_v11, %v2246_v23  ;;  %v2275_v0 = vadd.f32 %v2274_v63, %v2273_v27 }
 0x14f   : > { %v2249_v15 = vrot.slane %v2248_v8, 4  ;;  %v2277_v26 = vadd.f32 %v2276_v32, %v2275_v0 }
 0x151   : > { %v2250_v19 = vadd.f32 %v2249_v15, %v2248_v8  ;;  %v2278_v7 = vrot.slane %v2277_v26, 4 }
 0x153   : > { %v2251_v21 = vrot.slane %v2250_v19, 2  ;;  %v2279_v2 = vadd.f32 %v2278_v7, %v2277_v26 }
 0x155   : > { %v2252_v36 = vadd.f32 %v2251_v21, %v2250_v19  ;;  %v2280_v10 = vrot.slane %v2279_v2, 2 }
 0x157   : > { %v2253_v14 = vrot.slane %v2252_v36, 1  ;;  %v2281_v45 = vadd.f32 %v2280_v10, %v2279_v2 }
 0x159   : > { %v2282_v62 = vrot.slane %v2281_v45, 1  ;;  %v2254_v3 = vadd.f32 %v2253_v14, %v2252_v36 }
 0x15b   : > { %v2283_v20 = vadd.f32 %v2282_v62, %v2281_v45 }
 0x15d   : > { %v2285_v50 = vsel %vm2284_vm4, %v2254_v3, %v2283_v20 }
 0x15e   : > { %2287 = vst.msk [vmem:[%s437_s12] sm:$0x3] %vm2286_vm5, %v2285_v50 }
 0x1ab   : > { %v2205_v30 = vpop.permute.xlu1 %2204 }
 0x1ac   : > { %2227 = vst.msk [vmem:[%s429_s9 + $0x10] sm:$0xff] %vm2224_vm6, %v2205_v30 }
 0x1ad   : > { %v2201_v17 = vpop.permute.xlu0 %2200 }
 0x1ae   : > { %2225 = vst.msk [vmem:[%s429_s9] sm:$0xff] %vm2224_vm6, %v2201_v17 }
 0x1af   : > { %v2207_v24 = vpop.permute.xlu1 %2206 }
 0x1b0   : > { %2228 = vst.msk [vmem:[%s429_s9 + $0x18] sm:$0xff] %vm2224_vm6, %v2207_v24 }
 0x1b1   : > { %v2203_v34 = vpop.permute.xlu0 %2202 }
 0x1b2   : > { %2226 = vst.msk [vmem:[%s429_s9 + $0x8] sm:$0xff] %vm2224_vm6, %v2203_v34 }
 0x1b5   : > { %v2209_v49 = vpop.permute.xlu0 %2208 }
 0x1b6   : > { %2229 = vst.msk [vmem:[%s429_s9 + $0x20] sm:$0xff] %vm2224_vm6, %v2209_v49 }
 0x1b9   : > { %v2213_v16 = vpop.permute.xlu0 %2212 }
 0x1ba   : > { %2231 = vst.msk [vmem:[%s429_s9 + $0x30] sm:$0xff] %vm2224_vm6, %v2213_v16  ;;  %v2211_v37 = vpop.permute.xlu1 %2210 }
 0x1bb   : > { %2230 = vst.msk [vmem:[%s429_s9 + $0x28] sm:$0xff] %vm2224_vm6, %v2211_v37 }
 0x1be   : > { %v2215_v38 = vpop.permute.xlu1 %2214 }
 0x1bf   : > { %2232 = vst.msk [vmem:[%s429_s9 + $0x38] sm:$0xff] %vm2224_vm6, %v2215_v38 }
 0x1c0 PF: > { %s18_s28 = sadd.s32 1, %s3138_s28   ;;  %s3964_s24 = smov %s3130_s26 }
 0x1c1   : > { %p15_p9 = scmp.ge.s32.totalorder %s18_s28, 10   ;;  %s3965_s25 = smov %s3134_s27 }
 0x1c2   : > { %s3966_s26 = smov %s3969_s29  ;;  %s3967_s27 = smov %s3973_s30 }
 0x1c3   :  { %17 = sbr.rel (!%p15_p9) target bundleno = 3 (0x3), region = 111 }

// kernel: res_block_down_forward.5
= control target key start
LH: loop header
LB: loop body
LE: loop exit
PB: predicated region body
PF: predicated region fallthrough
CT: control target
= control target key end

     0   :  { %v31_v0 = vlaneseq  ;;  %s498_s2 = inlined_call_operand.vmem [shape: f32[4,128], index: 2, kind: input, shape index: {}]   ;;  %s499_s0 = inlined_call_operand.vmem [shape: f32[128,128], index: 0, kind: input, shape index: {}]   ;;  %s500_s1 = inlined_call_operand.vmem [shape: f32[128,128], index: 1, kind: input, shape index: {}]   ;;  %s501_s3 = inlined_call_operand.vmem [shape: f32[128,128], index: 3, kind: output, shape index: {}]  }
   0x1   :  { %v14_v2 = vld [vmem:[%s498_s2] sm:$0xf]  ;;  %v16_v9 = vld [vmem:[%s499_s0 + $0x8] sm:$0xff]  ;;  %v17_v11 = vld [vmem:[%s499_s0 + $0x10] sm:$0xff] }
   0x2   :  { %v32_v1 = vshrl.u32 %v31_v0, 7  ;;  %v15_v3 = vld [vmem:[%s499_s0] sm:$0xff]  ;;  %v72_v10 = vld [vmem:[%s500_s1 + $0x8] sm:$0xff]  ;;  %v73_v16 = vld [vmem:[%s500_s1 + $0x10] sm:$0xff] }
   0x3   :  { %v71_v6 = vld [vmem:[%s500_s1] sm:$0xff]  ;;  %v18_v17 = vld [vmem:[%s499_s0 + $0x18] sm:$0xff]  ;;  %v20_v47 = vld [vmem:[%s499_s0 + $0x28] sm:$0xff] }
   0x4   :  { %v33_v4 = vsub.s32 0, %v32_v1  ;;  %v53_v5 = vsub.s32 1, %v32_v1  ;;  %v89_v7 = vsub.s32 2, %v32_v1  ;;  %v109_v8 = vsub.s32 3, %v32_v1  ;;  %v74_v18 = vld [vmem:[%s500_s1 + $0x18] sm:$0xff]  ;;  %v19_v42 = vld [vmem:[%s499_s0 + $0x20] sm:$0xff] }
   0x5   :  { %v75_v46 = vld [vmem:[%s500_s1 + $0x20] sm:$0xff]  ;;  %v76_v48 = vld [vmem:[%s500_s1 + $0x28] sm:$0xff]  ;;  %v21_v59 = vld [vmem:[%s499_s0 + $0x30] sm:$0xff] }
   0x6   :  { %v297_v12 = vrot.slane %v14_v2, %v33_v4  ;;  %v299_v13 = vrot.slane %v14_v2, %v53_v5  ;;  %v301_v14 = vrot.slane %v14_v2, %v89_v7  ;;  %v303_v15 = vrot.slane %v14_v2, %v109_v8  ;;  %v77_v60 = vld [vmem:[%s500_s1 + $0x30] sm:$0xff]  ;;  %v22_v8 = vld [vmem:[%s499_s0 + $0x38] sm:$0xff] }
   0x8   :  { %v35_v19 = vmul.f32 %v297_v12, %v15_v3  ;;  %v91_v20 = vmul.f32 %v301_v14, %v71_v6  ;;  %v36_v21 = vmul.f32 %v297_v12, %v16_v9  ;;  %v92_v22 = vmul.f32 %v301_v14, %v72_v10 }
   0x9   :  { %v37_v23 = vmul.f32 %v297_v12, %v17_v11  ;;  %v93_v24 = vmul.f32 %v301_v14, %v73_v16  ;;  %v38_v25 = vmul.f32 %v297_v12, %v18_v17  ;;  %v94_v26 = vmul.f32 %v301_v14, %v74_v18 }
   0xa   :  { %v55_v27 = vadd.f32 %v299_v13, %v35_v19  ;;  %v111_v28 = vadd.f32 %v303_v15, %v91_v20  ;;  %v56_v29 = vadd.f32 %v299_v13, %v36_v21  ;;  %v112_v30 = vadd.f32 %v303_v15, %v92_v22  ;;  %v78_v22 = vld [vmem:[%s500_s1 + $0x38] sm:$0xff] }
   0xb   :  { %v57_v31 = vadd.f32 %v299_v13, %v37_v23  ;;  %v113_v32 = vadd.f32 %v303_v15, %v93_v24  ;;  %v58_v33 = vadd.f32 %v299_v13, %v38_v25  ;;  %v114_v34 = vadd.f32 %v303_v15, %v94_v26  ;;  %v23_v23 = vld [vmem:[%s499_s0 + $0x40] sm:$0xff] }
   0xc   :  { %vm127_vm0 = vcmp.gt.f32.partialorder %v55_v27, 0.0  ;;  %v143_v35 = vmul.f32 0.2, %v55_v27  ;;  %vm175_vm1 = vcmp.gt.f32.partialorder %v111_v28, 0.0  ;;  %v191_v36 = vmul.f32 0.2, %v111_v28 }
   0xd   :  { %vm128_vm2 = vcmp.gt.f32.partialorder %v56_v29, 0.0  ;;  %v144_v37 = vmul.f32 0.2, %v56_v29  ;;  %vm176_vm3 = vcmp.gt.f32.partialorder %v112_v30, 0.0  ;;  %v192_v38 = vmul.f32 0.2, %v112_v30 }
   0xe   :  { %v159_v39 = vsel %vm127_vm0, %v55_v27, %v143_v35  ;;  %v207_v40 = vsel %vm175_vm1, %v111_v28, %v191_v36  ;;  %vm129_vm4 = vcmp.gt.f32.partialorder %v57_v31, 0.0  ;;  %v145_v41 = vmul.f32 0.2, %v57_v31  ;;  %v79_v24 = vld [vmem:[%s500_s1 + $0x40] sm:$0xff]  ;;  %v24_v28 = vld [vmem:[%s499_s0 + $0x48] sm:$0xff] }
   0xf   :  { %v223_v43 = vadd.f32 %v207_v40, %v159_v39  ;;  %v160_v44 = vsel %vm128_vm2, %v56_v29, %v144_v37  ;;  %v208_v45 = vsel %vm176_vm3, %v112_v30, %v192_v38  ;;  %vm177_vm5 = vcmp.gt.f32.partialorder %v113_v32, 0.0  ;;  %v80_v36 = vld [vmem:[%s500_s1 + $0x48] sm:$0xff]  ;;  %v25_v37 = vld [vmem:[%s499_s0 + $0x50] sm:$0xff] }
  0x10   :  { %v224_v49 = vadd.f32 %v208_v45, %v160_v44  ;;  %v161_v50 = vsel %vm129_vm4, %v57_v31, %v145_v41  ;;  %v193_v51 = vmul.f32 0.2, %v113_v32  ;;  %vm130_vm6 = vcmp.gt.f32.partialorder %v58_v33, 0.0 }
  0x11   :  { %239 = vst [vmem:[%s501_s3] sm:$0xff] %v223_v43  ;;  %v146_v52 = vmul.f32 0.2, %v58_v33  ;;  %vm178_vm7 = vcmp.gt.f32.partialorder %v114_v34, 0.0  ;;  %v194_v53 = vmul.f32 0.2, %v114_v34  ;;  %v39_v54 = vmul.f32 %v297_v12, %v19_v42 }
  0x12   :  { %240 = vst [vmem:[%s501_s3 + $0x8] sm:$0xff] %v224_v49  ;;  %v209_v55 = vsel %vm177_vm5, %v113_v32, %v193_v51  ;;  %v95_v56 = vmul.f32 %v301_v14, %v75_v46  ;;  %v40_v57 = vmul.f32 %v297_v12, %v20_v47  ;;  %v96_v58 = vmul.f32 %v301_v14, %v76_v48 }
  0x13   :  { %v225_v61 = vadd.f32 %v209_v55, %v161_v50  ;;  %v162_v62 = vsel %vm130_vm6, %v58_v33, %v146_v52  ;;  %v210_v63 = vsel %vm178_vm7, %v114_v34, %v194_v53  ;;  %v59_v0 = vadd.f32 %v299_v13, %v39_v54  ;;  %v81_v53 = vld [vmem:[%s500_s1 + $0x50] sm:$0xff] }
  0x14   :  { %v226_v1 = vadd.f32 %v210_v63, %v162_v62  ;;  %v115_v2 = vadd.f32 %v303_v15, %v95_v56  ;;  %v60_v3 = vadd.f32 %v299_v13, %v40_v57  ;;  %v116_v4 = vadd.f32 %v303_v15, %v96_v58  ;;  %v26_v58 = vld [vmem:[%s499_s0 + $0x58] sm:$0xff]  ;;  %v27_v63 = vld [vmem:[%s499_s0 + $0x60] sm:$0xff] }
  0x15   :  { %241 = vst [vmem:[%s501_s3 + $0x10] sm:$0xff] %v225_v61  ;;  %vm131_vm8 = vcmp.gt.f32.partialorder %v59_v0, 0.0  ;;  %v147_v5 = vmul.f32 0.2, %v59_v0  ;;  %v41_v6 = vmul.f32 %v297_v12, %v21_v59  ;;  %v97_v7 = vmul.f32 %v301_v14, %v77_v60  ;;  %v82_v59 = vld [vmem:[%s500_s1 + $0x58] sm:$0xff] }
  0x16   :  { %242 = vst [vmem:[%s501_s3 + $0x18] sm:$0xff] %v226_v1  ;;  %vm179_vm9 = vcmp.gt.f32.partialorder %v115_v2, 0.0  ;;  %v195_v9 = vmul.f32 0.2, %v115_v2  ;;  %vm132_vm10 = vcmp.gt.f32.partialorder %v60_v3, 0.0  ;;  %vm180_vm11 = vcmp.gt.f32.partialorder %v116_v4, 0.0 }
  0x17   :  { %v148_v10 = vmul.f32 0.2, %v60_v3  ;;  %v163_v11 = vsel %vm131_vm8, %v59_v0, %v147_v5  ;;  %v196_v16 = vmul.f32 0.2, %v116_v4  ;;  %v61_v17 = vadd.f32 %v299_v13, %v41_v6  ;;  %v83_v0 = vld [vmem:[%s500_s1 + $0x60] sm:$0xff] }
  0x18   :  { %v211_v18 = vsel %vm179_vm9, %v115_v2, %v195_v9  ;;  %v117_v20 = vadd.f32 %v303_v15, %v97_v7  ;;  %v42_v21 = vmul.f32 %v297_v12, %v22_v8  ;;  %v98_v33 = vmul.f32 %v301_v14, %v78_v22 }
  0x19   :  { %v164_v19 = vsel %vm132_vm10, %v60_v3, %v148_v10  ;;  %v227_v25 = vadd.f32 %v211_v18, %v163_v11  ;;  %v212_v26 = vsel %vm180_vm11, %v116_v4, %v196_v16  ;;  %vm133_vm12 = vcmp.gt.f32.partialorder %v61_v17, 0.0  ;;  %v28_v4 = vld [vmem:[%s499_s0 + $0x68] sm:$0xff] }
  0x1a   :  { %v149_v27 = vmul.f32 0.2, %v61_v17  ;;  %v228_v29 = vadd.f32 %v212_v26, %v164_v19  ;;  %vm181_vm13 = vcmp.gt.f32.partialorder %v117_v20, 0.0  ;;  %v197_v30 = vmul.f32 0.2, %v117_v20 }
  0x1b   :  { %v62_v31 = vadd.f32 %v299_v13, %v42_v21  ;;  %243 = vst [vmem:[%s501_s3 + $0x20] sm:$0xff] %v227_v25  ;;  %v43_v34 = vmul.f32 %v297_v12, %v23_v23  ;;  %v99_v35 = vmul.f32 %v301_v14, %v79_v24  ;;  %v44_v40 = vmul.f32 %v297_v12, %v24_v28  ;;  %v84_v24 = vld [vmem:[%s500_s1 + $0x68] sm:$0xff]  ;;  %v29_v25 = vld [vmem:[%s499_s0 + $0x70] sm:$0xff] }
  0x1c   :  { %v165_v32 = vsel %vm133_vm12, %v61_v17, %v149_v27  ;;  %244 = vst [vmem:[%s501_s3 + $0x28] sm:$0xff] %v228_v29  ;;  %v213_v38 = vsel %vm181_vm13, %v117_v20, %v197_v30  ;;  %v118_v42 = vadd.f32 %v303_v15, %v98_v33  ;;  %v100_v47 = vmul.f32 %v301_v14, %v80_v36  ;;  %v85_v30 = vld [vmem:[%s500_s1 + $0x70] sm:$0xff] }
  0x1d   :  { %vm134_vm14 = vcmp.gt.f32.partialorder %v62_v31, 0.0  ;;  %v150_v39 = vmul.f32 0.2, %v62_v31  ;;  %v229_v41 = vadd.f32 %v213_v38, %v165_v32  ;;  %v63_v43 = vadd.f32 %v299_v13, %v43_v34 }
  0x1e   :  { %v119_v44 = vadd.f32 %v303_v15, %v99_v35  ;;  %v64_v46 = vadd.f32 %v299_v13, %v44_v40  ;;  %v45_v48 = vmul.f32 %v297_v12, %v25_v37  ;;  %vm182_vm15 = vcmp.gt.f32.partialorder %v118_v42, 0.0  ;;  %v86_v40 = vld [vmem:[%s500_s1 + $0x78] sm:$0xff] }
  0x1f   :  { %v166_v45 = vsel %vm134_vm14, %v62_v31, %v150_v39  ;;  %245 = vst [vmem:[%s501_s3 + $0x30] sm:$0xff] %v229_v41  ;;  %v198_v49 = vmul.f32 0.2, %v118_v42  ;;  %vm135_vm0 = vcmp.gt.f32.partialorder %v63_v43, 0.0  ;;  %v151_v50 = vmul.f32 0.2, %v63_v43 }
  0x20   :  { %vm183_vm1 = vcmp.gt.f32.partialorder %v119_v44, 0.0  ;;  %v199_v51 = vmul.f32 0.2, %v119_v44  ;;  %v120_v52 = vadd.f32 %v303_v15, %v100_v47  ;;  %vm136_vm2 = vcmp.gt.f32.partialorder %v64_v46, 0.0  ;;  %v30_v31 = vld [vmem:[%s499_s0 + $0x78] sm:$0xff] }
  0x21   :  { %v214_v54 = vsel %vm182_vm15, %v118_v42, %v198_v49  ;;  %v167_v55 = vsel %vm135_vm0, %v63_v43, %v151_v50  ;;  %v152_v56 = vmul.f32 0.2, %v64_v46  ;;  %v65_v57 = vadd.f32 %v299_v13, %v45_v48 }
  0x22   :  { %v230_v60 = vadd.f32 %v214_v54, %v166_v45  ;;  %v215_v61 = vsel %vm183_vm1, %v119_v44, %v199_v51  ;;  %vm184_vm3 = vcmp.gt.f32.partialorder %v120_v52, 0.0  ;;  %v200_v62 = vmul.f32 0.2, %v120_v52 }
  0x23   :  { %v231_v1 = vadd.f32 %v215_v61, %v167_v55  ;;  %v168_v2 = vsel %vm136_vm2, %v64_v46, %v152_v56  ;;  %v101_v3 = vmul.f32 %v301_v14, %v81_v53  ;;  %vm137_vm4 = vcmp.gt.f32.partialorder %v65_v57, 0.0 }
  0x24   :  { %246 = vst [vmem:[%s501_s3 + $0x38] sm:$0xff] %v230_v60  ;;  %v216_v5 = vsel %vm184_vm3, %v120_v52, %v200_v62  ;;  %v153_v6 = vmul.f32 0.2, %v65_v57  ;;  %v46_v7 = vmul.f32 %v297_v12, %v26_v58  ;;  %v102_v8 = vmul.f32 %v301_v14, %v82_v59 }
  0x25   :  { %247 = vst [vmem:[%s501_s3 + $0x40] sm:$0xff] %v231_v1  ;;  %v232_v9 = vadd.f32 %v216_v5, %v168_v2  ;;  %v121_v10 = vadd.f32 %v303_v15, %v101_v3  ;;  %v47_v11 = vmul.f32 %v297_v12, %v27_v63  ;;  %v103_v16 = vmul.f32 %v301_v14, %v83_v0 }
  0x26   :  { %v169_v17 = vsel %vm137_vm4, %v65_v57, %v153_v6  ;;  %v66_v18 = vadd.f32 %v299_v13, %v46_v7  ;;  %v122_v19 = vadd.f32 %v303_v15, %v102_v8  ;;  %v48_v20 = vmul.f32 %v297_v12, %v28_v4 }
  0x27   :  { %248 = vst [vmem:[%s501_s3 + $0x48] sm:$0xff] %v232_v9  ;;  %vm185_vm5 = vcmp.gt.f32.partialorder %v121_v10, 0.0  ;;  %v201_v21 = vmul.f32 0.2, %v121_v10  ;;  %v67_v22 = vadd.f32 %v299_v13, %v47_v11  ;;  %v123_v23 = vadd.f32 %v303_v15, %v103_v16 }
  0x28   :  { %vm138_vm6 = vcmp.gt.f32.partialorder %v66_v18, 0.0  ;;  %v154_v26 = vmul.f32 0.2, %v66_v18  ;;  %vm186_vm7 = vcmp.gt.f32.partialorder %v122_v19, 0.0  ;;  %v202_v27 = vmul.f32 0.2, %v122_v19 }
  0x29   :  { %v217_v28 = vsel %vm185_vm5, %v121_v10, %v201_v21  ;;  %vm139_vm8 = vcmp.gt.f32.partialorder %v67_v22, 0.0  ;;  %v155_v29 = vmul.f32 0.2, %v67_v22  ;;  %vm187_vm9 = vcmp.gt.f32.partialorder %v123_v23, 0.0 }
  0x2a   :  { %v233_v32 = vadd.f32 %v217_v28, %v169_v17  ;;  %v170_v33 = vsel %vm138_vm6, %v66_v18, %v154_v26  ;;  %v218_v34 = vsel %vm186_vm7, %v122_v19, %v202_v27  ;;  %v203_v35 = vmul.f32 0.2, %v123_v23 }
  0x2b   :  { %v234_v36 = vadd.f32 %v218_v34, %v170_v33  ;;  %v171_v37 = vsel %vm139_vm8, %v67_v22, %v155_v29  ;;  %v68_v38 = vadd.f32 %v299_v13, %v48_v20  ;;  %v104_v39 = vmul.f32 %v301_v14, %v84_v24 }
  0x2c   :  { %249 = vst [vmem:[%s501_s3 + $0x50] sm:$0xff] %v233_v32  ;;  %v219_v41 = vsel %vm187_vm9, %v123_v23, %v203_v35  ;;  %v49_v42 = vmul.f32 %v297_v12, %v29_v25  ;;  %v105_v43 = vmul.f32 %v301_v14, %v85_v30  ;;  %v50_v44 = vmul.f32 %v297_v12, %v30_v31 }
  0x2d   :  { %250 = vst [vmem:[%s501_s3 + $0x58] sm:$0xff] %v234_v36  ;;  %v235_v45 = vadd.f32 %v219_v41, %v171_v37  ;;  %v124_v46 = vadd.f32 %v303_v15, %v104_v39  ;;  %vm140_vm10 = vcmp.gt.f32.partialorder %v68_v38, 0.0  ;;  %v156_v47 = vmul.f32 0.2, %v68_v38 }
  0x2e   :  { %v69_v48 = vadd.f32 %v299_v13, %v49_v42  ;;  %v125_v49 = vadd.f32 %v303_v15, %v105_v43  ;;  %v70_v50 = vadd.f32 %v299_v13, %v50_v44  ;;  %v106_v51 = vmul.f32 %v301_v14, %v86_v40 }
  0x2f   :  { %251 = vst [vmem:[%s501_s3 + $0x60] sm:$0xff] %v235_v45  ;;  %v172_v12 = vsel %vm140_vm10, %v68_v38, %v156_v47  ;;  %vm188_vm11 = vcmp.gt.f32.partialorder %v124_v46, 0.0  ;;  %v204_v52 = vmul.f32 0.2, %v124_v46 }
  0x30   :  { %vm141_vm12 = vcmp.gt.f32.partialorder %v69_v48, 0.0  ;;  %v157_v53 = vmul.f32 0.2, %v69_v48  ;;  %vm189_vm13 = vcmp.gt.f32.partialorder %v125_v49, 0.0  ;;  %v205_v54 = vmul.f32 0.2, %v125_v49 }
  0x31   :  { %v220_v55 = vsel %vm188_vm11, %v124_v46, %v204_v52  ;;  %v126_v56 = vadd.f32 %v303_v15, %v106_v51  ;;  %vm142_vm14 = vcmp.gt.f32.partialorder %v70_v50, 0.0  ;;  %v158_v57 = vmul.f32 0.2, %v70_v50 }
  0x32   :  { %v236_v58 = vadd.f32 %v220_v55, %v172_v12  ;;  %v173_v13 = vsel %vm141_vm12, %v69_v48, %v157_v53  ;;  %v221_v59 = vsel %vm189_vm13, %v125_v49, %v205_v54 }
  0x33   :  { %v237_v14 = vadd.f32 %v221_v59, %v173_v13  ;;  %v174_v60 = vsel %vm142_vm14, %v70_v50, %v158_v57  ;;  %vm190_vm15 = vcmp.gt.f32.partialorder %v126_v56, 0.0  ;;  %v206_v61 = vmul.f32 0.2, %v126_v56 }
  0x34   :  { %252 = vst [vmem:[%s501_s3 + $0x68] sm:$0xff] %v236_v58 }
  0x35   :  { %253 = vst [vmem:[%s501_s3 + $0x70] sm:$0xff] %v237_v14  ;;  %v222_v62 = vsel %vm190_vm15, %v126_v56, %v206_v61 }
  0x36   :  { %v238_v63 = vadd.f32 %v222_v62, %v174_v60 }
  0x38   :  { %254 = vst [vmem:[%s501_s3 + $0x78] sm:$0xff] %v238_v63 }

// kernel: res_block_down_forward.4
= control target key start
LH: loop header
LB: loop body
LE: loop exit
PB: predicated region body
PF: predicated region fallthrough
CT: control target
= control target key end

     0   :  { %s4770_s27 = smov 0   ;;  %s4772_s28 = smov 0   ;;  %s5965_s0 = inlined_call_operand.vmem [shape: bf16[8,8,8,16], index: 0, kind: input, shape index: {}, may-alias: {0,1,2}]   ;;  %s5966_s1 = inlined_call_operand.vmem [shape: bf16[8,8,8,16], index: 1, kind: input, shape index: {}, may-alias: {0,1,2}]   ;;  %s5967_s2 = inlined_call_operand.vmem [shape: bf16[8,8,8,16], index: 2, kind: input, shape index: {}, may-alias: {0,1,2}]   ;;  %s5968_s3 = inlined_call_operand.vmem [shape: bf16[3,9,16,32], index: 3, kind: input, shape index: {}]   ;;  %s5969_s4 = inlined_call_operand.vmem [shape: f32[1,32], index: 4, kind: input, shape index: {}]   ;;  %s5970_s5 = inlined_call_operand.vmem [shape: f32[1,16], index: 5, kind: input, shape index: {}]   ;;  %s5971_s6 = inlined_call_operand.vmem [shape: f32[1,16], index: 6, kind: input, shape index: {}]   ;;  %s5972_s7 = inlined_call_operand.vmem [shape: f32[8,64,32], index: 7, kind: output, shape index: {0}]   ;;  %s5973_s8 = inlined_call_operand.vmem [shape: f32[8,2,32], index: 8, kind: output, shape index: {1}]  }
   0x1   :  { %s4774_s29 = smov 0   ;;  %s4776_s30 = smov 0  }
   0x2   :  { %s4778_s9 = smov 0  }
   0x3 LB: > { %s28_s10 = sadd.s32 1, %s4714_s29  ;;  %s31_s11 = sadd.s32 1, %s4718_s30  ;;  %s4722_s9 = sphi %s4778_s9, %s19_s9   ;;  %s4718_s30 = sphi %s4776_s30, %s6047_s30   ;;  %s4714_s29 = sphi %s4774_s29, %s6046_s29   ;;  %s4710_s28 = sphi %s4772_s28, %s6045_s28   ;;  %s4706_s27 = sphi %s4770_s27, %s6044_s27  }
   0x4   : > { %p29_p0 = scmp.ge.s32.totalorder %s28_s10, 4  ;;  %p3905_p1 = scmp.ge.s32.totalorder %s4722_s9, 1 }
   0x5   : > { %p385_p2 = scmp.lt.s32.totalorder %s4722_s9, 9 }
   0x6   : > { %s6049_s10 = smov (%p29_p0, %s28_s10), 0  ;;  %s6051_s11 = smov (!%p29_p0, %s31_s11), %s4718_s30 }
   0x7   : > { %p386_p3 = pnand %p3905_p1, %p385_p2  ;;  %p33_p4 = scmp.ge.s32.totalorder %s6051_s11, 2 }
   0x9   : > { %s6053_s11 = smov (%p33_p4, %s6051_s11), 0  ;;  %389 = sbr.rel (%p386_p3) target bundleno = 506 (0x1fa), region = 48 }
   0xe   : > { %v4657_v0 = vld [vmem:[%s5968_s3 + $0x8] sm:$0xff]   ;;  %s4806_s14 = sadd.s32 4294967295, %s4706_s27  ;;  %vm530_vm0 = vcmask 130048   ;;  %vm532_vm1 = vcmask 123904   ;;  %v4813_v1 = vld [vmem:[%s5968_s3] sm:$0xff]   ;;  %s4815_s17 = sshll.u32 %s4710_s28, 2 }
   0xf   : > { %p458_p5 = scmp.gt.s32.totalorder %s4806_s14, 0  ;;  %p3906_p6 = scmp.lt.s32.totalorder %s4806_s14, 3  ;;  %4614 = vmatprep.subr.bf16.mxu1 %v4657_v0  ;;  %4344 = vmatprep.subr.bf16.mxu0 %v4657_v0  ;;  %v4724_v2 = vmov 0.0   ;;  %v4844_v3 = vld [vmem:[%s5968_s3 + $0x10] sm:$0xff]   ;;  %v4871_v4 = vld [vmem:[%s5970_s5] ss:$0 sm:$0xff] }
  0x10   : > { %p476_p7 = scmp.gt.s32.totalorder %s4706_s27, 0  ;;  %531 = vst.msk [vmem:[#allocation2] sm:$0xff] %vm530_vm0, %v4724_v2  ;;  %534 = vst.msk [vmem:[#allocation2 + $0x10] sm:$0xff] %vm530_vm0, %v4724_v2  ;;  %4615 = vmatpush3.bf16.msra.mxu1 %v4657_v0  ;;  %4345 = vmatpush3.bf16.msra.mxu0 %v4657_v0  ;;  %p3914_p8 = scmp.lt.s32.totalorder %s4706_s27, 3  ;;  %v4883_v7 = vld [vmem:[%s5971_s6] ss:$0 sm:$0xff] }
  0x11   : > { %533 = vst.msk [vmem:[#allocation2 + $0x8] sm:$0x3] %vm532_vm1, %v4724_v2  ;;  %535 = vst.msk [vmem:[#allocation2 + $0x18] sm:$0x3] %vm532_vm1, %v4724_v2  ;;  %s459_s18 = scalar_select %p458_p5, %s4806_s14, 0  ;;  %4354 = vmatprep.subr.bf16.mxu1 %v4813_v1  ;;  %4364 = vmatprep.subr.bf16.mxu0 %v4844_v3 }
  0x12   : > { %536 = vst.msk [vmem:[#allocation2 + $0x20] sm:$0xff] %vm530_vm0, %v4724_v2  ;;  %538 = vst.msk [vmem:[#allocation2 + $0x30] sm:$0xff] %vm530_vm0, %v4724_v2  ;;  %s477_s21 = scalar_select %p476_p7, %s4706_s27, 0 }
  0x13   : > { %537 = vst.msk [vmem:[#allocation2 + $0x28] sm:$0x3] %vm532_vm1, %v4724_v2  ;;  %539 = vst.msk [vmem:[#allocation2 + $0x38] sm:$0x3] %vm532_vm1, %v4724_v2  ;;  %s6055_s18 = smov (!%p3906_p6, %s459_s18), 3  ;;  %s4855_s22 = sadd.s32 1, %s4706_s27 }
  0x14   : > { %540 = vst.msk [vmem:[#allocation2 + $0x40] sm:$0xff] %vm530_vm0, %v4724_v2  ;;  %542 = vst.msk [vmem:[#allocation2 + $0x50] sm:$0xff] %vm530_vm0, %v4724_v2  ;;  %s463_s23 = sadd.s32 %s6055_s18, %s4815_s17  ;;  %p494_p9 = scmp.gt.s32.totalorder %s4855_s22, 0 }
  0x15   : > { %541 = vst.msk [vmem:[#allocation2 + $0x48] sm:$0x3] %vm532_vm1, %v4724_v2  ;;  %543 = vst.msk [vmem:[#allocation2 + $0x58] sm:$0x3] %vm532_vm1, %v4724_v2  ;;  %p464_p10 = scmp.lt.s32.totalorder %s463_s23, 7  ;;  %p3922_p11 = scmp.lt.s32.totalorder %s4855_s22, 3 }
  0x16   : > { %544 = vst.msk [vmem:[#allocation2 + $0x60] sm:$0xff] %vm530_vm0, %v4724_v2  ;;  %546 = vst.msk [vmem:[#allocation2 + $0x70] sm:$0xff] %vm530_vm0, %v4724_v2  ;;  %s6057_s21 = smov (!%p3914_p8, %s477_s21), 3  ;;  %p555_p12 = scmp.ge.s32.totalorder %s4806_s14, 0 }
  0x17   : > { %545 = vst.msk [vmem:[#allocation2 + $0x68] sm:$0x3] %vm532_vm1, %v4724_v2  ;;  %547 = vst.msk [vmem:[#allocation2 + $0x78] sm:$0x3] %vm532_vm1, %v4724_v2  ;;  %s6059_s23 = smov (!%p464_p10, %s463_s23), 7  ;;  %s481_s24 = sadd.s32 %s6057_s21, %s4815_s17 }
  0x18   : > { %548 = vst.msk [vmem:[#allocation2 + $0x80] sm:$0xff] %vm530_vm0, %v4724_v2  ;;  %550 = vst.msk [vmem:[#allocation2 + $0x90] sm:$0xff] %vm530_vm0, %v4724_v2  ;;  %s4144_s25 = sshll.u32 %s6059_s23, 5  ;;  %p482_p13 = scmp.lt.s32.totalorder %s481_s24, 7  ;;  %v4924_v31 = vld [vmem:[#allocation2 + $0x1] sm:$0xff] }
  0x19   : > { %549 = vst.msk [vmem:[#allocation2 + $0x88] sm:$0x3] %vm532_vm1, %v4724_v2  ;;  %551 = vst.msk [vmem:[#allocation2 + $0x98] sm:$0x3] %vm532_vm1, %v4724_v2  ;;  %s4865_s12 = scalar_lea.vmem %s5965_s0, %s4144_s25  ;;  %p556_p0 = scmp.le.s32.totalorder %s4806_s14, 3 }
  0x1a   : > { %s6061_s24 = smov (!%p482_p13, %s481_s24), 7  ;;  %v4874_v5 = vld [vmem:[%s4865_s12] sm:$0xff]   ;;  %p1584_p2 = scmp.ge.s32.totalorder %s4706_s27, 0  ;;  %v4200_v30 = vld [vmem:[%s4865_s12 + $0x8] sm:$0xff]   ;;  %v4201_v33 = vld [vmem:[%s4865_s12 + $0x10] sm:$0xff]  }
  0x1b   : > { %s495_s16 = scalar_select %p494_p9, %s4855_s22, 0  ;;  %v4154_v6 = vunpack.c.l.bf16 %v4874_v5  ;;  %v4202_v34 = vld [vmem:[%s4865_s12 + $0x18] sm:$0xff]   ;;  %v4155_v38 = vunpack.c.h.bf16 %v4874_v5  ;;  %v4158_v39 = vunpack.c.l.bf16 %v4200_v30  ;;  %v4159_v40 = vunpack.c.h.bf16 %v4200_v30 }
  0x1c   : > { %s4147_s18 = sshll.u32 %s6061_s24, 5  ;;  %p4885_p1 = pnand %p556_p0, %p555_p12  ;;  %v4162_v42 = vunpack.c.l.bf16 %v4201_v33  ;;  %v4163_v43 = vunpack.c.h.bf16 %v4201_v33  ;;  %v4166_v44 = vunpack.c.l.bf16 %v4202_v34  ;;  %v4167_v49 = vunpack.c.h.bf16 %v4202_v34 }
  0x1d   : > { %s486_s25 = scalar_lea.vmem %s5966_s1, %s4147_s18  ;;  %v581_v8 = vmul.f32 %v4154_v6, %v4871_v4  ;;  %s6063_s16 = smov (!%p3922_p11, %s495_s16), 3  ;;  %v584_v53 = vmul.f32 %v4159_v40, %v4871_v4  ;;  %v582_v54 = vmul.f32 %v4155_v38, %v4871_v4  ;;  %v583_v55 = vmul.f32 %v4158_v39, %v4871_v4 }
  0x1e   : > { %v4895_v9 = vld [vmem:[%s486_s25] sm:$0xff]   ;;  %v4203_v10 = vld [vmem:[%s486_s25 + $0x8] sm:$0xff]   ;;  %s3937_s24 = scalar_select %p4885_p1, 0.0, 1.0  ;;  %v4204_v17 = vld [vmem:[%s486_s25 + $0x10] sm:$0xff]   ;;  %v585_v57 = vmul.f32 %v4162_v42, %v4871_v4  ;;  %v586_v58 = vmul.f32 %v4163_v43, %v4871_v4  ;;  %v587_v59 = vmul.f32 %v4166_v44, %v4871_v4  ;;  %v4956_v61 = vmul.f32 %v4167_v49, %v4871_v4 }
  0x1f   : > { %v595_v11 = vadd.f32 %v4883_v7, %v581_v8  ;;  %v4171_v12 = vunpack.c.h.bf16 %v4895_v9  ;;  %v4174_v13 = vunpack.c.l.bf16 %v4203_v10  ;;  %s499_s26 = sadd.s32 %s6063_s16, %s4815_s17  ;;  %p1585_p4 = scmp.le.s32.totalorder %s4706_s27, 3  ;;  %v4175_v16 = vunpack.c.h.bf16 %v4203_v10  ;;  %v4908_v21 = vld [vmem:[%s486_s25 + $0x18] sm:$0xff]  }
  0x20   : > { %p500_p3 = scmp.lt.s32.totalorder %s499_s26, 7  ;;  %v4903_v15 = vstv %s3937_s24  ;;  %v4178_v23 = vunpack.c.l.bf16 %v4204_v17  ;;  %v4179_v27 = vunpack.c.h.bf16 %v4204_v17  ;;  %v4182_v28 = vunpack.c.l.bf16 %v4908_v21  ;;  %p2617_p6 = scmp.ge.s32.totalorder %s4855_s22, 0 }
  0x21   : > { %vm603_vm2 = vcmp.gt.f32.partialorder %v595_v11, 0.0  ;;  %v611_v14 = vmul.f32 0.2, %v595_v11  ;;  %v1605_v18 = vmul.f32 %v4171_v12, %v4871_v4  ;;  %v1606_v19 = vmul.f32 %v4174_v13, %v4871_v4  ;;  %p4913_p5 = pnand %p1585_p4, %p1584_p2  ;;  %p2618_p7 = scmp.le.s32.totalorder %s4855_s22, 3 }
  0x22   : > { %s6065_s26 = smov (!%p500_p3, %s499_s26), 7  ;;  %v1607_v24 = vmul.f32 %v4175_v16, %v4871_v4  ;;  %v1608_v29 = vmul.f32 %v4178_v23, %v4871_v4  ;;  %v1609_v35 = vmul.f32 %v4179_v27, %v4871_v4  ;;  %v1610_v36 = vmul.f32 %v4182_v28, %v4871_v4  ;;  %s513_s23 = sadd.s32 %s4706_s27, %s4815_s17 }
  0x23   : > { %v619_v20 = vsel %vm603_vm2, %v595_v11, %v611_v14  ;;  %v1613_v25 = vadd.f32 %v4883_v7, %v1605_v18  ;;  %v1614_v26 = vadd.f32 %v4883_v7, %v1606_v19  ;;  %s4150_s13 = sshll.u32 %s6065_s26, 5  ;;  %v4170_v60 = vunpack.c.l.bf16 %v4895_v9  ;;  %p5027_p8 = pnand %p2618_p7, %p2617_p6 }
  0x24   : > { %v629_v22 = vmul.f32 %v4903_v15, %v619_v20  ;;  %v1615_v32 = vadd.f32 %v4883_v7, %v1607_v24  ;;  %s3999_s15 = scalar_select %p4913_p5, 0.0, 1.0  ;;  %v1616_v41 = vadd.f32 %v4883_v7, %v1608_v29  ;;  %v1617_v51 = vadd.f32 %v4883_v7, %v1609_v35 }
  0x25   : > { %vm1621_vm3 = vcmp.gt.f32.partialorder %v1613_v25, 0.0  ;;  %vm1622_vm4 = vcmp.gt.f32.partialorder %v1614_v26, 0.0  ;;  %s4934_s19 = scalar_lea.vmem %s5967_s2, %s4150_s13  ;;  %v1629_v37 = vmul.f32 0.2, %v1613_v25  ;;  %v1630_v46 = vmul.f32 0.2, %v1614_v26 }
  0x26   : > { %638 = vst.msk [vmem:[#allocation2 + $0x11] sm:$0xff] %vm530_vm0, %v629_v22  ;;  %v1631_v47 = vmul.f32 0.2, %v1615_v32  ;;  %v4185_v48 = vld [vmem:[%s4934_s19] sm:$0xff]   ;;  %v1618_v52 = vadd.f32 %v4883_v7, %v1610_v36  ;;  %v1632_v56 = vmul.f32 0.2, %v1616_v41  ;;  %v4183_v62 = vunpack.c.h.bf16 %v4908_v21 }
  0x27   : > { %vm1623_vm5 = vcmp.gt.f32.partialorder %v1615_v32, 0.0  ;;  %vm1624_vm6 = vcmp.gt.f32.partialorder %v1616_v41, 0.0  ;;  %vm1625_vm7 = vcmp.gt.f32.partialorder %v1617_v51, 0.0  ;;  %v4186_v63 = vunpack.c.l.bf16 %v4185_v48  ;;  %v4206_v0 = vld [vmem:[%s4934_s19 + $0x8] sm:$0xff]   ;;  %v4207_v2 = vld [vmem:[%s4934_s19 + $0x10] sm:$0xff]   ;;  %v4208_v9 = vld [vmem:[%s4934_s19 + $0x18] sm:$0xff]  }
  0x28   : > { %vm1626_vm8 = vcmp.gt.f32.partialorder %v1618_v52, 0.0  ;;  %v1633_v5 = vmul.f32 0.2, %v1617_v51  ;;  %v1634_v6 = vmul.f32 0.2, %v1618_v52  ;;  %v1637_v8 = vsel %vm1621_vm3, %v1613_v25, %v1629_v37  ;;  %p514_p9 = scmp.lt.s32.totalorder %s513_s23, 7 }
  0x29   : > { %v1638_v10 = vsel %vm1622_vm4, %v1614_v26, %v1630_v46  ;;  %v1639_v11 = vsel %vm1623_vm5, %v1615_v32, %v1631_v47  ;;  %v1640_v12 = vsel %vm1624_vm6, %v1616_v41, %v1632_v56  ;;  %v4967_v13 = vstv %s3999_s15  ;;  %s4063_s22 = scalar_select %p5027_p8, 0.0, 1.0 }
  0x2a   : > { %v4187_v14 = vunpack.c.h.bf16 %v4185_v48  ;;  %v4190_v16 = vunpack.c.l.bf16 %v4206_v0  ;;  %v4191_v17 = vunpack.c.h.bf16 %v4206_v0  ;;  %v4194_v18 = vunpack.c.l.bf16 %v4207_v2  ;;  %s6067_s23 = smov (!%p514_p9, %s513_s23), 7 }
  0x2b   : > { %v4195_v19 = vunpack.c.h.bf16 %v4207_v2  ;;  %v1604_v20 = vmul.f32 %v4170_v60, %v4871_v4  ;;  %v4198_v21 = vunpack.c.l.bf16 %v4208_v9  ;;  %v4199_v22 = vunpack.c.h.bf16 %v4208_v9  ;;  %s4151_s27 = sshll.u32 %s6067_s23, 6  ;;  %s3934_s13 = sshll.u32 %s6067_s23, 1 }
  0x2c   : > { %v2637_v23 = vmul.f32 %v4186_v63, %v4871_v4  ;;  %v1611_v24 = vmul.f32 %v4183_v62, %v4871_v4  ;;  %v4973_v25 = vsel %vm1625_vm7, %v1617_v51, %v1633_v5  ;;  %v4976_v26 = vsel %vm1626_vm8, %v1618_v52, %v1634_v6  ;;  %s5898_s28 = scalar_lea.vmem %s5972_s7, %s4151_s27  ;;  %s526_s18 = scalar_lea.vmem %s5973_s8, %s3934_s13 }
  0x2d   : > { %v4940_v45 = vld [vmem:[#allocation2 + $0x11] sm:$0xff]  ;;  %v4979_v27 = vmul.f32 %v4967_v13, %v1637_v8  ;;  %v4982_v28 = vmul.f32 %v4967_v13, %v1638_v10  ;;  %v4985_v29 = vmul.f32 %v4967_v13, %v1639_v11  ;;  %v4988_v30 = vmul.f32 %v4967_v13, %v1640_v12 }
  0x2e   : > { %v668_v50 = vpack.c.bf16 %v4940_v45, %v4924_v31  ;;  %v2638_v32 = vmul.f32 %v4187_v14, %v4871_v4  ;;  %v2639_v33 = vmul.f32 %v4190_v16, %v4871_v4  ;;  %v2640_v34 = vmul.f32 %v4191_v17, %v4871_v4 }
  0x2f   : > { %v2641_v35 = vmul.f32 %v4194_v18, %v4871_v4  ;;  %v2642_v36 = vmul.f32 %v4195_v19, %v4871_v4  ;;  %v4996_v37 = vmul.f32 %v4198_v21, %v4871_v4  ;;  %v4999_v38 = vmul.f32 %v4199_v22, %v4871_v4  ;;  %v5058_v21 = vld [vmem:[#allocation2] sm:$0xff]  ;;  %v5060_v22 = vld [vmem:[#allocation2 + $0x10] sm:$0xff] }
  0x30   : > { %4346 = vmatprep.mubr.msk.bf16.mxu0 %vm530_vm0, %v668_v50  ;;  %v5002_v39 = vadd.f32 %v4883_v7, %v2637_v23  ;;  %v598_v40 = vadd.f32 %v4883_v7, %v584_v53  ;;  %v599_v41 = vadd.f32 %v4883_v7, %v585_v57  ;;  %v596_v42 = vadd.f32 %v4883_v7, %v582_v54  ;;  %v5062_v23 = vld [vmem:[#allocation2 + $0x2] sm:$0xff] }
  0x31   : > { %v597_v43 = vadd.f32 %v4883_v7, %v583_v55  ;;  %v600_v44 = vadd.f32 %v4883_v7, %v586_v58  ;;  %v5010_v46 = vadd.f32 %v4883_v7, %v2638_v32  ;;  %v601_v47 = vadd.f32 %v4883_v7, %v587_v59  ;;  %5991 = vst [vmem:[#allocation3_spill] sm:$0xff] %v5062_v23 }
  0x32   : > { %vm606_vm9 = vcmp.gt.f32.partialorder %v598_v40, 0.0  ;;  %v614_v4 = vmul.f32 0.2, %v598_v40  ;;  %vm607_vm10 = vcmp.gt.f32.partialorder %v599_v41, 0.0  ;;  %v615_v48 = vmul.f32 0.2, %v599_v41 }
  0x33   : > { %vm604_vm11 = vcmp.gt.f32.partialorder %v596_v42, 0.0  ;;  %vm605_vm12 = vcmp.gt.f32.partialorder %v597_v43, 0.0  ;;  %v612_v50 = vmul.f32 0.2, %v596_v42  ;;  %v613_v51 = vmul.f32 0.2, %v597_v43 }
  0x34   : > { %v622_v49 = vsel %vm606_vm9, %v598_v40, %v614_v4  ;;  %vm608_vm13 = vcmp.gt.f32.partialorder %v600_v44, 0.0  ;;  %v623_v52 = vsel %vm607_vm10, %v599_v41, %v615_v48  ;;  %vm609_vm14 = vcmp.gt.f32.partialorder %v601_v47, 0.0 }
  0x35   : > { %v632_v53 = vmul.f32 %v4903_v15, %v622_v49  ;;  %v616_v54 = vmul.f32 0.2, %v600_v44  ;;  %v633_v55 = vmul.f32 %v4903_v15, %v623_v52  ;;  %v620_v56 = vsel %vm604_vm11, %v596_v42, %v612_v50 }
  0x36   : > { %v621_v57 = vsel %vm605_vm12, %v597_v43, %v613_v51  ;;  %v617_v58 = vmul.f32 0.2, %v601_v47  ;;  %v5018_v59 = vadd.f32 %v4883_v7, %v2639_v33  ;;  %v630_v60 = vmul.f32 %v4903_v15, %v620_v56 }
  0x37   : > { %641 = vst.msk [vmem:[#allocation2 + $0x41] sm:$0xff] %vm530_vm0, %v632_v53  ;;  %v631_v62 = vmul.f32 %v4903_v15, %v621_v57  ;;  %v624_v63 = vsel %vm608_vm13, %v600_v44, %v616_v54  ;;  %642 = vst.msk [vmem:[#allocation2 + $0x51] sm:$0xff] %vm530_vm0, %v633_v55  ;;  %v602_v5 = vadd.f32 %v4883_v7, %v4956_v61  ;;  %vm2653_vm2 = vcmp.gt.f32.partialorder %v5002_v39, 0.0  ;;  %v5095_v44 = vld [vmem:[%s5968_s3 + $0x20] sm:$0xff]   ;;  %v5132_v54 = vld [vmem:[%s5968_s3 + $0x18] sm:$0xff]  }
  0x38   : > { %v625_v0 = vsel %vm609_vm14, %v601_v47, %v617_v58  ;;  %v634_v2 = vmul.f32 %v4903_v15, %v624_v63  ;;  %v1612_v6 = vadd.f32 %v4883_v7, %v1604_v20  ;;  %v5037_v8 = vadd.f32 %v4883_v7, %v2640_v34  ;;  %639 = vst.msk [vmem:[#allocation2 + $0x21] sm:$0xff] %vm530_vm0, %v630_v60 }
  0x39   : > { %v5040_v10 = vadd.f32 %v4883_v7, %v2641_v35  ;;  %640 = vst.msk [vmem:[#allocation2 + $0x31] sm:$0xff] %vm530_vm0, %v631_v62  ;;  %v635_v9 = vmul.f32 %v4903_v15, %v625_v0  ;;  %v1619_v11 = vadd.f32 %v4883_v7, %v1611_v24  ;;  %vm610_vm15 = vcmp.gt.f32.partialorder %v602_v5, 0.0  ;;  %v5064_v24 = vld [vmem:[#allocation2 + $0x12] sm:$0xff] }
  0x3a   : > { %643 = vst.msk [vmem:[#allocation2 + $0x61] sm:$0xff] %vm530_vm0, %v634_v2  ;;  %v618_v61 = vmul.f32 0.2, %v602_v5  ;;  %vm1620_vm1 = vcmp.gt.f32.partialorder %v1612_v6, 0.0  ;;  %v1628_v12 = vmul.f32 0.2, %v1612_v6  ;;  %v5048_v14 = vadd.f32 %v4883_v7, %v2642_v36 }
  0x3b   : > { %vm2654_vm3 = vcmp.gt.f32.partialorder %v5010_v46, 0.0  ;;  %vm2655_vm4 = vcmp.gt.f32.partialorder %v5018_v59, 0.0  ;;  %644 = vst.msk [vmem:[#allocation2 + $0x71] sm:$0xff] %vm530_vm0, %v635_v9  ;;  %v2661_v16 = vmul.f32 0.2, %v5002_v39  ;;  %vm1627_vm5 = vcmp.gt.f32.partialorder %v1619_v11, 0.0 }
  0x3c   : > { %v626_v17 = vsel %vm610_vm15, %v602_v5, %v618_v61  ;;  %v1636_v18 = vsel %vm1620_vm1, %v1612_v6, %v1628_v12  ;;  %v1635_v19 = vmul.f32 0.2, %v1619_v11  ;;  %v2662_v20 = vmul.f32 0.2, %v5010_v46 }
  0x3d   : > { %v636_v32 = vmul.f32 %v4903_v15, %v626_v17  ;;  %v1646_v33 = vmul.f32 %v4967_v13, %v1636_v18  ;;  %v1651_v34 = vmul.f32 %v4967_v13, %v4973_v25  ;;  %v5072_v35 = vadd.f32 %v4883_v7, %v4996_v37  ;;  %v5216_v17 = vld [vmem:[%s5968_s3 + $0x30] sm:$0xff]  }
  0x3e   : > { %vm2656_vm6 = vcmp.gt.f32.partialorder %v5037_v8, 0.0  ;;  %v2663_v36 = vmul.f32 0.2, %v5018_v59  ;;  %v5076_v40 = vld [vmem:[#allocation2 + $0x41] sm:$0xff]  ;;  %v1652_v15 = vmul.f32 %v4967_v13, %v4976_v26  ;;  %v5086_v25 = vadd.f32 %v4883_v7, %v4999_v38  ;;  %v5090_v43 = vld [vmem:[#allocation2 + $0x51] sm:$0xff] }
  0x3f   : > { %v5078_v41 = vld [vmem:[#allocation2 + $0x40] sm:$0xff]  ;;  %vm2657_vm7 = vcmp.gt.f32.partialorder %v5040_v10, 0.0  ;;  %v2664_v37 = vmul.f32 0.2, %v5037_v8  ;;  %v5097_v4 = vld [vmem:[#allocation2 + $0x50] sm:$0xff]  ;;  %645 = vst.msk [vmem:[#allocation2 + $0x81] sm:$0xff] %vm530_vm0, %v636_v32  ;;  %v5108_v26 = vpack.c.bf16 %v5090_v43, %v5076_v40  ;;  %v849_v49 = vpack.c.bf16 %v5064_v24, %v5062_v23 }
  0x40   : > { %v5080_v42 = vld [vmem:[#allocation2 + $0x42] sm:$0xff]  ;;  %v5099_v47 = vld [vmem:[#allocation2 + $0x52] sm:$0xff]  ;;  %1654 = vst.msk [vmem:[#allocation2 + $0x11] sm:$0xff] %vm530_vm0, %v1646_v33  ;;  %v2665_v7 = vmul.f32 0.2, %v5040_v10  ;;  %vm2658_vm8 = vcmp.gt.f32.partialorder %v5048_v14, 0.0  ;;  %v654_v58 = vpack.c.bf16 %v5060_v22, %v5058_v21  ;;  %v2669_v63 = vsel %vm2653_vm2, %v5002_v39, %v2661_v16 }
  0x41   : > { %1657 = vst.msk [vmem:[#allocation2 + $0x41] sm:$0xff] %vm530_vm0, %v4985_v29  ;;  %v5110_v38 = vld [vmem:[#allocation2 + $0x21] sm:$0xff]  ;;  %v5112_v48 = vld [vmem:[#allocation2 + $0x31] sm:$0xff]  ;;  %1658 = vst.msk [vmem:[#allocation2 + $0x51] sm:$0xff] %vm530_vm0, %v4988_v30  ;;  %v1643_v29 = vsel %vm1627_vm5, %v1619_v11, %v1635_v19  ;;  %v2666_v51 = vmul.f32 0.2, %v5048_v14  ;;  %4350 = vmatprep.mubr.msk.bf16.mxu1 %vm530_vm0, %v5108_v26  ;;  %v2678_v0 = vstv %s4063_s22  ;;  %v2670_v11 = vsel %vm2654_vm3, %v5010_v46, %v2662_v20 }
  0x42   : > { %v5116_v50 = vld [vmem:[#allocation2 + $0x20] sm:$0xff]  ;;  %v5125_v52 = vpack.c.bf16 %v5112_v48, %v5110_v38  ;;  %v5134_v55 = vld [vmem:[#allocation2 + $0x30] sm:$0xff]  ;;  %vm2659_vm9 = vcmp.gt.f32.partialorder %v5072_v35, 0.0  ;;  %v2667_v56 = vmul.f32 0.2, %v5072_v35  ;;  %vm2660_vm10 = vcmp.gt.f32.partialorder %v5086_v25, 0.0 }
  0x43   : > { %v5127_v53 = vld [vmem:[#allocation2 + $0x61] sm:$0xff]  ;;  %v5142_v57 = vld [vmem:[#allocation2 + $0x71] sm:$0xff]  ;;  %v2668_v39 = vmul.f32 0.2, %v5086_v25  ;;  %v2674_v46 = vsel %vm2658_vm8, %v5048_v14, %v2666_v51  ;;  %v2679_v61 = vmul.f32 %v2678_v0, %v2669_v63  ;;  %v2680_v16 = vmul.f32 %v2678_v0, %v2670_v11 }
  0x44   : > { %v5136_v30 = vld [vmem:[#allocation2 + $0x22] sm:$0xff]  ;;  %v5146_v60 = vld [vmem:[#allocation2 + $0x32] sm:$0xff]  ;;  %4347 = vmatmul.mubr.msk.bf16.vlgmr.msra.gmra.mxu0 %vm530_vm0, %v5125_v52  ;;  %v5162_v2 = vpack.c.bf16 %v5142_v57, %v5127_v53  ;;  %v5224_v20 = vpack.c.bf16 %v5099_v47, %v5080_v42  ;;  %vm3723_vm11 = vcmask 1040384   ;;  %vm3725_vm12 = vcmask 254976  }
  0x45   : > { %v5148_v62 = vld [vmem:[#allocation2 + $0x60] sm:$0xff]  ;;  %1655 = vst.msk [vmem:[#allocation2 + $0x21] sm:$0xff] %vm530_vm0, %v4979_v27  ;;  %v5164_v5 = vld [vmem:[#allocation2 + $0x70] sm:$0xff]  ;;  %1656 = vst.msk [vmem:[#allocation2 + $0x31] sm:$0xff] %vm530_vm0, %v4982_v28  ;;  %v1653_v27 = vmul.f32 %v4967_v13, %v1643_v29  ;;  %4365 = vmatpush3.bf16.msra.mxu0 %v4844_v3  ;;  %4366 = vmatprep.mubr.msk.bf16.mxu0 %vm530_vm0, %v849_v49  ;;  %v2671_v13 = vsel %vm2655_vm4, %v5018_v59, %v2663_v36 }
  0x46   : > { %v5166_v6 = vld [vmem:[#allocation2 + $0x62] sm:$0xff]  ;;  %v5168_v9 = vld [vmem:[#allocation2 + $0x72] sm:$0xff]  ;;  %v2672_v28 = vsel %vm2656_vm6, %v5037_v8, %v2664_v37  ;;  %v2673_v3 = vsel %vm2657_vm7, %v5040_v10, %v2665_v7  ;;  %4351 = vmatmul.mubr.msk.bf16.vlgmr.msra.gmra.mxu1 %vm530_vm0, %v5162_v2  ;;  %4384 = vmatprep.subr.bf16.mxu0 %v5095_v44  ;;  %v2675_v59 = vsel %vm2659_vm9, %v5072_v35, %v2667_v56 }
  0x47   : > { %1659 = vst.msk [vmem:[#allocation2 + $0x61] sm:$0xff] %vm530_vm0, %v1651_v34  ;;  %1660 = vst.msk [vmem:[#allocation2 + $0x71] sm:$0xff] %vm530_vm0, %v1652_v15  ;;  %4355 = vmatpush3.bf16.msra.mxu1 %v4813_v1  ;;  %4356 = vmatprep.mubr.msk.bf16.mxu1 %vm530_vm0, %v654_v58  ;;  %v5202_v8 = vld [vmem:[#allocation2 + $0x80] sm:$0xff]  ;;  %v5211_v14 = vpack.c.bf16 %v5146_v60, %v5136_v30  ;;  %v2676_v1 = vsel %vm2660_vm10, %v5086_v25, %v2668_v39  ;;  %v5226_v32 = vld [vmem:[#allocation2 + $0x10] sm:$0xff] }
  0x48   : > { %v5204_v10 = vld [vmem:[#allocation2 + $0x81] sm:$0xff]  ;;  %4374 = vmatprep.subr.bf16.mxu1 %v5132_v54  ;;  %v2681_v18 = vmul.f32 %v2678_v0, %v2671_v13  ;;  %v2682_v19 = vmul.f32 %v2678_v0, %v2672_v28  ;;  %v5228_v33 = vld [vmem:[#allocation2 + $0x11] sm:$0xff]  ;;  %v2683_v35 = vmul.f32 %v2678_v0, %v2673_v3  ;;  %v2684_v36 = vmul.f32 %v2678_v0, %v2674_v46 }
  0x49   : > { %v5206_v12 = vld [vmem:[#allocation2 + $0x82] sm:$0xff]  ;;  %v2685_v15 = vmul.f32 %v2678_v0, %v2675_v59  ;;  %v5234_v37 = vpack.c.bf16 %v5134_v55, %v5116_v50  ;;  %v5245_v29 = vld [vmem:[#allocation2 + $0x50] sm:$0xff]  ;;  %v5253_v58 = vpack.c.bf16 %v5097_v4, %v5078_v41  ;;  %v2686_v3 = vmul.f32 %v2678_v0, %v2676_v1 }
  0x4a   : > { %1661 = vst.msk [vmem:[#allocation2 + $0x81] sm:$0xff] %vm530_vm0, %v1653_v27  ;;  %v5230_v34 = vld [vmem:[#allocation2 + $0x40] sm:$0xff]  ;;  %v5239_v25 = vld [vmem:[%s5968_s3 + $0x28] sm:$0xff]   ;;  %v5249_v56 = vld [vmem:[#allocation2 + $0x12] sm:$0xff]  ;;  %v5272_v46 = vpack.c.bf16 %v5168_v9, %v5166_v6 }
  0x4b   : > { %v5247_v51 = vld [vmem:[#allocation2 + $0x41] sm:$0xff]  ;;  %5994 = vst [vmem:[#allocation6_spill] sm:$0xff] %v5249_v56  ;;  %2687 = vst.msk [vmem:[#allocation2 + $0x11] sm:$0xff] %vm530_vm0, %v2679_v61  ;;  %v5274_v59 = vld [vmem:[#allocation2 + $0x51] sm:$0xff] }
  0x4c   : > { %v5241_v7 = vld [vmem:[#allocation2 + $0x20] sm:$0xff]  ;;  %v5255_v63 = vld [vmem:[#allocation2 + $0x30] sm:$0xff]  ;;  %4367 = vmatmul.mubr.msk.bf16.vlgmr.msra.gmra.mxu0 %vm530_vm0, %v5211_v14 }
  0x4d   : > { %5992 = vst [vmem:[#allocation4_spill] sm:$0xff] %v5241_v7  ;;  %v5243_v49 = vld [vmem:[#allocation2 + $0x21] sm:$0xff]  ;;  %v5257_v27 = vld [vmem:[#allocation2 + $0x31] sm:$0xff]  ;;  %4385 = vmatpush3.bf16.msra.mxu0 %v5095_v44  ;;  %4370 = vmatprep.mubr.msk.bf16.mxu0 %vm530_vm0, %v5224_v20 }
  0x4e   : > { %5993 = vst [vmem:[#allocation5_spill] sm:$0xff] %v5243_v49  ;;  %v5263_v13 = vld [vmem:[#allocation2 + $0x22] sm:$0xff]  ;;  %v5278_v11 = vld [vmem:[#allocation2 + $0x70] sm:$0xff]  ;;  %4357 = vmatmul.mubr.msk.bf16.vlgmr.msra.gmra.mxu1 %vm530_vm0, %v5234_v37  ;;  %4404 = vmatprep.subr.bf16.mxu0 %v5216_v17 }
  0x4f   : > { %5995 = vst [vmem:[#allocation7_spill] sm:$0xff] %v5263_v13  ;;  %v5276_v39 = vld [vmem:[#allocation2 + $0x60] sm:$0xff]  ;;  %2688 = vst.msk [vmem:[#allocation2 + $0x21] sm:$0xff] %vm530_vm0, %v2680_v16  ;;  %v5294_v1 = vld [vmem:[#allocation2 + $0x71] sm:$0xff]  ;;  %4375 = vmatpush3.bf16.msra.mxu1 %v5132_v54  ;;  %4360 = vmatprep.mubr.msk.bf16.mxu1 %vm530_vm0, %v5253_v58 }
  0x50   : > { %5996 = vst [vmem:[#allocation8_spill] sm:$0xff] %v5276_v39  ;;  %v5280_v23 = vld [vmem:[#allocation2 + $0x61] sm:$0xff]  ;;  %v5292_v61 = vpack.c.bf16 %v5278_v11, %v5276_v39  ;;  %v5296_v7 = vld [vmem:[#allocation2 + $0x32] sm:$0xff]  ;;  %4394 = vmatprep.subr.bf16.mxu1 %v5239_v25 }
  0x51   : > { %5997 = vst [vmem:[#allocation9_spill] sm:$0xff] %v5280_v23  ;;  %5999 = vst [vmem:[#allocation11_spill] sm:$0xff] %v5296_v7  ;;  %v5298_v49 = vld [vmem:[#allocation2 + $0x42] sm:$0xff]  ;;  %v5309_v44 = vpack.c.bf16 %v5294_v1, %v5280_v23  ;;  %v5313_v28 = vpack.c.bf16 %v5296_v7, %v5263_v13  ;;  %v5315_v56 = vld [vmem:[#allocation2 + $0x52] sm:$0xff]  ;;  %v657_v7 = vpack.c.bf16 %v5164_v5, %v5148_v62 }
  0x52   : > { %5998 = vst [vmem:[#allocation10_spill] sm:$0xff] %v5292_v61  ;;  %v5317_v61 = vld [vmem:[#allocation2 + $0x62] sm:$0xff]  ;;  %v5319_v0 = vld [vmem:[#allocation2 + $0x72] sm:$0xff]  ;;  %2689 = vst.msk [vmem:[#allocation2 + $0x31] sm:$0xff] %vm530_vm0, %v2681_v18  ;;  %v5330_v13 = vpack.c.bf16 %v5315_v56, %v5298_v49  ;;  %v955_v18 = vpack.c.bf16 %v5116_v50, %v5060_v22  ;;  %v957_v50 = vpack.c.bf16 %v5148_v62, %v5097_v4 }
  0x53   : > { %6000 = vst [vmem:[#allocation12_spill] sm:$0xff] %v5313_v28  ;;  %2690 = vst.msk [vmem:[#allocation2 + $0x41] sm:$0xff] %vm530_vm0, %v2682_v19  ;;  %v5334_v28 = vpack.c.bf16 %v5319_v0, %v5317_v61  ;;  %v5336_v39 = vld [vmem:[#allocation2 + $0x80] sm:$0xff]  ;;  %v5348_v54 = vld [vmem:[#allocation2 + $0x90] sm:$0xff]  ;;  %v1168_v4 = vpack.c.bf16 %v5080_v42, %v5146_v60  ;;  %v1776_v62 = vpack.c.bf16 %v5228_v33, %v4924_v31 }
  0x54   : > { %v5340_v16 = vld [vmem:[#allocation2 + $0x81] sm:$0xff]  ;;  %2691 = vst.msk [vmem:[#allocation2 + $0x51] sm:$0xff] %vm530_vm0, %v2683_v35  ;;  %2692 = vst.msk [vmem:[#allocation2 + $0x61] sm:$0xff] %vm530_vm0, %v2684_v36  ;;  %v1061_v36 = vpack.c.bf16 %v5110_v38, %v4940_v45  ;;  %4371 = vmatmul.mubr.msk.bf16.gmra.mxu0 %vm530_vm0, %v5272_v46  ;;  %v1062_v45 = vpack.c.bf16 %v5076_v40, %v5112_v48  ;;  %v1063_v38 = vpack.c.bf16 %v5127_v53, %v5090_v43  ;;  %v4667_v48 = vld [vmem:[%s5968_s3 + $0x50] sm:$0xff]  }
  0x55   : > { %v5342_v19 = vld [vmem:[#allocation2 + $0x82] sm:$0xff]  ;;  %2693 = vst.msk [vmem:[#allocation2 + $0x71] sm:$0xff] %vm530_vm0, %v2685_v15  ;;  %v2097_v23 = vpack.c.bf16 %v5340_v16, %v5294_v1  ;;  %v2309_v15 = vpack.c.bf16 %v5348_v54, %v5336_v39  ;;  %v1064_v40 = vpack.c.bf16 %v5204_v10, %v5142_v57  ;;  %v1167_v43 = vpack.c.bf16 %v5136_v30, %v5064_v24  ;;  %v4668_v30 = vld [vmem:[%s5968_s3 + $0x58] sm:$0xff]  }
  0x56   : > { %v2203_v35 = vpack.c.bf16 %v5342_v19, %v5319_v0  ;;  %2694 = vst.msk [vmem:[#allocation2 + $0x81] sm:$0xff] %vm530_vm0, %v2686_v3  ;;  %4386 = vmatprep.mubr.msk.bf16.mxu0 %vm530_vm0, %v1061_v36  ;;  %4361 = vmatmul.mubr.msk.bf16.gmra.mxu1 %vm530_vm0, %v657_v7  ;;  %v956_v3 = vpack.c.bf16 %v5078_v41, %v5134_v55  ;;  %v4665_v22 = vld [vmem:[%s5968_s3 + $0x40] sm:$0xff]   ;;  %v4666_v24 = vld [vmem:[%s5968_s3 + $0x48] sm:$0xff]   ;;  %v5438_v57 = vld [vmem:[#allocation2 + $0x92] sm:$0xff] }
  0x57   : > { %4376 = vmatprep.mubr.msk.bf16.mxu1 %vm530_vm0, %v955_v18  ;;  %v4664_v18 = vld [vmem:[%s5968_s3 + $0x38] sm:$0xff]   ;;  %v958_v41 = vpack.c.bf16 %v5202_v8, %v5164_v5  ;;  %v1169_v53 = vpack.c.bf16 %v5166_v6, %v5099_v47  ;;  %v1277_v42 = vpack.c.bf16 %v5348_v54, %v5202_v8  ;;  %v1170_v47 = vpack.c.bf16 %v5206_v12, %v5168_v9  ;;  %v4669_v55 = vld [vmem:[%s5968_s3 + $0x60] sm:$0xff]   ;;  %v6002_v9 = vld [vmem:[#allocation4_spill] sm:$0xff] }
  0x58   : > { %v1489_v60 = vpack.c.bf16 %v5438_v57, %v5206_v12  ;;  %v1778_v31 = vpack.c.bf16 %v5274_v59, %v5247_v51  ;;  %v1671_v8 = vpack.c.bf16 %v5255_v63, %v6002_v9  ;;  %v1672_v12 = vpack.c.bf16 %v5245_v29, %v5230_v34  ;;  %v6009_v36 = vld [vmem:[#allocation8_spill] sm:$0xff]  ;;  %v5572_v0 = vld [vmem:[#allocation2 + $0x20] sm:$0xff] }
  0x5a   : > { %v5580_v1 = vld [vmem:[#allocation2 + $0x40] sm:$0xff] }
  0x5c   : > { %4387 = vmatmul.mubr.msk.bf16.vlgmr.msra.gmra.mxu0 %vm530_vm0, %v1062_v45  ;;  %v6010_v45 = vpack.c.bf16 %v6009_v36, %v5245_v29 }
  0x5d   : > { %4405 = vmatpush3.bf16.msra.mxu0 %v5216_v17  ;;  %4390 = vmatprep.mubr.msk.bf16.mxu0 %vm530_vm0, %v1063_v38  ;;  %v6003_v17 = vpack.c.bf16 %v6002_v9, %v5226_v32  ;;  %v6011_v38 = vld [vmem:[#allocation12_spill] sm:$0xff]  ;;  %v4681_v9 = vld [vmem:[%s5968_s3 + $0xc0] sm:$0xff]  }
  0x5e   : > { %4377 = vmatmul.mubr.msk.bf16.vlgmr.msra.gmra.mxu1 %vm530_vm0, %v956_v3  ;;  %4424 = vmatprep.subr.bf16.mxu0 %v4665_v22 }
  0x5f   : > { %4395 = vmatpush3.bf16.msra.mxu1 %v5239_v25  ;;  %4380 = vmatprep.mubr.msk.bf16.mxu1 %vm530_vm0, %v957_v50  ;;  %v6006_v25 = vld [vmem:[#allocation3_spill] sm:$0xff] }
  0x60   : > { %4414 = vmatprep.subr.bf16.mxu1 %v4664_v18 }
  0x64   : > { %4391 = vmatmul.mubr.msk.bf16.gmra.mxu0 %vm530_vm0, %v1064_v40  ;;  %v6018_v40 = vpack.c.bf16 %v5317_v61, %v5315_v56  ;;  %v4676_v56 = vld [vmem:[%s5968_s3 + $0x98] sm:$0xff]   ;;  %v5574_v61 = vld [vmem:[#allocation2 + $0x30] sm:$0xff] }
  0x65   : > { %4406 = vmatprep.mubr.msk.bf16.mxu0 %vm530_vm0, %v5234_v37  ;;  %v6005_v37 = vld [vmem:[#allocation6_spill] sm:$0xff]  ;;  %v3022_v36 = vpack.c.bf16 %v5580_v1, %v5574_v61 }
  0x66   : > { %4381 = vmatmul.mubr.msk.bf16.gmra.mxu1 %vm530_vm0, %v958_v41 }
  0x67   : > { %4396 = vmatprep.mubr.msk.bf16.mxu1 %vm530_vm0, %v1167_v43  ;;  %v5606_v43 = vld [vmem:[#allocation2 + $0x70] sm:$0xff] }
  0x6c   : > { %4407 = vmatmul.mubr.msk.bf16.vlgmr.msra.gmra.mxu0 %vm530_vm0, %v5253_v58  ;;  %v4673_v58 = vld [vmem:[%s5968_s3 + $0x80] sm:$0xff]  }
  0x6d   : > { %4425 = vmatpush3.bf16.msra.mxu0 %v4665_v22  ;;  %4410 = vmatprep.mubr.msk.bf16.mxu0 %vm530_vm0, %v657_v7  ;;  %v6007_v7 = vpack.c.bf16 %v6005_v37, %v6006_v25  ;;  %v4675_v22 = vld [vmem:[%s5968_s3 + $0x90] sm:$0xff]  }
  0x6e   : > { %4397 = vmatmul.mubr.msk.bf16.vlgmr.msra.gmra.mxu1 %vm530_vm0, %v1168_v4  ;;  %4444 = vmatprep.subr.bf16.mxu0 %v4667_v48  ;;  %v5610_v4 = vld [vmem:[#allocation2 + $0x12] sm:$0xff] }
  0x6f   : > { %4415 = vmatpush3.bf16.msra.mxu1 %v4664_v18  ;;  %4400 = vmatprep.mubr.msk.bf16.mxu1 %vm530_vm0, %v1169_v53  ;;  %v4674_v18 = vld [vmem:[%s5968_s3 + $0x88] sm:$0xff]  }
  0x70   : > { %4434 = vmatprep.subr.bf16.mxu1 %v4666_v24  ;;  %v2801_v53 = vld [vmem:[#allocation2 + $0x1] sm:$0xff] }
  0x74   : > { %4411 = vmatmul.mubr.msk.bf16.gmra.mxu0 %vm530_vm0, %v1277_v42  ;;  %v2915_v42 = vpack.c.bf16 %v5610_v4, %v6006_v25 }
  0x75   : > { %4426 = vmatprep.mubr.msk.bf16.mxu0 %vm530_vm0, %v5211_v14  ;;  %v4670_v14 = vld [vmem:[%s5968_s3 + $0x68] sm:$0xff]  }
  0x76   : > { %4401 = vmatmul.mubr.msk.bf16.gmra.mxu1 %vm530_vm0, %v1170_v47 }
  0x77   : > { %4416 = vmatprep.mubr.msk.bf16.mxu1 %vm530_vm0, %v5125_v52  ;;  %v5444_v52 = vld [vmem:[#allocation2 + $0x91] sm:$0xff] }
  0x78   : > { %v1383_v5 = vpack.c.bf16 %v5444_v52, %v5204_v10  ;;  %v4671_v10 = vld [vmem:[%s5968_s3 + $0x70] sm:$0xff]  }
  0x7c   : > { %4427 = vmatmul.mubr.msk.bf16.vlgmr.msra.gmra.mxu0 %vm530_vm0, %v5224_v20  ;;  %v6004_v20 = vld [vmem:[#allocation10_spill] sm:$0xff] }
  0x7d   : > { %4445 = vmatpush3.bf16.msra.mxu0 %v4667_v48  ;;  %4430 = vmatprep.mubr.msk.bf16.mxu0 %vm530_vm0, %v5272_v46  ;;  %v6008_v46 = vpack.c.bf16 %v5230_v34, %v5255_v63  ;;  %v6012_v34 = vpack.c.bf16 %v5336_v39, %v5278_v11  ;;  %v6013_v63 = vld [vmem:[#allocation7_spill] sm:$0xff]  ;;  %v4679_v39 = vld [vmem:[%s5968_s3 + $0xb0] sm:$0xff]  }
  0x7e   : > { %4417 = vmatmul.mubr.msk.bf16.vlgmr.msra.gmra.mxu1 %vm530_vm0, %v5108_v26  ;;  %4464 = vmatprep.subr.bf16.mxu0 %v4669_v55  ;;  %v1670_v26 = vpack.c.bf16 %v5226_v32, %v5058_v21  ;;  %v4672_v32 = vld [vmem:[%s5968_s3 + $0x78] sm:$0xff]   ;;  %v6014_v3 = vpack.c.bf16 %v6013_v63, %v6005_v37  ;;  %v6016_v11 = vld [vmem:[#allocation11_spill] sm:$0xff] }
  0x7f   : > { %4435 = vmatpush3.bf16.msra.mxu1 %v4666_v24  ;;  %4420 = vmatprep.mubr.msk.bf16.mxu1 %vm530_vm0, %v5162_v2  ;;  %v6001_v2 = vld [vmem:[#allocation5_spill] sm:$0xff]  ;;  %v6017_v50 = vpack.c.bf16 %v5298_v49, %v6016_v11  ;;  %v3126_v63 = vld [vmem:[#allocation2 + $0x81] sm:$0xff] }
  0x80   : > { %4454 = vmatprep.subr.bf16.mxu1 %v4668_v30  ;;  %v1777_v6 = vpack.c.bf16 %v5257_v27, %v6001_v2  ;;  %v6015_v29 = vpack.c.bf16 %v6001_v2, %v5228_v33  ;;  %v6019_v33 = vpack.c.bf16 %v5247_v51, %v5257_v27  ;;  %v6020_v49 = vld [vmem:[#allocation9_spill] sm:$0xff]  ;;  %v4677_v51 = vld [vmem:[%s5968_s3 + $0xa0] sm:$0xff]  }
  0x81   : > { %v6021_v41 = vpack.c.bf16 %v6020_v49, %v5274_v59  ;;  %v5562_v27 = vld [vmem:[#allocation2 + $0x10] sm:$0xff] }
  0x82   : > { %v2703_v59 = vpack.c.bf16 %v5562_v27, %v5058_v21  ;;  %v5588_v21 = vpack.c.bf16 %v5574_v61, %v5572_v0  ;;  %v2802_v24 = vld [vmem:[#allocation2 + $0x11] sm:$0xff] }
  0x83   : > { %v2809_v47 = vpack.c.bf16 %v2802_v24, %v2801_v53  ;;  %v2806_v2 = vld [vmem:[#allocation2 + $0x51] sm:$0xff]  ;;  %v3448_v53 = vpack.c.bf16 %v5444_v52, %v3126_v63 }
  0x84   : > { %4431 = vmatmul.mubr.msk.bf16.gmra.mxu0 %vm530_vm0, %v1489_v60  ;;  %v5628_v60 = vld [vmem:[#allocation2 + $0x52] sm:$0xff] }
  0x85   : > { %4446 = vmatprep.mubr.msk.bf16.mxu0 %vm530_vm0, %v1776_v62  ;;  %v2803_v62 = vld [vmem:[#allocation2 + $0x21] sm:$0xff] }
  0x86   : > { %4421 = vmatmul.mubr.msk.bf16.gmra.mxu1 %vm530_vm0, %v1383_v5  ;;  %v2804_v5 = vld [vmem:[#allocation2 + $0x31] sm:$0xff]  ;;  %v3127_v25 = vpack.c.bf16 %v2803_v62, %v2802_v24 }
  0x87   : > { %4436 = vmatprep.mubr.msk.bf16.mxu1 %vm530_vm0, %v1670_v26  ;;  %v2805_v26 = vld [vmem:[#allocation2 + $0x41] sm:$0xff] }
  0x8c   : > { %4447 = vmatmul.mubr.msk.bf16.vlgmr.msra.gmra.mxu0 %vm530_vm0, %v1777_v6 }
  0x8d   : > { %4465 = vmatpush3.bf16.msra.mxu0 %v4669_v55  ;;  %4450 = vmatprep.mubr.msk.bf16.mxu0 %vm530_vm0, %v1778_v31  ;;  %v5625_v55 = vld [vmem:[#allocation2 + $0x32] sm:$0xff] }
  0x8e   : > { %4437 = vmatmul.mubr.msk.bf16.vlgmr.msra.gmra.mxu1 %vm530_vm0, %v1671_v8  ;;  %4484 = vmatprep.subr.bf16.mxu0 %v4671_v10 }
  0x8f   : > { %4455 = vmatpush3.bf16.msra.mxu1 %v4668_v30  ;;  %4440 = vmatprep.mubr.msk.bf16.mxu1 %vm530_vm0, %v1672_v12  ;;  %v2911_v30 = vld [vmem:[#allocation2 + $0x42] sm:$0xff] }
  0x90   : > { %4474 = vmatprep.subr.bf16.mxu1 %v4670_v14 }
  0x94   : > { %4451 = vmatmul.mubr.msk.bf16.gmra.mxu0 %vm530_vm0, %v5309_v44 }
  0x95   : > { %4466 = vmatprep.mubr.msk.bf16.mxu0 %vm530_vm0, %v6003_v17  ;;  %v2807_v17 = vld [vmem:[#allocation2 + $0x61] sm:$0xff] }
  0x96   : > { %4441 = vmatmul.mubr.msk.bf16.gmra.mxu1 %vm530_vm0, %v6004_v20 }
  0x97   : > { %4456 = vmatprep.mubr.msk.bf16.mxu1 %vm530_vm0, %v6007_v7 }
  0x9c   : > { %4467 = vmatmul.mubr.msk.bf16.vlgmr.msra.gmra.mxu0 %vm530_vm0, %v6008_v46  ;;  %v3128_v46 = vpack.c.bf16 %v2805_v26, %v2804_v5 }
  0x9d   : > { %4485 = vmatpush3.bf16.msra.mxu0 %v4671_v10  ;;  %4470 = vmatprep.mubr.msk.bf16.mxu0 %vm530_vm0, %v6010_v45  ;;  %v4680_v10 = vld [vmem:[%s5968_s3 + $0xb8] sm:$0xff]   ;;  %v4683_v45 = vld [vmem:[%s5968_s3 + $0xd0] sm:$0xff]  }
  0x9e   : > { %4457 = vmatmul.mubr.msk.bf16.vlgmr.msra.gmra.mxu1 %vm530_vm0, %v6011_v38  ;;  %4504 = vmatprep.subr.bf16.mxu0 %v4673_v58 }
  0x9f   : > { %4475 = vmatpush3.bf16.msra.mxu1 %v4670_v14  ;;  %4460 = vmatprep.mubr.msk.bf16.mxu1 %vm530_vm0, %v5330_v13  ;;  %v2914_v14 = vld [vmem:[#allocation2 + $0x72] sm:$0xff] }
  0xa0   : > { %4494 = vmatprep.subr.bf16.mxu1 %v4672_v32 }
  0xa4   : > { %4471 = vmatmul.mubr.msk.bf16.gmra.mxu0 %vm530_vm0, %v6012_v34  ;;  %v4682_v34 = vld [vmem:[%s5968_s3 + $0xc8] sm:$0xff]  }
  0xa5   : > { %4486 = vmatprep.mubr.msk.bf16.mxu0 %vm530_vm0, %v6014_v3  ;;  %v3020_v3 = vld [vmem:[#allocation2 + $0x80] sm:$0xff] }
  0xa6   : > { %4461 = vmatmul.mubr.msk.bf16.gmra.mxu1 %vm530_vm0, %v5334_v28 }
  0xa7   : > { %4476 = vmatprep.mubr.msk.bf16.mxu1 %vm530_vm0, %v6015_v29 }
  0xac   : > { %4487 = vmatmul.mubr.msk.bf16.vlgmr.msra.gmra.mxu0 %vm530_vm0, %v6017_v50  ;;  %v3234_v50 = vpack.c.bf16 %v2911_v30, %v5625_v55 }
  0xad   : > { %4505 = vmatpush3.bf16.msra.mxu0 %v4673_v58  ;;  %4490 = vmatprep.mubr.msk.bf16.mxu0 %vm530_vm0, %v6018_v40  ;;  %v3021_v58 = vpack.c.bf16 %v5572_v0, %v5562_v27  ;;  %v3232_v40 = vld [vmem:[#allocation2 + $0x82] sm:$0xff] }
  0xae   : > { %4477 = vmatmul.mubr.msk.bf16.vlgmr.msra.gmra.mxu1 %vm530_vm0, %v6019_v33  ;;  %4524 = vmatprep.subr.bf16.mxu0 %v4675_v22  ;;  %v3342_v33 = vpack.c.bf16 %v5348_v54, %v3020_v3  ;;  %v3236_v49 = vpack.c.bf16 %v3232_v40, %v2914_v14 }
  0xaf   : > { %4495 = vmatpush3.bf16.msra.mxu1 %v4672_v32  ;;  %4480 = vmatprep.mubr.msk.bf16.mxu1 %vm530_vm0, %v6021_v41  ;;  %v3129_v32 = vpack.c.bf16 %v2807_v17, %v2806_v2 }
  0xb0   : > { %4514 = vmatprep.subr.bf16.mxu1 %v4674_v18 }
  0xb4   : > { %4491 = vmatmul.mubr.msk.bf16.gmra.mxu0 %vm530_vm0, %v2203_v35  ;;  %v4678_v35 = vld [vmem:[%s5968_s3 + $0xa8] sm:$0xff]  }
  0xb5   : > { %4506 = vmatprep.mubr.msk.bf16.mxu0 %vm530_vm0, %v1777_v6  ;;  %v5635_v6 = vpack.c.bf16 %v5628_v60, %v2911_v30 }
  0xb6   : > { %4481 = vmatmul.mubr.msk.bf16.gmra.mxu1 %vm530_vm0, %v2097_v23  ;;  %v2415_v23 = vpack.c.bf16 %v5444_v52, %v5340_v16  ;;  %v5582_v16 = vld [vmem:[#allocation2 + $0x50] sm:$0xff] }
  0xb7   : > { %4496 = vmatprep.mubr.msk.bf16.mxu1 %vm530_vm0, %v1671_v8  ;;  %v5642_v8 = vpack.c.bf16 %v2806_v2, %v2805_v26 }
  0xbc   : > { %4507 = vmatmul.mubr.msk.bf16.vlgmr.msra.gmra.mxu0 %vm530_vm0, %v1778_v31  ;;  %v5637_v31 = vpack.c.bf16 %v2804_v5, %v2803_v62 }
  0xbd   : > { %4525 = vmatpush3.bf16.msra.mxu0 %v4675_v22  ;;  %4510 = vmatprep.mubr.msk.bf16.mxu0 %vm530_vm0, %v5309_v44  ;;  %v5592_v44 = vpack.c.bf16 %v5582_v16, %v5580_v1  ;;  %v3024_v22 = vpack.c.bf16 %v3020_v3, %v5606_v43 }
  0xbe   : > { %4497 = vmatmul.mubr.msk.bf16.vlgmr.msra.gmra.mxu1 %vm530_vm0, %v1672_v12  ;;  %4544 = vmatprep.subr.bf16.mxu0 %v4677_v51  ;;  %v2913_v12 = vld [vmem:[#allocation2 + $0x62] sm:$0xff] }
  0xbf   : > { %4515 = vmatpush3.bf16.msra.mxu1 %v4674_v18  ;;  %4500 = vmatprep.mubr.msk.bf16.mxu1 %vm530_vm0, %v6004_v20  ;;  %v2808_v20 = vld [vmem:[#allocation2 + $0x71] sm:$0xff]  ;;  %v2918_v37 = vpack.c.bf16 %v2914_v14, %v2913_v12  ;;  %v3235_v18 = vpack.c.bf16 %v2913_v12, %v5628_v60 }
  0xc0   : > { %4534 = vmatprep.subr.bf16.mxu1 %v4676_v56  ;;  %v2812_v7 = vpack.c.bf16 %v2808_v20, %v2807_v17  ;;  %v3130_v29 = vpack.c.bf16 %v3126_v63, %v2808_v20 }
  0xc4   : > { %4511 = vmatmul.mubr.msk.bf16.gmra.mxu0 %vm530_vm0, %v2415_v23 }
  0xc5   : > { %4526 = vmatprep.mubr.msk.bf16.mxu0 %vm530_vm0, %v2703_v59 }
  0xc6   : > { %4501 = vmatmul.mubr.msk.bf16.gmra.mxu1 %vm530_vm0, %v2309_v15  ;;  %v5604_v15 = vld [vmem:[#allocation2 + $0x60] sm:$0xff] }
  0xc7   : > { %4516 = vmatprep.mubr.msk.bf16.mxu1 %vm530_vm0, %v6011_v38  ;;  %v5616_v48 = vpack.c.bf16 %v5606_v43, %v5604_v15  ;;  %v3023_v38 = vpack.c.bf16 %v5604_v15, %v5582_v16 }
  0xcc   : > { %4527 = vmatmul.mubr.msk.bf16.vlgmr.msra.gmra.mxu0 %vm530_vm0, %v5588_v21 }
  0xcd   : > { %4545 = vmatpush3.bf16.msra.mxu0 %v4677_v51  ;;  %4530 = vmatprep.mubr.msk.bf16.mxu0 %vm530_vm0, %v5592_v44 }
  0xce   : > { %4517 = vmatmul.mubr.msk.bf16.vlgmr.msra.gmra.mxu1 %vm530_vm0, %v5330_v13  ;;  %4564 = vmatprep.subr.bf16.mxu0 %v4679_v39  ;;  %v2521_v13 = vpack.c.bf16 %v5438_v57, %v5342_v19 }
  0xcf   : > { %4535 = vmatpush3.bf16.msra.mxu1 %v4676_v56  ;;  %4520 = vmatprep.mubr.msk.bf16.mxu1 %vm530_vm0, %v5334_v28  ;;  %v2909_v28 = vld [vmem:[#allocation2 + $0x22] sm:$0xff] }
  0xd0   : > { %4554 = vmatprep.subr.bf16.mxu1 %v4678_v35  ;;  %v5632_v19 = vpack.c.bf16 %v5625_v55, %v2909_v28  ;;  %v3233_v11 = vpack.c.bf16 %v2909_v28, %v5610_v4 }
  0xd4   : > { %4531 = vmatmul.mubr.msk.bf16.gmra.mxu0 %vm530_vm0, %v5616_v48 }
  0xd5   : > { %4546 = vmatprep.mubr.msk.bf16.mxu0 %vm530_vm0, %v2915_v42 }
  0xd6   : > { %4521 = vmatmul.mubr.msk.bf16.gmra.mxu1 %vm530_vm0, %v2521_v13 }
  0xd7   : > { %4536 = vmatprep.mubr.msk.bf16.mxu1 %vm530_vm0, %v2809_v47 }
  0xdc   : > { %4547 = vmatmul.mubr.msk.bf16.vlgmr.msra.gmra.mxu0 %vm530_vm0, %v5632_v19 }
  0xdd   : > { %4565 = vmatpush3.bf16.msra.mxu0 %v4679_v39  ;;  %4550 = vmatprep.mubr.msk.bf16.mxu0 %vm530_vm0, %v5635_v6 }
  0xde   : > { %4537 = vmatmul.mubr.msk.bf16.vlgmr.msra.gmra.mxu1 %vm530_vm0, %v5637_v31  ;;  %4584 = vmatprep.subr.bf16.mxu0 %v4681_v9 }
  0xdf   : > { %4555 = vmatpush3.bf16.msra.mxu1 %v4678_v35  ;;  %4540 = vmatprep.mubr.msk.bf16.mxu1 %vm530_vm0, %v5642_v8  ;;  %v3554_v35 = vpack.c.bf16 %v5438_v57, %v3232_v40 }
  0xe0   : > { %4574 = vmatprep.subr.bf16.mxu1 %v4680_v10 }
  0xe4   : > { %4551 = vmatmul.mubr.msk.bf16.gmra.mxu0 %vm530_vm0, %v2918_v37 }
  0xe5   : > { %4566 = vmatprep.mubr.msk.bf16.mxu0 %vm530_vm0, %v3127_v25 }
  0xe6   : > { %4541 = vmatmul.mubr.msk.bf16.gmra.mxu1 %vm530_vm0, %v2812_v7 }
  0xe7   : > { %4556 = vmatprep.mubr.msk.bf16.mxu1 %vm530_vm0, %v3021_v58 }
  0xec   : > { %4567 = vmatmul.mubr.msk.bf16.vlgmr.msra.gmra.mxu0 %vm530_vm0, %v3128_v46 }
  0xed   : > { %4585 = vmatpush3.bf16.msra.mxu0 %v4681_v9  ;;  %4570 = vmatprep.mubr.msk.bf16.mxu0 %vm530_vm0, %v3129_v32 }
  0xee   : > { %4557 = vmatmul.mubr.msk.bf16.vlgmr.msra.gmra.mxu1 %vm530_vm0, %v3022_v36  ;;  %4604 = vmatprep.subr.bf16.mxu0 %v4683_v45 }
  0xef   : > { %4575 = vmatpush3.bf16.msra.mxu1 %v4680_v10  ;;  %4560 = vmatprep.mubr.msk.bf16.mxu1 %vm530_vm0, %v3023_v38 }
  0xf0   : > { %4594 = vmatprep.subr.bf16.mxu1 %v4682_v34 }
  0xf4   : > { %4571 = vmatmul.mubr.msk.bf16.gmra.mxu0 %vm530_vm0, %v3130_v29 }
  0xf5   : > { %4586 = vmatprep.mubr.msk.bf16.mxu0 %vm530_vm0, %v5588_v21 }
  0xf6   : > { %4561 = vmatmul.mubr.msk.bf16.gmra.mxu1 %vm530_vm0, %v3024_v22 }
  0xf7   : > { %4576 = vmatprep.mubr.msk.bf16.mxu1 %vm530_vm0, %v3233_v11 }
  0xfc   : > { %4587 = vmatmul.mubr.msk.bf16.vlgmr.msra.gmra.mxu0 %vm530_vm0, %v5592_v44 }
  0xfd   : > { %4605 = vmatpush3.bf16.msra.mxu0 %v4683_v45  ;;  %4590 = vmatprep.mubr.msk.bf16.mxu0 %vm530_vm0, %v5616_v48 }
  0xfe   : > { %4577 = vmatmul.mubr.msk.bf16.vlgmr.msra.gmra.mxu1 %vm530_vm0, %v3234_v50 }
  0xff   : > { %4595 = vmatpush3.bf16.msra.mxu1 %v4682_v34  ;;  %4580 = vmatprep.mubr.msk.bf16.mxu1 %vm530_vm0, %v3235_v18 }
 0x104   : > { %v4348_v41 = vpop.f32.mrf.mxu0  ;;  %4591 = vmatmul.mubr.msk.bf16.gmra.mxu0 %vm530_vm0, %v3342_v33 }
 0x105   : > { %4606 = vmatprep.mubr.msk.bf16.mxu0 %vm530_vm0, %v5632_v19 }
 0x106   : > { %v4352_v51 = vpop.f32.mrf.mxu1  ;;  %4581 = vmatmul.mubr.msk.bf16.gmra.mxu1 %vm530_vm0, %v3236_v49  ;;  %v727_v56 = vpop.f32.mrf.mxu0 }
 0x107   : > { %4596 = vmatprep.mubr.msk.bf16.mxu1 %vm530_vm0, %v5637_v31 }
 0x108   : > { %v743_v27 = vpop.f32.mrf.mxu1  ;;  %v4349_v23 = vpop.f32.mrf.mxu0 }
 0x10a   : > { %v4353_v59 = vpop.f32.mrf.mxu1  ;;  %v730_v0 = vpop.f32.mrf.mxu0 }
 0x10c   : > { %v746_v61 = vpop.f32.mrf.mxu1  ;;  %v4368_v54 = vpop.f32.mrf.mxu0  ;;  %4607 = vmatmul.mubr.msk.bf16.vlgmr.msra.gmra.mxu0 %vm530_vm0, %v5635_v6 }
 0x10d   : > { %4610 = vmatprep.mubr.msk.bf16.mxu0 %vm530_vm0, %v2918_v37 }
 0x10e   : > { %v4358_v1 = vpop.f32.mrf.mxu1  ;;  %4597 = vmatmul.mubr.msk.bf16.vlgmr.msra.gmra.mxu1 %vm530_vm0, %v5642_v8  ;;  %v908_v16 = vpop.f32.mrf.mxu0 }
 0x10f   : > { %v819_v21 = vadd.f32 %v4358_v1, %v4348_v41  ;;  %4600 = vmatprep.mubr.msk.bf16.mxu1 %vm530_vm0, %v2812_v7 }
 0x110   : > { %v810_v44 = vpop.f32.mrf.mxu1  ;;  %v4369_v39 = vpop.f32.mrf.mxu0 }
 0x111   : > { %v941_v15 = vadd.f32 %v4368_v54, %v819_v21  ;;  %v811_v43 = vadd.f32 %v810_v44, %v727_v56 }
 0x112   : > { %v4359_v4 = vpop.f32.mrf.mxu1  ;;  %v911_v48 = vpop.f32.mrf.mxu0 }
 0x113   : > { %v939_v24 = vadd.f32 %v908_v16, %v811_v43  ;;  %v822_v42 = vadd.f32 %v4359_v4, %v4349_v23 }
 0x114   : > { %v813_v13 = vpop.f32.mrf.mxu1  ;;  %v4372_v47 = vpop.f32.mrf.mxu0  ;;  %4611 = vmatmul.mubr.msk.bf16.gmra.mxu0 %vm530_vm0, %v3554_v35 }
 0x115   : > { %v942_v28 = vadd.f32 %v4369_v39, %v822_v42  ;;  %v814_v55 = vadd.f32 %v813_v13, %v730_v0 }
 0x116   : > { %v4362_v30 = vpop.f32.mrf.mxu1  ;;  %4601 = vmatmul.mubr.msk.bf16.gmra.mxu1 %vm530_vm0, %v3448_v53  ;;  %v924_v60 = vpop.f32.mrf.mxu0  ;;  %vm3664_vm0 = vcmask 261120  }
 0x117   : > { %v940_v62 = vadd.f32 %v911_v48, %v814_v55  ;;  %v835_v57 = vadd.f32 %v4362_v30, %v4352_v51 }
 0x118   : > { %v826_v5 = vpop.f32.mrf.mxu1  ;;  %v4373_v19 = vpop.f32.mrf.mxu0 }
 0x119   : > { %v945_v26 = vadd.f32 %v4372_v47, %v835_v57  ;;  %v827_v2 = vadd.f32 %v826_v5, %v743_v27 }
 0x11a   : > { %v4363_v6 = vpop.f32.mrf.mxu1  ;;  %v927_v52 = vpop.f32.mrf.mxu0 }
 0x11b   : > { %v943_v31 = vadd.f32 %v924_v60, %v827_v2  ;;  %v838_v9 = vadd.f32 %v4363_v6, %v4353_v59 }
 0x11c   : > { %v829_v8 = vpop.f32.mrf.mxu1  ;;  %v4388_v10 = vpop.f32.mrf.mxu0 }
 0x11d   : > { %v946_v12 = vadd.f32 %v4373_v19, %v838_v9  ;;  %v830_v14 = vadd.f32 %v829_v8, %v746_v61 }
 0x11e   : > { %v4378_v17 = vpop.f32.mrf.mxu1  ;;  %v1120_v20 = vpop.f32.mrf.mxu0 }
 0x11f   : > { %v944_v37 = vadd.f32 %v927_v52, %v830_v14  ;;  %v1047_v25 = vadd.f32 %v4378_v17, %v941_v15 }
 0x120   : > { %v1014_v7 = vpop.f32.mrf.mxu1  ;;  %v4389_v58 = vpop.f32.mrf.mxu0 }
 0x121   : > { %v1153_v46 = vadd.f32 %v4388_v10, %v1047_v25  ;;  %v1045_v32 = vadd.f32 %v1014_v7, %v939_v24 }
 0x122   : > { %v4379_v36 = vpop.f32.mrf.mxu1  ;;  %v1123_v45 = vpop.f32.mrf.mxu0 }
 0x123   : > { %v1151_v38 = vadd.f32 %v1120_v20, %v1045_v32  ;;  %v1048_v34 = vadd.f32 %v4379_v36, %v942_v28 }
 0x124   : > { %v1017_v63 = vpop.f32.mrf.mxu1  ;;  %v4392_v3 = vpop.f32.mrf.mxu0 }
 0x125   : > { %v1154_v29 = vadd.f32 %v4389_v58, %v1048_v34  ;;  %v1046_v22 = vadd.f32 %v1017_v63, %v940_v62 }
 0x126   : > { %v4382_v11 = vpop.f32.mrf.mxu1  ;;  %v1136_v50 = vpop.f32.mrf.mxu0 }
 0x127   : > { %v1152_v18 = vadd.f32 %v1123_v45, %v1046_v22  ;;  %v1051_v40 = vadd.f32 %v4382_v11, %v945_v26 }
 0x128   : > { %v1030_v33 = vpop.f32.mrf.mxu1  ;;  %v4393_v49 = vpop.f32.mrf.mxu0 }
 0x129   : > { %v1157_v41 = vadd.f32 %v4392_v3, %v1051_v40  ;;  %v1049_v51 = vadd.f32 %v1030_v33, %v943_v31 }
 0x12a   : > { %v4383_v56 = vpop.f32.mrf.mxu1  ;;  %v1139_v27 = vpop.f32.mrf.mxu0 }
 0x12b   : > { %v1155_v23 = vadd.f32 %v1136_v50, %v1049_v51  ;;  %v1052_v59 = vadd.f32 %v4383_v56, %v946_v12 }
 0x12c   : > { %v1033_v0 = vpop.f32.mrf.mxu1  ;;  %v4408_v61 = vpop.f32.mrf.mxu0 }
 0x12d   : > { %v1158_v54 = vadd.f32 %v4393_v49, %v1052_v59  ;;  %v1050_v1 = vadd.f32 %v1033_v0, %v944_v37 }
 0x12e   : > { %v4398_v16 = vpop.f32.mrf.mxu1  ;;  %v1333_v21 = vpop.f32.mrf.mxu0 }
 0x12f   : > { %v1156_v44 = vadd.f32 %v1139_v27, %v1050_v1  ;;  %v1259_v39 = vadd.f32 %v4398_v16, %v1153_v46 }
 0x130   : > { %v1226_v35 = vpop.f32.mrf.mxu1  ;;  %v4409_v15 = vpop.f32.mrf.mxu0 }
 0x131   : > { %v1366_v43 = vadd.f32 %v4408_v61, %v1259_v39  ;;  %v1257_v4 = vadd.f32 %v1226_v35, %v1151_v38 }
 0x132   : > { %v4399_v48 = vpop.f32.mrf.mxu1  ;;  %v1336_v53 = vpop.f32.mrf.mxu0 }
 0x133   : > { %v1364_v24 = vadd.f32 %v1333_v21, %v1257_v4  ;;  %v1260_v42 = vadd.f32 %v4399_v48, %v1154_v29 }
 0x134   : > { %v1229_v13 = vpop.f32.mrf.mxu1  ;;  %v4412_v47 = vpop.f32.mrf.mxu0 }
 0x135   : > { %v1367_v28 = vadd.f32 %v4409_v15, %v1260_v42  ;;  %v1258_v55 = vadd.f32 %v1229_v13, %v1152_v18 }
 0x136   : > { %v4402_v30 = vpop.f32.mrf.mxu1  ;;  %v1349_v60 = vpop.f32.mrf.mxu0 }
 0x137   : > { %v1365_v62 = vadd.f32 %v1336_v53, %v1258_v55  ;;  %v1263_v57 = vadd.f32 %v4402_v30, %v1157_v41 }
 0x138   : > { %v1242_v5 = vpop.f32.mrf.mxu1  ;;  %v4413_v19 = vpop.f32.mrf.mxu0 }
 0x139   : > { %v1370_v26 = vadd.f32 %v4412_v47, %v1263_v57  ;;  %v1261_v2 = vadd.f32 %v1242_v5, %v1155_v23 }
 0x13a   : > { %v4403_v6 = vpop.f32.mrf.mxu1  ;;  %v1352_v52 = vpop.f32.mrf.mxu0 }
 0x13b   : > { %v1368_v31 = vadd.f32 %v1349_v60, %v1261_v2  ;;  %v1264_v9 = vadd.f32 %v4403_v6, %v1158_v54 }
 0x13c   : > { %v1245_v8 = vpop.f32.mrf.mxu1  ;;  %v4428_v10 = vpop.f32.mrf.mxu0 }
 0x13d   : > { %v1371_v12 = vadd.f32 %v4413_v19, %v1264_v9  ;;  %v1262_v14 = vadd.f32 %v1245_v8, %v1156_v44 }
 0x13e   : > { %v4418_v17 = vpop.f32.mrf.mxu1  ;;  %v1545_v20 = vpop.f32.mrf.mxu0 }
 0x13f   : > { %v1369_v37 = vadd.f32 %v1352_v52, %v1262_v14  ;;  %v1472_v25 = vadd.f32 %v4418_v17, %v1366_v43 }
 0x140   : > { %v1439_v7 = vpop.f32.mrf.mxu1  ;;  %v4429_v58 = vpop.f32.mrf.mxu0 }
 0x141   : > { %v1578_v46 = vadd.f32 %v4428_v10, %v1472_v25  ;;  %v1470_v32 = vadd.f32 %v1439_v7, %v1364_v24 }
 0x142   : > { %v4419_v36 = vpop.f32.mrf.mxu1  ;;  %v1548_v45 = vpop.f32.mrf.mxu0 }
 0x143   : > { %v1576_v38 = vadd.f32 %v1545_v20, %v1470_v32  ;;  %v1473_v34 = vadd.f32 %v4419_v36, %v1367_v28 }
 0x144   : > { %v1442_v63 = vpop.f32.mrf.mxu1  ;;  %v4432_v3 = vpop.f32.mrf.mxu0 }
 0x145   : > { %v1579_v29 = vadd.f32 %v4429_v58, %v1473_v34  ;;  %v1471_v22 = vadd.f32 %v1442_v63, %v1365_v62 }
 0x146   : > { %v4422_v11 = vpop.f32.mrf.mxu1  ;;  %v1561_v50 = vpop.f32.mrf.mxu0 }
 0x147   : > { %v1577_v18 = vadd.f32 %v1548_v45, %v1471_v22  ;;  %v1476_v40 = vadd.f32 %v4422_v11, %v1370_v26 }
 0x148   : > { %v1455_v33 = vpop.f32.mrf.mxu1  ;;  %v4433_v49 = vpop.f32.mrf.mxu0 }
 0x149   : > { %v1582_v41 = vadd.f32 %v4432_v3, %v1476_v40  ;;  %v1474_v51 = vadd.f32 %v1455_v33, %v1368_v31 }
 0x14a   : > { %v4423_v56 = vpop.f32.mrf.mxu1  ;;  %v1564_v27 = vpop.f32.mrf.mxu0 }
 0x14b   : > { %v1580_v23 = vadd.f32 %v1561_v50, %v1474_v51  ;;  %v1477_v59 = vadd.f32 %v4423_v56, %v1371_v12 }
 0x14c   : > { %v1458_v0 = vpop.f32.mrf.mxu1  ;;  %v4448_v61 = vpop.f32.mrf.mxu0 }
 0x14d   : > { %v1583_v54 = vadd.f32 %v4433_v49, %v1477_v59  ;;  %v1475_v1 = vadd.f32 %v1458_v0, %v1369_v37 }
 0x14e   : > { %v4438_v16 = vpop.f32.mrf.mxu1  ;;  %v1835_v21 = vpop.f32.mrf.mxu0 }
 0x14f   : > { %v1581_v44 = vadd.f32 %v1564_v27, %v1475_v1  ;;  %v1762_v39 = vadd.f32 %v4438_v16, %v1578_v46 }
 0x150   : > { %v1729_v35 = vpop.f32.mrf.mxu1  ;;  %v4449_v15 = vpop.f32.mrf.mxu0 }
 0x151   : > { %v1868_v43 = vadd.f32 %v4448_v61, %v1762_v39  ;;  %v1760_v4 = vadd.f32 %v1729_v35, %v1576_v38 }
 0x152   : > { %v4439_v48 = vpop.f32.mrf.mxu1  ;;  %v1838_v53 = vpop.f32.mrf.mxu0 }
 0x153   : > { %v1866_v24 = vadd.f32 %v1835_v21, %v1760_v4  ;;  %v1763_v42 = vadd.f32 %v4439_v48, %v1579_v29 }
 0x154   : > { %v1732_v13 = vpop.f32.mrf.mxu1  ;;  %v4452_v47 = vpop.f32.mrf.mxu0 }
 0x155   : > { %v1869_v28 = vadd.f32 %v4449_v15, %v1763_v42  ;;  %v1761_v55 = vadd.f32 %v1732_v13, %v1577_v18 }
 0x156   : > { %v4442_v30 = vpop.f32.mrf.mxu1  ;;  %v1851_v60 = vpop.f32.mrf.mxu0 }
 0x157   : > { %v1867_v62 = vadd.f32 %v1838_v53, %v1761_v55  ;;  %v1766_v57 = vadd.f32 %v4442_v30, %v1582_v41 }
 0x158   : > { %v1745_v5 = vpop.f32.mrf.mxu1  ;;  %v4453_v19 = vpop.f32.mrf.mxu0 }
 0x159   : > { %v1872_v26 = vadd.f32 %v4452_v47, %v1766_v57  ;;  %v1764_v2 = vadd.f32 %v1745_v5, %v1580_v23 }
 0x15a   : > { %v4443_v6 = vpop.f32.mrf.mxu1  ;;  %v1854_v52 = vpop.f32.mrf.mxu0 }
 0x15b   : > { %v1870_v31 = vadd.f32 %v1851_v60, %v1764_v2  ;;  %v1767_v9 = vadd.f32 %v4443_v6, %v1583_v54 }
 0x15c   : > { %v1748_v8 = vpop.f32.mrf.mxu1  ;;  %v4468_v10 = vpop.f32.mrf.mxu0 }
 0x15d   : > { %v1873_v12 = vadd.f32 %v4453_v19, %v1767_v9  ;;  %v1765_v14 = vadd.f32 %v1748_v8, %v1581_v44 }
 0x15e   : > { %v4458_v17 = vpop.f32.mrf.mxu1  ;;  %v2047_v20 = vpop.f32.mrf.mxu0 }
 0x15f   : > { %v1871_v37 = vadd.f32 %v1854_v52, %v1765_v14  ;;  %v1974_v25 = vadd.f32 %v4458_v17, %v1868_v43 }
 0x160   : > { %v1941_v7 = vpop.f32.mrf.mxu1  ;;  %v4469_v58 = vpop.f32.mrf.mxu0 }
 0x161   : > { %v2080_v46 = vadd.f32 %v4468_v10, %v1974_v25  ;;  %v1972_v32 = vadd.f32 %v1941_v7, %v1866_v24 }
 0x162   : > { %v4459_v36 = vpop.f32.mrf.mxu1  ;;  %v2050_v45 = vpop.f32.mrf.mxu0 }
 0x163   : > { %v2078_v38 = vadd.f32 %v2047_v20, %v1972_v32  ;;  %v1975_v34 = vadd.f32 %v4459_v36, %v1869_v28 }
 0x164   : > { %v1944_v63 = vpop.f32.mrf.mxu1  ;;  %v4472_v3 = vpop.f32.mrf.mxu0 }
 0x165   : > { %v2081_v29 = vadd.f32 %v4469_v58, %v1975_v34  ;;  %v1973_v22 = vadd.f32 %v1944_v63, %v1867_v62 }
 0x166   : > { %v4462_v11 = vpop.f32.mrf.mxu1  ;;  %v2063_v50 = vpop.f32.mrf.mxu0 }
 0x167   : > { %v2079_v18 = vadd.f32 %v2050_v45, %v1973_v22  ;;  %v1978_v40 = vadd.f32 %v4462_v11, %v1872_v26 }
 0x168   : > { %v1957_v33 = vpop.f32.mrf.mxu1  ;;  %v4473_v49 = vpop.f32.mrf.mxu0 }
 0x169   : > { %v2084_v41 = vadd.f32 %v4472_v3, %v1978_v40  ;;  %v1976_v51 = vadd.f32 %v1957_v33, %v1870_v31 }
 0x16a   : > { %v4463_v56 = vpop.f32.mrf.mxu1  ;;  %v2066_v27 = vpop.f32.mrf.mxu0 }
 0x16b   : > { %v2082_v23 = vadd.f32 %v2063_v50, %v1976_v51  ;;  %v1979_v59 = vadd.f32 %v4463_v56, %v1873_v12 }
 0x16c   : > { %v1960_v0 = vpop.f32.mrf.mxu1  ;;  %v4488_v61 = vpop.f32.mrf.mxu0 }
 0x16d   : > { %v2085_v54 = vadd.f32 %v4473_v49, %v1979_v59  ;;  %v1977_v1 = vadd.f32 %v1960_v0, %v1871_v37 }
 0x16e   : > { %v4478_v16 = vpop.f32.mrf.mxu1  ;;  %v2259_v21 = vpop.f32.mrf.mxu0 }
 0x16f   : > { %v2083_v44 = vadd.f32 %v2066_v27, %v1977_v1  ;;  %v2186_v39 = vadd.f32 %v4478_v16, %v2080_v46 }
 0x170   : > { %v2153_v35 = vpop.f32.mrf.mxu1  ;;  %v4489_v15 = vpop.f32.mrf.mxu0 }
 0x171   : > { %v5707_v43 = vadd.f32 %v4488_v61, %v2186_v39  ;;  %v2184_v4 = vadd.f32 %v2153_v35, %v2078_v38 }
 0x172   : > { %v4479_v48 = vpop.f32.mrf.mxu1  ;;  %v2262_v53 = vpop.f32.mrf.mxu0 }
 0x173   : > { %v5709_v24 = vadd.f32 %v2259_v21, %v2184_v4  ;;  %v2187_v42 = vadd.f32 %v4479_v48, %v2081_v29 }
 0x174   : > { %v2156_v13 = vpop.f32.mrf.mxu1  ;;  %v4492_v47 = vpop.f32.mrf.mxu0 }
 0x175   : > { %v5711_v28 = vadd.f32 %v4489_v15, %v2187_v42  ;;  %v2185_v55 = vadd.f32 %v2156_v13, %v2079_v18 }
 0x176   : > { %v4482_v30 = vpop.f32.mrf.mxu1  ;;  %v2275_v60 = vpop.f32.mrf.mxu0 }
 0x177   : > { %v5713_v62 = vadd.f32 %v2262_v53, %v2185_v55  ;;  %v2190_v57 = vadd.f32 %v4482_v30, %v2084_v41 }
 0x178   : > { %v2169_v5 = vpop.f32.mrf.mxu1  ;;  %v4493_v19 = vpop.f32.mrf.mxu0 }
 0x179   : > { %v5715_v26 = vadd.f32 %v4492_v47, %v2190_v57  ;;  %v2188_v2 = vadd.f32 %v2169_v5, %v2082_v23 }
 0x17a   : > { %v4483_v6 = vpop.f32.mrf.mxu1  ;;  %v2278_v52 = vpop.f32.mrf.mxu0 }
 0x17b   : > { %v5717_v31 = vadd.f32 %v2275_v60, %v2188_v2  ;;  %v2191_v9 = vadd.f32 %v4483_v6, %v2085_v54 }
 0x17c   : > { %v2172_v8 = vpop.f32.mrf.mxu1  ;;  %v4508_v10 = vpop.f32.mrf.mxu0 }
 0x17d   : > { %v5719_v12 = vadd.f32 %v4493_v19, %v2191_v9  ;;  %v2189_v14 = vadd.f32 %v2172_v8, %v2083_v44 }
 0x17e   : > { %v4498_v17 = vpop.f32.mrf.mxu1  ;;  %v2471_v20 = vpop.f32.mrf.mxu0 }
 0x17f   : > { %v5721_v37 = vadd.f32 %v2278_v52, %v2189_v14  ;;  %v2398_v9 = vadd.f32 %v4498_v17, %v5707_v43 }
 0x180   : > { %v2365_v25 = vpop.f32.mrf.mxu1  ;;  %v5723_v7 = vpop.f32.mrf.mxu0 }
 0x182   : > { %v4499_v58 = vpop.f32.mrf.mxu1  ;;  %v5725_v46 = vpop.f32.mrf.mxu0 }
 0x184   : > { %v2368_v32 = vpop.f32.mrf.mxu1  ;;  %v5727_v36 = vpop.f32.mrf.mxu0 }
 0x185   : > { %v2397_v43 = vadd.f32 %v2368_v32, %v5713_v62 }
 0x186   : > { %v4502_v45 = vpop.f32.mrf.mxu1  ;;  %v5729_v38 = vpop.f32.mrf.mxu0 }
 0x188   : > { %v2381_v34 = vpop.f32.mrf.mxu1  ;;  %v5731_v63 = vpop.f32.mrf.mxu0 }
 0x18a   : > { %v5733_v3 = vpop.f32.mrf.mxu1  ;;  %v5735_v29 = vpop.f32.mrf.mxu0 }
 0x18b   : > { %v2403_v62 = vadd.f32 %v5733_v3, %v5719_v12 }
 0x18c   : > { %v5737_v22 = vpop.f32.mrf.mxu1  ;;  %v4528_v11 = vpop.f32.mrf.mxu0 }
 0x18d   : > { %v2509_v3 = vadd.f32 %v5731_v63, %v2403_v62 }
 0x18e   : > { %v4518_v50 = vpop.f32.mrf.mxu1  ;;  %v2762_v18 = vpop.f32.mrf.mxu0 }
 0x190   : > { %v2577_v40 = vpop.f32.mrf.mxu1  ;;  %v5739_v33 = vpop.f32.mrf.mxu0 }
 0x192   : > { %v4519_v49 = vpop.f32.mrf.mxu1  ;;  %v5741_v41 = vpop.f32.mrf.mxu0 }
 0x194   : > { %v2580_v51 = vpop.f32.mrf.mxu1  ;;  %v5743_v56 = vpop.f32.mrf.mxu0 }
 0x196   : > { %v5745_v27 = vpop.f32.mrf.mxu1  ;;  %v5747_v23 = vpop.f32.mrf.mxu0 }
 0x198   : > { %v5749_v59 = vpop.f32.mrf.mxu1  ;;  %v5751_v0 = vpop.f32.mrf.mxu0 }
 0x19a   : > { %v5753_v61 = vpop.f32.mrf.mxu1  ;;  %v5755_v54 = vpop.f32.mrf.mxu0 }
 0x19b   : > { %6022 = vst [vmem:[#allocation5_spill] sm:$0xff] %v5755_v54 }
 0x19c   : > { %v5757_v1 = vpop.f32.mrf.mxu1  ;;  %v5759_v16 = vpop.f32.mrf.mxu0 }
 0x19e   : > { %v4538_v21 = vpop.f32.mrf.mxu1  ;;  %v5761_v44 = vpop.f32.mrf.mxu0 }
 0x1a0   : > { %v2868_v39 = vpop.f32.mrf.mxu1  ;;  %v5763_v35 = vpop.f32.mrf.mxu0 }
 0x1a2   : > { %v4539_v15 = vpop.f32.mrf.mxu1  ;;  %v5765_v4 = vpop.f32.mrf.mxu0 }
 0x1a4   : > { %v5767_v48 = vpop.f32.mrf.mxu1  ;;  %v5769_v53 = vpop.f32.mrf.mxu0 }
 0x1a5   : > { %6023 = vst [vmem:[#allocation4_spill] sm:$0xff] %v5769_v53  ;;  %v2399_v53 = vadd.f32 %v4499_v58, %v5711_v28 }
 0x1a6   : > { %v5771_v42 = vpop.f32.mrf.mxu1  ;;  %v5773_v13 = vpop.f32.mrf.mxu0 }
 0x1a7   : > { %6024 = vst [vmem:[#allocation10_spill] sm:$0xff] %v5773_v13 }
 0x1a8   : > { %v5775_v47 = vpop.f32.mrf.mxu1  ;;  %v5777_v55 = vpop.f32.mrf.mxu0 }
 0x1a9   : > { %6025 = vst [vmem:[#allocation6_spill] sm:$0xff] %v5777_v55  ;;  %v2396_v55 = vadd.f32 %v2365_v25, %v5709_v24  ;;  %v2505_v24 = vadd.f32 %v5723_v7, %v2399_v53 }
 0x1aa   : > { %v5779_v30 = vpop.f32.mrf.mxu1  ;;  %v5781_v60 = vpop.f32.mrf.mxu0 }
 0x1ab   : > { %6026 = vst [vmem:[#allocation3_spill] sm:$0xff] %v5779_v30  ;;  %6027 = vst [vmem:[#allocation8_spill] sm:$0xff] %v5781_v60 }
 0x1ac   : > { %v5783_v57 = vpop.f32.mrf.mxu1  ;;  %v5785_v5 = vpop.f32.mrf.mxu0 }
 0x1ad   : > { %6028 = vst [vmem:[#allocation12_spill] sm:$0xff] %v5783_v57  ;;  %v2504_v57 = vadd.f32 %v4508_v10, %v2398_v9  ;;  %v2400_v10 = vadd.f32 %v2381_v34, %v5717_v31 }
 0x1ae   : > { %v4558_v19 = vpop.f32.mrf.mxu1  ;;  %v5787_v2 = vpop.f32.mrf.mxu0  ;;  %v6037_v62 = vld [vmem:[#allocation10_spill] sm:$0xff] }
 0x1af   : > { %6029 = vst [vmem:[#allocation7_spill] sm:$0xff] %v5787_v2  ;;  %v2610_v30 = vadd.f32 %v4518_v50, %v2504_v57  ;;  %v2503_v50 = vadd.f32 %v5725_v46, %v2397_v43  ;;  %v2506_v31 = vadd.f32 %v5729_v38, %v2400_v10  ;;  %v2401_v46 = vadd.f32 %v5737_v22, %v5721_v37 }
 0x1b0   : > { %v3080_v6 = vpop.f32.mrf.mxu1  ;;  %v5789_v52 = vpop.f32.mrf.mxu0  ;;  %v2615_v37 = vadd.f32 %v5753_v61, %v2509_v3 }
 0x1b1   : > { %6030 = vst [vmem:[#allocation11_spill] sm:$0xff] %v5789_v52  ;;  %v2502_v52 = vadd.f32 %v2471_v20, %v2396_v55  ;;  %v2795_v9 = vadd.f32 %v4528_v11, %v2610_v30  ;;  %v2611_v20 = vadd.f32 %v4519_v49, %v2505_v24  ;;  %v2507_v63 = vadd.f32 %v5735_v29, %v2401_v46 }
 0x1b2   : > { %v5792_v8 = vpop.f32.mrf.mxu1  ;;  %v5794_v14 = vpop.f32.mrf.mxu0  ;;  %v2800_v29 = vadd.f32 %v5751_v0, %v2615_v37  ;;  %v6034_v0 = vld [vmem:[#allocation5_spill] sm:$0xff] }
 0x1b3   : > { %6031 = vst [vmem:[#allocation9_spill] sm:$0xff] %v5794_v14  ;;  %v2608_v25 = vadd.f32 %v2577_v40, %v2502_v52  ;;  %v2901_v40 = vadd.f32 %v4538_v21, %v2795_v9  ;;  %v2796_v11 = vadd.f32 %v5739_v33, %v2611_v20  ;;  %v6036_v20 = vld [vmem:[#allocation4_spill] sm:$0xff] }
 0x1b4   : > { %v5797_v13 = vpop.f32.mrf.mxu1  ;;  %v5799_v60 = vpop.f32.mrf.mxu0 }
 0x1b5   : > { %6032 = vst [vmem:[#allocation13_spill] sm:$0xff] %v5799_v60  ;;  %v2402_v60 = vadd.f32 %v4502_v45, %v5715_v26  ;;  %v2793_v7 = vadd.f32 %v2762_v18, %v2608_v25  ;;  %v2609_v45 = vadd.f32 %v2580_v51, %v2503_v50  ;;  %v2612_v18 = vadd.f32 %v5749_v59, %v2506_v31 }
 0x1b6   : > { %v5802_v54 = vpop.f32.mrf.mxu1  ;;  %v5804_v2 = vpop.f32.mrf.mxu0  ;;  %v3007_v38 = vadd.f32 %v5759_v16, %v2901_v40  ;;  %v2902_v51 = vadd.f32 %v4539_v15, %v2796_v11  ;;  %v6040_v11 = vld [vmem:[#allocation6_spill] sm:$0xff] }
 0x1b7   : > { %v2508_v26 = vadd.f32 %v5727_v36, %v2402_v60  ;;  %v2899_v12 = vadd.f32 %v2868_v39, %v2793_v7  ;;  %v2794_v30 = vadd.f32 %v5741_v41, %v2609_v45  ;;  %v2797_v60 = vadd.f32 %v5747_v23, %v2612_v18 }
 0x1b8   : > { %v5807_v17 = vpop.f32.mrf.mxu1  ;;  %v5809_v14 = vpop.f32.mrf.mxu0  ;;  %v3113_v59 = vadd.f32 %v4558_v19, %v3007_v38  ;;  %v2613_v41 = vadd.f32 %v5757_v1, %v2507_v63  ;;  %v3008_v61 = vadd.f32 %v5763_v35, %v2902_v51  ;;  %v6033_v1 = vld [vmem:[#allocation3_spill] sm:$0xff] }
 0x1b9   : > { %v2614_v49 = vadd.f32 %v5745_v27, %v2508_v26  ;;  %v3005_v27 = vadd.f32 %v5761_v44, %v2899_v12  ;;  %v2900_v57 = vadd.f32 %v5767_v48, %v2794_v30  ;;  %v2903_v19 = vadd.f32 %v5775_v47, %v2797_v60  ;;  %v6039_v31 = vld [vmem:[#allocation11_spill] sm:$0xff] }
 0x1ba   : > { %v5814_v28 = vpop.f32.mrf.mxu1  ;;  %v5816_v58 = vpop.f32.mrf.mxu0  ;;  %v3219_v23 = vadd.f32 %v5785_v5, %v3113_v59  ;;  %v3114_v48 = vadd.f32 %v5792_v8, %v3008_v61  ;;  %v2906_v25 = vadd.f32 %v6033_v1, %v2800_v29  ;;  %v2798_v10 = vadd.f32 %v6034_v0, %v2613_v41  ;;  %v6041_v51 = vld [vmem:[#allocation9_spill] sm:$0xff] }
 0x1bb   : > { %v2799_v39 = vadd.f32 %v5743_v56, %v2614_v49  ;;  %v3111_v52 = vadd.f32 %v3080_v6, %v3005_v27  ;;  %v3006_v24 = vadd.f32 %v5765_v4, %v2900_v57  ;;  %v3009_v7 = vadd.f32 %v6037_v62, %v2903_v19  ;;  %v6038_v4 = vld [vmem:[#allocation12_spill] sm:$0xff] }
 0x1bc   : > { %v5821_v32 = vpop.f32.mrf.mxu1  ;;  %v5823_v55 = vpop.f32.mrf.mxu0  ;;  %v2904_v26 = vadd.f32 %v6038_v4, %v2798_v10  ;;  %v3220_v45 = vadd.f32 %v6039_v31, %v3114_v48  ;;  %v6042_v27 = vld [vmem:[#allocation8_spill] sm:$0xff] }
 0x1bd   : > { %v2905_v44 = vadd.f32 %v5771_v42, %v2799_v39  ;;  %v6035_v42 = vld [vmem:[#allocation7_spill] sm:$0xff]  ;;  %v3112_v5 = vadd.f32 %v5797_v13, %v3006_v24  ;;  %v3115_v3 = vadd.f32 %v5807_v17, %v3009_v7 }
 0x1be   : > { %v4578_v34 = vpop.f32.mrf.mxu1  ;;  %v5827_v53 = vpop.f32.mrf.mxu0  ;;  %v3217_v9 = vadd.f32 %v6035_v42, %v3111_v52  ;;  %v3010_v59 = vadd.f32 %v6042_v27, %v2904_v26 }
 0x1bf   : > { %v3325_v47 = vadd.f32 %v4578_v34, %v3219_v23  ;;  %v3011_v50 = vadd.f32 %v6036_v20, %v2905_v44  ;;  %v3012_v34 = vadd.f32 %v6040_v11, %v2906_v25  ;;  %v3218_v30 = vadd.f32 %v6041_v51, %v3112_v5 }
 0x1c0   : > { %v3292_v21 = vpop.f32.mrf.mxu1  ;;  %v5835_v36 = vpop.f32.mrf.mxu0  ;;  %v3221_v17 = vadd.f32 %v5804_v2, %v3115_v3  ;;  %v3116_v61 = vadd.f32 %v5821_v32, %v3010_v59 }
 0x1c1   : > { %v3323_v46 = vadd.f32 %v3292_v21, %v3217_v9  ;;  %v3117_v12 = vadd.f32 %v5802_v54, %v3011_v50  ;;  %v3431_v18 = vadd.f32 %v5823_v55, %v3325_v47  ;;  %v3118_v37 = vadd.f32 %v5814_v28, %v3012_v34  ;;  %v6043_v54 = vld [vmem:[#allocation13_spill] sm:$0xff]  ;;  %v5890_v55 = vld [vmem:[%s5969_s4] ss:$0 sm:$0xff] }
 0x1c2   : > { %v4579_v22 = vpop.f32.mrf.mxu1  ;;  %v5840_v33 = vpop.f32.mrf.mxu0 }
 0x1c3   : > { %v3326_v38 = vadd.f32 %v4579_v22, %v3220_v45  ;;  %v3429_v39 = vadd.f32 %v5827_v53, %v3323_v46  ;;  %v3223_v57 = vadd.f32 %v6043_v54, %v3117_v12  ;;  %v3224_v44 = vadd.f32 %v5809_v14, %v3118_v37 }
 0x1c4   : > { %v3295_v16 = vpop.f32.mrf.mxu1  ;;  %v5847_v15 = vpop.f32.mrf.mxu0 }
 0x1c5   : > { %v3324_v41 = vadd.f32 %v3295_v16, %v3218_v30  ;;  %v3432_v52 = vadd.f32 %v5835_v36, %v3326_v38 }
 0x1c6   : > { %v4582_v56 = vpop.f32.mrf.mxu1  ;;  %v5856_v43 = vpop.f32.mrf.mxu0 }
 0x1c7   : > { %v3329_v19 = vadd.f32 %v4582_v56, %v3223_v57  ;;  %v3430_v24 = vadd.f32 %v5840_v33, %v3324_v41  ;;  %v3222_v56 = vadd.f32 %v5816_v58, %v3116_v61 }
 0x1c8   : > { %v3308_v35 = vpop.f32.mrf.mxu1  ;;  %v5862_v6 = vpop.f32.mrf.mxu0 }
 0x1c9   : > { %v3327_v23 = vadd.f32 %v3308_v35, %v3221_v17  ;;  %v3435_v35 = vadd.f32 %v5847_v15, %v3329_v19 }
 0x1ca   : > { %v4583_v8 = vpop.f32.mrf.mxu1  ;;  %v5869_v40 = vpop.f32.mrf.mxu0 }
 0x1cb   : > { %v3330_v25 = vadd.f32 %v4583_v8, %v3224_v44  ;;  %v3433_v47 = vadd.f32 %v5856_v43, %v3327_v23 }
 0x1cc   : > { %v3311_v49 = vpop.f32.mrf.mxu1  ;;  %v4608_v13 = vpop.f32.mrf.mxu0 }
 0x1cd   : > { %v3328_v20 = vadd.f32 %v3311_v49, %v3222_v56  ;;  %v3436_v5 = vadd.f32 %v5862_v6, %v3330_v25 }
 0x1ce   : > { %v4598_v21 = vpop.f32.mrf.mxu1  ;;  %v3610_v63 = vpop.f32.mrf.mxu0 }
 0x1cf   : > { %v3537_v60 = vadd.f32 %v4598_v21, %v3431_v18  ;;  %v3434_v31 = vadd.f32 %v5869_v40, %v3328_v20 }
 0x1d0   : > { %v3504_v22 = vpop.f32.mrf.mxu1  ;;  %v4609_v28 = vpop.f32.mrf.mxu0 }
 0x1d1   : > { %v3643_v29 = vadd.f32 %v4608_v13, %v3537_v60  ;;  %v3535_v53 = vadd.f32 %v3504_v22, %v3429_v39 }
 0x1d2   : > { %v4599_v2 = vpop.f32.mrf.mxu1  ;;  %v3613_v16 = vpop.f32.mrf.mxu0 }
 0x1d3   : > { %v3658_v48 = vadd.f32 %v5890_v55, %v3643_v29  ;;  %v3641_v32 = vadd.f32 %v3610_v63, %v3535_v53  ;;  %v3538_v36 = vadd.f32 %v4599_v2, %v3432_v52 }
 0x1d4   : > { %v3507_v1 = vpop.f32.mrf.mxu1  ;;  %v4612_v14 = vpop.f32.mrf.mxu0 }
 0x1d5   : > { %3667 = vst.msk [vmem:[%s5898_s28 + $0x10] sm:$0xff] %vm3664_vm0, %v3658_v48  ;;  %v3656_v0 = vadd.f32 %v5890_v55, %v3641_v32  ;;  %v3644_v10 = vadd.f32 %v4609_v28, %v3538_v36  ;;  %v3536_v42 = vadd.f32 %v3507_v1, %v3430_v24  ;;  %v3696_v45 = vmul.f32 %v3658_v48, %v3658_v48 }
 0x1d6   : > { %v4602_v9 = vpop.f32.mrf.mxu1  ;;  %v3626_v50 = vpop.f32.mrf.mxu0  ;;  %v3676_v30 = vsel %vm3664_vm0, %v3658_v48, 0.0 }
 0x1d7   : > { %3665 = vst.msk [vmem:[%s5898_s28] sm:$0xff] %vm3664_vm0, %v3656_v0  ;;  %v3659_v33 = vadd.f32 %v5890_v55, %v3644_v10  ;;  %v3642_v58 = vadd.f32 %v3613_v16, %v3536_v42  ;;  %v3541_v62 = vadd.f32 %v4602_v9, %v3435_v35  ;;  %v3694_v15 = vmul.f32 %v3656_v0, %v3656_v0 }
 0x1d8   : > { %v3520_v7 = vpop.f32.mrf.mxu1  ;;  %v4613_v34 = vpop.f32.mrf.mxu0  ;;  %v3673_v12 = vsel %vm3664_vm0, %v3656_v0, 0.0  ;;  %v3705_v27 = vsel %vm3664_vm0, %v3696_v45, 0.0 }
 0x1d9   : > { %3668 = vst.msk [vmem:[%s5898_s28 + $0x18] sm:$0xff] %vm3664_vm0, %v3659_v33  ;;  %v3539_v8 = vadd.f32 %v3520_v7, %v3433_v47  ;;  %v3657_v4 = vadd.f32 %v5890_v55, %v3642_v58  ;;  %v3647_v26 = vadd.f32 %v4612_v14, %v3541_v62  ;;  %v3702_v37 = vsel %vm3664_vm0, %v3694_v15, 0.0 }
 0x1da   : > { %v4603_v43 = vpop.f32.mrf.mxu1  ;;  %v3697_v21 = vmul.f32 %v3659_v33, %v3659_v33  ;;  %v3629_v60 = vpop.f32.mrf.mxu0  ;;  %v3678_v54 = vsel %vm3664_vm0, %v3659_v33, 0.0 }
 0x1db   : > { %v3645_v46 = vadd.f32 %v3626_v50, %v3539_v8  ;;  %v3542_v11 = vadd.f32 %v4603_v43, %v3436_v5  ;;  %3666 = vst.msk [vmem:[%s5898_s28 + $0x8] sm:$0xff] %vm3664_vm0, %v3657_v4  ;;  %v3674_v6 = vsel %vm3664_vm0, %v3657_v4, 0.0  ;;  %v3695_v3 = vmul.f32 %v3657_v4, %v3657_v4 }
 0x1dc   : > { %v3662_v49 = vadd.f32 %v5890_v55, %v3647_v26  ;;  %v3523_v13 = vpop.f32.mrf.mxu1  ;;  %v3675_v18 = vadd.f32 %v3674_v6, %v3673_v12  ;;  %v3707_v61 = vsel %vm3664_vm0, %v3697_v21, 0.0 }
 0x1dd   : > { %v3660_v38 = vadd.f32 %v5890_v55, %v3645_v46  ;;  %v3648_v40 = vadd.f32 %v4613_v34, %v3542_v11  ;;  %v3540_v51 = vadd.f32 %v3523_v13, %v3434_v31  ;;  %v3703_v63 = vsel %vm3664_vm0, %v3695_v3, 0.0 }
 0x1de   : > { %3671 = vst.msk [vmem:[%s5898_s28 + $0x30] sm:$0xff] %vm3664_vm0, %v3662_v49  ;;  %v3677_v59 = vadd.f32 %v3676_v30, %v3675_v18  ;;  %v3704_v39 = vadd.f32 %v3703_v63, %v3702_v37  ;;  %v3700_v19 = vmul.f32 %v3662_v49, %v3662_v49  ;;  %v3684_v36 = vsel %vm3664_vm0, %v3662_v49, 0.0 }
 0x1df   : > { %3669 = vst.msk [vmem:[%s5898_s28 + $0x20] sm:$0xff] %vm3664_vm0, %v3660_v38  ;;  %v3698_v57 = vmul.f32 %v3660_v38, %v3660_v38  ;;  %v3663_v17 = vadd.f32 %v5890_v55, %v3648_v40  ;;  %v3646_v41 = vadd.f32 %v3629_v60, %v3540_v51  ;;  %v3680_v52 = vsel %vm3664_vm0, %v3660_v38, 0.0 }
 0x1e0   : > { %v3706_v22 = vadd.f32 %v3705_v27, %v3704_v39  ;;  %v3679_v28 = vadd.f32 %v3678_v54, %v3677_v59 }
 0x1e1   : > { %3672 = vst.msk [vmem:[%s5898_s28 + $0x38] sm:$0xff] %vm3664_vm0, %v3663_v17  ;;  %v3661_v29 = vadd.f32 %v5890_v55, %v3646_v41  ;;  %v3709_v2 = vsel %vm3664_vm0, %v3698_v57, 0.0  ;;  %v3701_v24 = vmul.f32 %v3663_v17, %v3663_v17  ;;  %v3713_v55 = vsel %vm3664_vm0, %v3700_v19, 0.0 }
 0x1e2   : > { %v3681_v53 = vadd.f32 %v3680_v52, %v3679_v28  ;;  %v3708_v44 = vadd.f32 %v3707_v61, %v3706_v22  ;;  %v3686_v25 = vsel %vm3664_vm0, %v3663_v17, 0.0 }
 0x1e3   : > { %3670 = vst.msk [vmem:[%s5898_s28 + $0x28] sm:$0xff] %vm3664_vm0, %v3661_v29  ;;  %v3682_v16 = vsel %vm3664_vm0, %v3661_v29, 0.0  ;;  %v3699_v23 = vmul.f32 %v3661_v29, %v3661_v29  ;;  %v3715_v35 = vsel %vm3664_vm0, %v3701_v24, 0.0 }
 0x1e4   : > { %v3710_v48 = vadd.f32 %v3709_v2, %v3708_v44  ;;  %v3683_v32 = vadd.f32 %v3682_v16, %v3681_v53 }
 0x1e5   : > { %v3711_v1 = vsel %vm3664_vm0, %v3699_v23, 0.0 }
 0x1e6   : > { %v3685_v14 = vadd.f32 %v3684_v36, %v3683_v32  ;;  %v3712_v56 = vadd.f32 %v3711_v1, %v3710_v48 }
 0x1e8   : > { %v3687_v0 = vadd.f32 %v3686_v25, %v3685_v14  ;;  %v3714_v10 = vadd.f32 %v3713_v55, %v3712_v56 }
 0x1ea   : > { %v3688_v42 = vrot.slane %v3687_v0, 4  ;;  %v3716_v9 = vadd.f32 %v3715_v35, %v3714_v10 }
 0x1ec   : > { %v3689_v47 = vadd.f32 %v3688_v42, %v3687_v0  ;;  %v3717_v20 = vrot.slane %v3716_v9, 4 }
 0x1ee   : > { %v3690_v33 = vrot.slane %v3689_v47, 2  ;;  %v3718_v50 = vadd.f32 %v3717_v20, %v3716_v9 }
 0x1f0   : > { %v3691_v58 = vadd.f32 %v3690_v33, %v3689_v47  ;;  %v3719_v62 = vrot.slane %v3718_v50, 2 }
 0x1f2   : > { %v3692_v7 = vrot.slane %v3691_v58, 1  ;;  %v3720_v5 = vadd.f32 %v3719_v62, %v3718_v50 }
 0x1f4   : > { %v3721_v8 = vrot.slane %v3720_v5, 1  ;;  %v3693_v15 = vadd.f32 %v3692_v7, %v3691_v58 }
 0x1f6   : > { %v3722_v4 = vadd.f32 %v3721_v8, %v3720_v5 }
 0x1f8   : > { %v3724_v26 = vsel %vm3723_vm11, %v3693_v15, %v3722_v4 }
 0x1f9   : > { %3726 = vst.msk [vmem:[%s526_s18] sm:$0x3] %vm3725_vm12, %v3724_v26 }
 0x1fa PF: > { %s19_s9 = sadd.s32 1, %s4722_s9   ;;  %s6044_s27 = smov %s4714_s29 }
 0x1fb   : > { %p16_p10 = scmp.ge.s32.totalorder %s19_s9, 10   ;;  %s6045_s28 = smov %s4718_s30 }
 0x1fc   : > { %s6046_s29 = smov %s6049_s10  ;;  %s6047_s30 = smov %s6053_s11 }
 0x1fd   :  { %18 = sbr.rel (!%p16_p10) target bundleno = 3 (0x3), region = 124 }

</bundles_post_ra>
